<compile_context>
chip_gen: v7x
topology: tpu7x:2x2x1
jax: 0.10.0
libtpu: 0.0.40
codegen_flags: <defaults>
</compile_context>

<pallas_src>
import functools

import jax
import jax.numpy as jnp
from jax.experimental import pallas as pl
from jax.experimental.pallas import tpu as pltpu

_INT_COL = 8  # sublane-aligned column offset of the interior inside the scratch


def _dwconv_kernel(x_ref, w_ref, b_ref, o_ref, xpad_ref, *, H, W):
    # x_ref   : (1, H, W, TC)          input tile (one batch element, TC channels)
    # w_ref   : (9, TC)                depthwise weights, row k = (dh, dw) = divmod(k, 3)
    # b_ref   : (1, TC)                bias
    # o_ref   : (1, H, W, TC)          output tile
    # xpad_ref: (H+2, W+9, TC)         VMEM scratch; interior lives at columns [8, 8+W)
    TC = x_ref.shape[-1]
    WP = xpad_ref.shape[1]
    dt = xpad_ref.dtype
    c0 = _INT_COL

    # Zero only the halo that is actually read (rows 0 / H+1, columns c0-1 / c0+W).
    xpad_ref[0:1, :, :] = jnp.zeros((1, WP, TC), dt)
    xpad_ref[H + 1:H + 2, :, :] = jnp.zeros((1, WP, TC), dt)
    xpad_ref[1:H + 1, c0 - 1:c0, :] = jnp.zeros((H, 1, TC), dt)
    xpad_ref[1:H + 1, c0 + W:c0 + W + 1, :] = jnp.zeros((H, 1, TC), dt)

    # Interior copy at a sublane-aligned column offset: plain unmasked stores when
    # W % 8 == 0 (the biggest single store in the kernel). VMEM->VMEM, no HBM traffic.
    xpad_ref[1:H + 1, c0:c0 + W, :] = x_ref[0]

    w = w_ref[...].astype(jnp.float32)                    # (9, TC)
    b = b_ref[0].astype(jnp.float32)                      # (TC,)

    # Centre tap straight from the aligned input block; bias folded into the init
    # (saves a zero pass and a separate bias pass, and doesn't wait on the scratch).
    acc = (x_ref[0].astype(jnp.float32) * w[4][None, None, :]
           + b[None, None, :])

    # Remaining 8 taps: static slices of the padded scratch.  H offsets are pure row
    # strides; centre-column (dw == 1) windows start at the aligned offset c0.
    for k in range(9):
        if k == 4:
            continue
        dh, dw = divmod(k, 3)
        tap = xpad_ref[dh:dh + H, c0 - 1 + dw:c0 - 1 + dw + W, :].astype(jnp.float32)
        acc = acc + tap * w[k][None, None, :]

    o_ref[0] = acc.astype(o_ref.dtype)


def _pick_channel_tile(C, H, W, itemsize):
    """Largest lane-dense channel tile that divides C and keeps the block small."""
    if C % 128 != 0:
        # TODO(synk): for C not a multiple of 128, fold (W, C) into the lane axis
        # (weights tiled, dw-shift as a lane roll) instead of a lane-sparse block.
        return C
    budget = 12 * 1024 * 1024  # ~12 MiB per-block footprint (fits v7x comfortably)
    for cand in (512, 256, 128):
        if C % cand == 0:
            blk = ((4 * H * W * cand + (H + 2) * (W + 9) * cand) * itemsize
                   + 4 * H * W * cand * 4)
            if blk <= budget or cand == 128:
                return cand
    return 128


@functools.partial(jax.jit, static_argnums=(3, 4))
def dwconv_pallas(x, weight, bias, H, W):
    """Depthwise 3x3 conv (stride 1, pad 1, groups=C, bias).

    x: (B, N, C) with N == H*W; weight: (C, 3, 3) (PyTorch conv weight squeezed);
    bias: (C,).  Returns (B, N, C).
    """
    B, N, C = x.shape
    assert N == H * W, "N must equal H * W"
    itemsize = jnp.dtype(x.dtype).itemsize

    # (B, N, C) -> (B, H, W, C) is a free reshape (same row-major layout): no HBM copy.
    x_nhwc = x.reshape(B, H, W, C)
    w9c = jnp.transpose(weight.reshape(C, 9), (1, 0))     # (9, C), k = dh*3 + dw
    bias2d = bias.reshape(1, C)

    tc = _pick_channel_tile(C, H, W, itemsize)
    grid = (B, C // tc)

    # Explicit VMEM budget: double-buffered in/out tiles + padded scratch + f32 temps.
    # TODO(synk): very large H*W needs an H-tiled grid with a 1-row halo exchange;
    # here the whole image (per channel tile) is processed in one block.
    tile = H * W * tc
    vmem_est = ((4 * tile + (H + 2) * (W + 9) * tc) * itemsize
                + 4 * tile * 4 + (2 << 20))
    vmem_limit = int(min(max(vmem_est, 32 << 20), 48 << 20))

    kernel = functools.partial(_dwconv_kernel, H=H, W=W)

    out = pl.pallas_call(
        kernel,
        out_shape=jax.ShapeDtypeStruct((B, H, W, C), x.dtype),
        grid_spec=pltpu.PrefetchScalarGridSpec(
            num_scalar_prefetch=0,
            grid=grid,
            in_specs=[
                pl.BlockSpec((1, H, W, tc), lambda b, c: (b, 0, 0, c)),
                pl.BlockSpec((9, tc), lambda b, c: (0, c)),
                pl.BlockSpec((1, tc), lambda b, c: (0, c)),
            ],
            out_specs=pl.BlockSpec((1, H, W, tc), lambda b, c: (b, 0, 0, c)),
            scratch_shapes=[pltpu.VMEM((H + 2, W + 9, tc), x.dtype)],
        ),
        compiler_params=pltpu.CompilerParams(
            dimension_semantics=("parallel", "parallel"),
            vmem_limit_bytes=vmem_limit,
        ),
        cost_estimate=pl.CostEstimate(
            flops=18 * B * H * W * C,
            transcendentals=0,
            bytes_accessed=2 * B * H * W * C * itemsize + 10 * C * itemsize,
        ),
    )(x_nhwc, w9c, bias2d)

    return out.reshape(B, N, C)


def dwconv_reference(x, weight, bias, H, W):
    """Pure-JAX reference matching the PyTorch module semantics."""
    B, N, C = x.shape
    x_nhwc = x.reshape(B, H, W, C).astype(jnp.float32)
    x_pad = jnp.pad(x_nhwc, ((0, 0), (1, 1), (1, 1), (0, 0)))
    wt = weight.astype(jnp.float32)                        # (C, 3, 3)
    acc = jnp.zeros((B, H, W, C), jnp.float32) + bias.astype(jnp.float32)
    for i in range(3):
        for j in range(3):
            acc = acc + x_pad[:, i:i + H, j:j + W, :] * wt[:, i, j][None, None, None, :]
    return acc.reshape(B, N, C).astype(x.dtype)


if __name__ == "__main__":
    # Small shapes consistent with the module (dim defaults to 768 = 6*128; we use a
    # small lane-dense C=256 so the channel grid axis and 128-lane tiles are exercised).
    B, C, H, W = 2, 256, 16, 16
    N = H * W

    key = jax.random.PRNGKey(0)
    kx, kw, kb = jax.random.split(key, 3)

    x = jax.random.normal(kx, (B, N, C), dtype=jnp.float32)
    # nn.Conv2d(dim, dim, 3, groups=dim) weight is (dim, 1, 3, 3); stored squeezed as
    # (C, 3, 3).  Deterministic synthetic init: uniform in +-1/sqrt(fan_in), fan_in = 9.
    bound = 1.0 / 3.0
    weight = jax.random.uniform(kw, (C, 3, 3), minval=-bound, maxval=bound,
                                dtype=jnp.float32)
    bias = jax.random.uniform(kb, (C,), minval=-bound, maxval=bound, dtype=jnp.float32)

    out = dwconv_pallas(x, weight, bias, H, W)
    out = jax.block_until_ready(out)

    ref = dwconv_reference(x, weight, bias, H, W)
    assert out.shape == (B, N, C)
    err = float(jnp.max(jnp.abs(out - ref)))
    assert err < 1e-4, f"Pallas DWConv mismatch vs reference: {err}"

    print("KERNEL_OK")
</pallas_src>

<mosaic_0001>
module attributes {stable_mosaic.version = 11 : i64} {
  func.func @_dwconv_kernel(%arg0: i32, %arg1: i32, %arg2: memref<1x16x16x256xf32, #tpu.memory_space<vmem>>, %arg3: memref<9x256xf32, #tpu.memory_space<vmem>>, %arg4: memref<1x256xf32, #tpu.memory_space<vmem>>, %arg5: memref<1x16x16x256xf32, #tpu.memory_space<vmem>>, %arg6: memref<18x25x256xf32, #tpu.memory_space<vmem>>) attributes {dimension_semantics = [#tpu.dimension_semantics<parallel>, #tpu.dimension_semantics<parallel>], iteration_bounds = array<i64: 2, 1>, scalar_prefetch = 0 : i64, scratch_operands = 1 : i64, tpu.core_type = #tpu.core_type<tc>, window_params = [{transform_indices = @transform_0, window_bounds = array<i64: 1, 16, 16, 256>}, {transform_indices = @transform_1, window_bounds = array<i64: 9, 256>}, {transform_indices = @transform_2, window_bounds = array<i64: 1, 256>}, {transform_indices = @transform_3, window_bounds = array<i64: 1, 16, 16, 256>}]} {
    %cst = arith.constant 0.000000e+00 : f32
    %0 = vector.broadcast %cst : f32 to vector<1x25x256xf32>
    %c0 = arith.constant 0 : index
    %c0_0 = arith.constant 0 : index
    %c0_1 = arith.constant 0 : index
    %1 = vector.load %arg6[%c0, %c0_0, %c0_1] : memref<18x25x256xf32, #tpu.memory_space<vmem>>, vector<1x25x256xf32>
    tpu.vector_store %arg6[%c0, %c0_0, %c0_1], %0 {strides = array<i32>} : memref<18x25x256xf32, #tpu.memory_space<vmem>>, vector<1x25x256xf32>,
    %cst_2 = arith.constant 0.000000e+00 : f32
    %2 = vector.broadcast %cst_2 : f32 to vector<1x25x256xf32>
    %c17 = arith.constant 17 : index
    %c0_3 = arith.constant 0 : index
    %c0_4 = arith.constant 0 : index
    %3 = vector.load %arg6[%c17, %c0_3, %c0_4] : memref<18x25x256xf32, #tpu.memory_space<vmem>>, vector<1x25x256xf32>
    tpu.vector_store %arg6[%c17, %c0_3, %c0_4], %2 {strides = array<i32>} : memref<18x25x256xf32, #tpu.memory_space<vmem>>, vector<1x25x256xf32>,
    %cst_5 = arith.constant 0.000000e+00 : f32
    %4 = vector.broadcast %cst_5 : f32 to vector<16x1x256xf32>
    %c1 = arith.constant 1 : index
    %c7 = arith.constant 7 : index
    %c0_6 = arith.constant 0 : index
    %5 = vector.load %arg6[%c1, %c7, %c0_6] : memref<18x25x256xf32, #tpu.memory_space<vmem>>, vector<16x1x256xf32>
    tpu.vector_store %arg6[%c1, %c7, %c0_6], %4 {strides = array<i32>} : memref<18x25x256xf32, #tpu.memory_space<vmem>>, vector<16x1x256xf32>,
    %cst_7 = arith.constant 0.000000e+00 : f32
    %6 = vector.broadcast %cst_7 : f32 to vector<16x1x256xf32>
    %c1_8 = arith.constant 1 : index
    %c24 = arith.constant 24 : index
    %c0_9 = arith.constant 0 : index
    %7 = vector.load %arg6[%c1_8, %c24, %c0_9] : memref<18x25x256xf32, #tpu.memory_space<vmem>>, vector<16x1x256xf32>
    tpu.vector_store %arg6[%c1_8, %c24, %c0_9], %6 {strides = array<i32>} : memref<18x25x256xf32, #tpu.memory_space<vmem>>, vector<16x1x256xf32>,
    %c0_10 = arith.constant 0 : index
    %c0_11 = arith.constant 0 : index
    %c0_12 = arith.constant 0 : index
    %c0_13 = arith.constant 0 : index
    %8 = vector.load %arg2[%c0_10, %c0_11, %c0_12, %c0_13] : memref<1x16x16x256xf32, #tpu.memory_space<vmem>>, vector<1x16x16x256xf32>
    %9 = vector.shape_cast %8 : vector<1x16x16x256xf32> to vector<16x16x256xf32>
    %c1_14 = arith.constant 1 : index
    %c8 = arith.constant 8 : index
    %c0_15 = arith.constant 0 : index
    %10 = vector.load %arg6[%c1_14, %c8, %c0_15] : memref<18x25x256xf32, #tpu.memory_space<vmem>>, vector<16x16x256xf32>
    tpu.vector_store %arg6[%c1_14, %c8, %c0_15], %9 {strides = array<i32>} : memref<18x25x256xf32, #tpu.memory_space<vmem>>, vector<16x16x256xf32>,
    %c0_16 = arith.constant 0 : index
    %c0_17 = arith.constant 0 : index
    %11 = vector.load %arg3[%c0_16, %c0_17] : memref<9x256xf32, #tpu.memory_space<vmem>>, vector<9x256xf32>
    %c0_18 = arith.constant 0 : index
    %c0_19 = arith.constant 0 : index
    %12 = vector.load %arg4[%c0_18, %c0_19] : memref<1x256xf32, #tpu.memory_space<vmem>>, vector<1x256xf32>
    %13 = vector.shape_cast %12 : vector<1x256xf32> to vector<256xf32>
    %c0_20 = arith.constant 0 : index
    %c0_21 = arith.constant 0 : index
    %c0_22 = arith.constant 0 : index
    %c0_23 = arith.constant 0 : index
    %14 = vector.load %arg2[%c0_20, %c0_21, %c0_22, %c0_23] : memref<1x16x16x256xf32, #tpu.memory_space<vmem>>, vector<1x16x16x256xf32>
    %15 = vector.shape_cast %14 : vector<1x16x16x256xf32> to vector<16x16x256xf32>
    %16 = vector.extract_strided_slice %11 {offsets = [4, 0], sizes = [1, 256], strides = [1, 1]} : vector<9x256xf32> to vector<1x256xf32>
    %17 = vector.shape_cast %16 : vector<1x256xf32> to vector<256xf32>
    %18 = vector.shape_cast %17 : vector<256xf32> to vector<1x1x256xf32>
    %19 = vector.broadcast %18 : vector<1x1x256xf32> to vector<16x16x256xf32>
    %20 = arith.mulf %15, %19 : vector<16x16x256xf32>
    %21 = vector.shape_cast %13 : vector<256xf32> to vector<1x1x256xf32>
    %22 = vector.broadcast %21 : vector<1x1x256xf32> to vector<16x16x256xf32>
    %23 = arith.addf %20, %22 : vector<16x16x256xf32>
    %c0_24 = arith.constant 0 : index
    %c7_25 = arith.constant 7 : index
    %c0_26 = arith.constant 0 : index
    %24 = vector.load %arg6[%c0_24, %c7_25, %c0_26] : memref<18x25x256xf32, #tpu.memory_space<vmem>>, vector<16x16x256xf32>
    %25 = vector.extract_strided_slice %11 {offsets = [0, 0], sizes = [1, 256], strides = [1, 1]} : vector<9x256xf32> to vector<1x256xf32>
    %26 = vector.shape_cast %25 : vector<1x256xf32> to vector<256xf32>
    %27 = vector.shape_cast %26 : vector<256xf32> to vector<1x1x256xf32>
    %28 = vector.broadcast %27 : vector<1x1x256xf32> to vector<16x16x256xf32>
    %29 = arith.mulf %24, %28 : vector<16x16x256xf32>
    %30 = arith.addf %23, %29 : vector<16x16x256xf32>
    %c0_27 = arith.constant 0 : index
    %c8_28 = arith.constant 8 : index
    %c0_29 = arith.constant 0 : index
    %31 = vector.load %arg6[%c0_27, %c8_28, %c0_29] : memref<18x25x256xf32, #tpu.memory_space<vmem>>, vector<16x16x256xf32>
    %32 = vector.extract_strided_slice %11 {offsets = [1, 0], sizes = [1, 256], strides = [1, 1]} : vector<9x256xf32> to vector<1x256xf32>
    %33 = vector.shape_cast %32 : vector<1x256xf32> to vector<256xf32>
    %34 = vector.shape_cast %33 : vector<256xf32> to vector<1x1x256xf32>
    %35 = vector.broadcast %34 : vector<1x1x256xf32> to vector<16x16x256xf32>
    %36 = arith.mulf %31, %35 : vector<16x16x256xf32>
    %37 = arith.addf %30, %36 : vector<16x16x256xf32>
    %c0_30 = arith.constant 0 : index
    %c9 = arith.constant 9 : index
    %c0_31 = arith.constant 0 : index
    %38 = vector.load %arg6[%c0_30, %c9, %c0_31] : memref<18x25x256xf32, #tpu.memory_space<vmem>>, vector<16x16x256xf32>
    %39 = vector.extract_strided_slice %11 {offsets = [2, 0], sizes = [1, 256], strides = [1, 1]} : vector<9x256xf32> to vector<1x256xf32>
    %40 = vector.shape_cast %39 : vector<1x256xf32> to vector<256xf32>
    %41 = vector.shape_cast %40 : vector<256xf32> to vector<1x1x256xf32>
    %42 = vector.broadcast %41 : vector<1x1x256xf32> to vector<16x16x256xf32>
    %43 = arith.mulf %38, %42 : vector<16x16x256xf32>
    %44 = arith.addf %37, %43 : vector<16x16x256xf32>
    %c1_32 = arith.constant 1 : index
    %c7_33 = arith.constant 7 : index
    %c0_34 = arith.constant 0 : index
    %45 = vector.load %arg6[%c1_32, %c7_33, %c0_34] : memref<18x25x256xf32, #tpu.memory_space<vmem>>, vector<16x16x256xf32>
    %46 = vector.extract_strided_slice %11 {offsets = [3, 0], sizes = [1, 256], strides = [1, 1]} : vector<9x256xf32> to vector<1x256xf32>
    %47 = vector.shape_cast %46 : vector<1x256xf32> to vector<256xf32>
    %48 = vector.shape_cast %47 : vector<256xf32> to vector<1x1x256xf32>
    %49 = vector.broadcast %48 : vector<1x1x256xf32> to vector<16x16x256xf32>
    %50 = arith.mulf %45, %49 : vector<16x16x256xf32>
    %51 = arith.addf %44, %50 : vector<16x16x256xf32>
    %c1_35 = arith.constant 1 : index
    %c9_36 = arith.constant 9 : index
    %c0_37 = arith.constant 0 : index
    %52 = vector.load %arg6[%c1_35, %c9_36, %c0_37] : memref<18x25x256xf32, #tpu.memory_space<vmem>>, vector<16x16x256xf32>
    %53 = vector.extract_strided_slice %11 {offsets = [5, 0], sizes = [1, 256], strides = [1, 1]} : vector<9x256xf32> to vector<1x256xf32>
    %54 = vector.shape_cast %53 : vector<1x256xf32> to vector<256xf32>
    %55 = vector.shape_cast %54 : vector<256xf32> to vector<1x1x256xf32>
    %56 = vector.broadcast %55 : vector<1x1x256xf32> to vector<16x16x256xf32>
    %57 = arith.mulf %52, %56 : vector<16x16x256xf32>
    %58 = arith.addf %51, %57 : vector<16x16x256xf32>
    %c2 = arith.constant 2 : index
    %c7_38 = arith.constant 7 : index
    %c0_39 = arith.constant 0 : index
    %59 = vector.load %arg6[%c2, %c7_38, %c0_39] : memref<18x25x256xf32, #tpu.memory_space<vmem>>, vector<16x16x256xf32>
    %60 = vector.extract_strided_slice %11 {offsets = [6, 0], sizes = [1, 256], strides = [1, 1]} : vector<9x256xf32> to vector<1x256xf32>
    %61 = vector.shape_cast %60 : vector<1x256xf32> to vector<256xf32>
    %62 = vector.shape_cast %61 : vector<256xf32> to vector<1x1x256xf32>
    %63 = vector.broadcast %62 : vector<1x1x256xf32> to vector<16x16x256xf32>
    %64 = arith.mulf %59, %63 : vector<16x16x256xf32>
    %65 = arith.addf %58, %64 : vector<16x16x256xf32>
    %c2_40 = arith.constant 2 : index
    %c8_41 = arith.constant 8 : index
    %c0_42 = arith.constant 0 : index
    %66 = vector.load %arg6[%c2_40, %c8_41, %c0_42] : memref<18x25x256xf32, #tpu.memory_space<vmem>>, vector<16x16x256xf32>
    %67 = vector.extract_strided_slice %11 {offsets = [7, 0], sizes = [1, 256], strides = [1, 1]} : vector<9x256xf32> to vector<1x256xf32>
    %68 = vector.shape_cast %67 : vector<1x256xf32> to vector<256xf32>
    %69 = vector.shape_cast %68 : vector<256xf32> to vector<1x1x256xf32>
    %70 = vector.broadcast %69 : vector<1x1x256xf32> to vector<16x16x256xf32>
    %71 = arith.mulf %66, %70 : vector<16x16x256xf32>
    %72 = arith.addf %65, %71 : vector<16x16x256xf32>
    %c2_43 = arith.constant 2 : index
    %c9_44 = arith.constant 9 : index
    %c0_45 = arith.constant 0 : index
    %73 = vector.load %arg6[%c2_43, %c9_44, %c0_45] : memref<18x25x256xf32, #tpu.memory_space<vmem>>, vector<16x16x256xf32>
    %74 = vector.extract_strided_slice %11 {offsets = [8, 0], sizes = [1, 256], strides = [1, 1]} : vector<9x256xf32> to vector<1x256xf32>
    %75 = vector.shape_cast %74 : vector<1x256xf32> to vector<256xf32>
    %76 = vector.shape_cast %75 : vector<256xf32> to vector<1x1x256xf32>
    %77 = vector.broadcast %76 : vector<1x1x256xf32> to vector<16x16x256xf32>
    %78 = arith.mulf %73, %77 : vector<16x16x256xf32>
    %79 = arith.addf %72, %78 : vector<16x16x256xf32>
    %c0_46 = arith.constant 0 : index
    %c0_47 = arith.constant 0 : index
    %c0_48 = arith.constant 0 : index
    %c0_49 = arith.constant 0 : index
    %80 = vector.load %arg5[%c0_46, %c0_47, %c0_48, %c0_49] : memref<1x16x16x256xf32, #tpu.memory_space<vmem>>, vector<1x16x16x256xf32>
    %81 = vector.shape_cast %80 : vector<1x16x16x256xf32> to vector<16x16x256xf32>
    %82 = vector.shape_cast %79 : vector<16x16x256xf32> to vector<1x16x16x256xf32>
    tpu.vector_store %arg5[%c0_46, %c0_47, %c0_48, %c0_49], %82 {strides = array<i32>} : memref<1x16x16x256xf32, #tpu.memory_space<vmem>>, vector<1x16x16x256xf32>,
    return
  }
  func.func @transform_0(%arg0: i32, %arg1: i32) -> (i32, i32, i32, i32) {
    %c0_i32 = arith.constant 0 : i32
    %c0_i32_0 = arith.constant 0 : i32
    %c0_i32_1 = arith.constant 0 : i32
    return %arg0, %c0_i32, %c0_i32_0, %arg1 : i32, i32, i32, i32
  }
  func.func @transform_1(%arg0: i32, %arg1: i32) -> (i32, i32) {
    %c0_i32 = arith.constant 0 : i32
    %c0_i32_0 = arith.constant 0 : i32
    return %c0_i32, %arg1 : i32, i32
  }
  func.func @transform_2(%arg0: i32, %arg1: i32) -> (i32, i32) {
    %c0_i32 = arith.constant 0 : i32
    %c0_i32_0 = arith.constant 0 : i32
    return %c0_i32, %arg1 : i32, i32
  }
  func.func @transform_3(%arg0: i32, %arg1: i32) -> (i32, i32, i32, i32) {
    %c0_i32 = arith.constant 0 : i32
    %c0_i32_0 = arith.constant 0 : i32
    %c0_i32_1 = arith.constant 0 : i32
    return %arg0, %c0_i32, %c0_i32_0, %arg1 : i32, i32, i32, i32
  }
}

</mosaic_0001>

<bundles_post_ra>
// kernel: dwconv_pallas.1
= control target key start
LH: loop header
LB: loop body
LE: loop exit
PB: predicated region body
PF: predicated region fallthrough
CT: control target
= control target key end

     0   :  { %8 = vsyncpa [#allocation4], 0  ;;  %s8608_s0 = inlined_call_operand.hbm [shape: f32[2,16,16,256], index: 0, kind: input, shape index: {}]   ;;  %s8609_s1 = inlined_call_operand.vmem [shape: f32[9,256], index: 1, kind: input, shape index: {}]   ;;  %s8610_s2 = inlined_call_operand.vmem [shape: f32[1,256], index: 2, kind: input, shape index: {}]   ;;  %s8611_s3 = inlined_call_operand.hbm [shape: f32[2,16,16,256], index: 3, kind: output, shape index: {}]  }
   0x1   :  { %10 = vsyncpa [#allocation4 + $0x1], 0 }
   0x2   :  { %11 = vsyncpa [#allocation5], 0 }
   0x3   :  { %13 = vsyncpa [#allocation5 + $0x1], 0  ;;  %s4958_s12 = smov 0   ;;  %s4960_s13 = smov 0  }
   0x4   :  { %s4962_s14 = smov 0   ;;  %s4964_s15 = smov 0  }
   0x5   :  { %s4966_s16 = smov 0   ;;  %s4968_s17 = smov 0  }
   0x6 LB: > { %s4717_s18 = sadd.s32 4294967295, %s4929_s17   ;;  %s4718_s19 = sadd.s32 4294967294, %s4929_s17   ;;  %s4929_s17 = sphi %s4968_s17, %s19_s17   ;;  %s4925_s16 = sphi %s4966_s16, %s9231_s16   ;;  %s4921_s15 = sphi %s4964_s15, %s9230_s15   ;;  %s4917_s14 = sphi %s4962_s14, %s9229_s14   ;;  %s4913_s13 = sphi %s4960_s13, %s9228_s13   ;;  %s4909_s12 = sphi %s4958_s12, %s9227_s12  }
   0x7   : > { %s31_s20 = sadd.s32 1, %s4925_s16  ;;  %s40_s21 = sadd.s32 1, %s4917_s14 }
   0x8   : > { %p33_p0 = scmp.ge.s32.totalorder %s31_s20, 2  ;;  %p47_p1 = scmp.ne.s32.totalorder %s4917_s14, %s4913_s13 }
   0x9   : > { %p48_p2 = scmp.eq.s32.totalorder %s4929_s17, 0  ;;  %p53_p3 = scmp.ne.s32.totalorder %s4913_s13, %s4909_s12 }
   0xa   : > { %s9233_s20 = smov (%p33_p0, %s31_s20), 0  ;;  %p54_p5 = scmp.eq.s32.totalorder %s4717_s18, 0 }
   0xb   : > { %p4999_p4 = por %p48_p2, %p47_p1  ;;  %s35_s23 = ssub.s32 %s4925_s16, %s9233_s20 }
   0xc   : > { %p131_p6 = scmp.eq.s32.totalorder %s4717_s18, 1  ;;  %p38_p7 = scmp.eq.s32.totalorder %s35_s23, 0 }
   0xd   : > { %p5005_p8 = por %p54_p5, %p53_p3  ;;  %p137_p10 = scmp.eq.s32.totalorder %s4718_s19, 1 }
   0xe   : > { %p5009_p9 = por %p131_p6, %p47_p1  ;;  %p4750_p13 = scmp.lt.s32.totalorder %s4929_s17, 2 }
   0xf   : > { %s5014_s26 = scalar_select %p38_p7, %s4917_s14, %s40_s21  }
  0x10   : > { %s8858_s25 = scalar_select %p5009_p9, 1, 0 }
  0x11   : > { %p5016_p11 = por %p137_p10, %p53_p3  ;;  %s174_s28 = sand.u32 1, %s4917_s14  }
  0x12   : > { %s4723_s29 = sshll.u32 %s174_s28, 9  ;;  %s4736_s30 = sshll.u32 %s4925_s16, 13 }
  0x13   : > { %s8859_s27 = scalar_select %p5016_p11, 1, 0 }
  0x14   : > { %s5027_s6 = scalar_lea.hbm %s8608_s0, %s4736_s30  ;;  %s178_s7 = scalar_lea.vmem [#allocation3], %s4723_s29 }
  0x15   : > { %s187_s8 = sshll.u32 %s178_s7, 4  ;;  %p5033_p0 = pnand %p4750_p13, %p4999_p4  ;;  %s5029_s8 = int_to_ptr.vmem [resolvable:$true] %s187_s8 }
  0x16   : > { %s5038_s10 = scalar_lea.sflag [#allocation4], %s174_s28  ;;  %s4817_s11 = scalar_lea.hbm %s5027_s6, 8192 }
  0x17   : > { %p4818_p2 = scmp.ne.s32.totalorder %s5027_s6, %s4817_s11  ;;  %p4819_p3 = pneg %p5033_p0 }
  0x18   : > { %s4822_s21 = scalar_lea.hbm %s8608_s0, 16384  ;;  %p4823_p4 = scmp.lt.u32.totalorder %s5027_s6, %s8608_s0 }
  0x19   : > { %p4820_p5 = pnand %p4819_p3, %p4818_p2  ;;  %p4824_p7 = scmp.lt.u32.totalorder %s4822_s21, %s4817_s11 }
  0x1a   : > { %p4826_p13 = scmp.lt.u32.totalorder %s4817_s11, %s5027_s6 }
  0x1b   : > { %p4821_p6 = pneg %p4820_p5  ;;  %p4825_p10 = por %p4824_p7, %p4823_p4 }
  0x1d   : > { %p4827_p12 = por %p4826_p13, %p4825_p10 }
  0x1f   : > { %p4828_p1 = pnand %p4827_p12, %p4821_p6 }
  0x21   : > { %4831 = shalt.err (!%p4828_p1)
}
  0x22   : > { %s4832_s28 = scalar_lea.vmem %s5029_s8, 8192  ;;  %s4931_s29 = smov [#allocation3]  }
  0x23   : > { %p4833_p2 = scmp.ne.s32.totalorder %s5029_s8, %s4832_s28  ;;  %s4837_s30 = sshll.u32 %s4931_s29, 4  ;;  %s4838_s30 = int_to_ptr.vmem [resolvable:$false] %s4837_s30 }
  0x24   : > { %s4839_s4 = scalar_lea.vmem %s4838_s30, 16384  ;;  %p4840_p9 = scmp.lt.s32.totalorder %s5029_s8, %s4838_s30 }
  0x25   : > { %p4835_p5 = pnand %p4833_p2, %p4819_p3  ;;  %p4841_p4 = scmp.lt.s32.totalorder %s4839_s4, %s4832_s28 }
  0x27   : > { %p4836_p11 = pneg %p4835_p5  ;;  %p4842_p7 = por %p4841_p4, %p4840_p9 }
  0x29   : > { %p4843_p10 = pnand %p4842_p7, %p4836_p11 }
  0x2b   : > { %4846 = shalt.err (!%p4843_p10)
}
  0x2c   : > { %s4932_s5 = smov 256   ;;  %s4933_s7 = smov 16  }
  0x2d   : > { %4745 = dma.hbm_to_vmem [thread:$0]  (!%p5033_p0), %s5027_s6, 8192, %s5029_s8, %s5038_s10, %s4932_s5, %s4932_s5, %s4933_s7  }
  0x2e   : > { %p195_p12 = scmp.lt.s32.totalorder %s4929_s17, 3  ;;  %p8861_p1 = scmp.ge.s32.totalorder %s4929_s17, 1 }
  0x30   : > { %p196_p3 = pnand %p8861_p1, %p195_p12 }
  0x32   : > { %199 = sbr.rel (%p196_p3) target bundleno = 761 (0x2f9), region = 32 }
  0x39   : > { %s5070_s11 = sand.u32 1, %s4913_s13  }
  0x3a   : > { %s4727_s18 = sshll.u32 %s5070_s11, 9  ;;  %s202_s19 = scalar_lea.sflag [#allocation4], %s5070_s11 }
  0x3b   : > { %s5076_s21 = scalar_lea.vmem [#allocation3], %s4727_s18 }
  0x3c   : > { %4900 = dma.done.wait (%p5005_p8), %s202_s19, 8192  }
  0x3d   : > { %4902 = vsyncadd (%p5005_p8), %s202_s19, 4294959104  ;;  %v268_v0 = vlaneseq  ;;  %v4934_v1 = vmov 0.0   ;;  %v496_v9 = vld [vmem:[%s8609_s1] sm:$0xff]  ;;  %v497_v10 = vld [vmem:[%s8609_s1 + $0x8] sm:$0xff]  ;;  %vm1008_vm1 = vcmask 1040384   ;;  %vm1729_vm2 = vcmask 1046528  }
  0x3e   : > { %250 = vst [vmem:[#allocation2] sm:$0xff] %v4934_v1  ;;  %251 = vst [vmem:[#allocation2 + $0x8] sm:$0xff] %v4934_v1  ;;  %v500_v11 = vld [vmem:[%s8610_s2] sm:$0x3]  ;;  %v5179_v19 = vld [vmem:[%s5076_s21 + $0x8] sm:$0xff]  ;;  %s5607_s4 = scalar_lea.vmem [#allocation6], %s4727_s18 }
  0x3f   : > { %252 = vst [vmem:[#allocation2 + $0x10] sm:$0xff] %v4934_v1  ;;  %253 = vst [vmem:[#allocation2 + $0x18] sm:$0xff] %v4934_v1  ;;  %vm5082_vm0 = vcmp.lt.s32.totalorder %v268_v0, 256  ;;  %v5086_v3 = vshrl.u32 %v268_v0, 7  ;;  %v5176_v18 = vld [vmem:[%s5076_s21] sm:$0xff]  ;;  %v5182_v20 = vld [vmem:[%s5076_s21 + $0x10] sm:$0xff] }
  0x40   : > { %254 = vst [vmem:[#allocation2 + $0x20] sm:$0xff] %v4934_v1  ;;  %255 = vst [vmem:[#allocation2 + $0x28] sm:$0xff] %v4934_v1  ;;  %v5196_v25 = vld [vmem:[%s5076_s21 + $0x18] sm:$0xff]  ;;  %v5199_v26 = vld [vmem:[%s5076_s21 + $0x20] sm:$0xff]  ;;  %s4737_s6 = sshll.u32 %s4921_s15, 13  ;;  %s4571_s8 = sshll.u32 %s5607_s4, 4  ;;  %s8558_s8 = int_to_ptr.vmem [resolvable:$true] %s4571_s8 }
  0x41   : > { %256 = vst [vmem:[#allocation2 + $0x30] sm:$0x1] %v4934_v1  ;;  %257 = vst [vmem:[#allocation2 + $0x38] sm:$0x1] %v4934_v1  ;;  %v567_v4 = vsub.s32 4, %v5086_v3  ;;  %v640_v5 = vsub.s32 0, %v5086_v3  ;;  %s8556_s22 = scalar_lea.hbm %s8611_s3, %s4737_s6 }
  0x42   : > { %259 = vst [vmem:[#allocation2 + $0x440] sm:$0xff] %v4934_v1  ;;  %260 = vst [vmem:[#allocation2 + $0x448] sm:$0xff] %v4934_v1  ;;  %v644_v6 = vsub.s32 1, %v5086_v3  ;;  %v1531_v7 = vsub.s32 2, %v5086_v3  ;;  %v2116_v8 = vsub.s32 3, %v5086_v3  ;;  %v2700_v12 = vsub.s32 5, %v5086_v3 }
  0x43   : > { %261 = vst [vmem:[#allocation2 + $0x450] sm:$0xff] %v4934_v1  ;;  %262 = vst [vmem:[#allocation2 + $0x458] sm:$0xff] %v4934_v1  ;;  %v3285_v13 = vsub.s32 6, %v5086_v3  ;;  %v5168_v14 = vrot.slane %v496_v9, %v567_v4  ;;  %v5170_v15 = vrot.slane %v497_v10, %v567_v4  ;;  %v5172_v16 = vrot.slane %v500_v11, %v640_v5  ;;  %v5202_v27 = vld [vmem:[%s5076_s21 + $0x28] sm:$0xff]  ;;  %v5216_v32 = vld [vmem:[%s5076_s21 + $0x30] sm:$0xff]  ;;  %s4556_s15 = scalar_lea.sflag [#allocation5], %s5070_s11 }
  0x44   : > { %263 = vst [vmem:[#allocation2 + $0x460] sm:$0xff] %v4934_v1  ;;  %264 = vst [vmem:[#allocation2 + $0x468] sm:$0xff] %v4934_v1  ;;  %v3805_v17 = vsub.s32 7, %v5086_v3  ;;  %v5184_v21 = vrot.slane %v500_v11, %v644_v6  ;;  %v5186_v22 = vrot.slane %v496_v9, %v640_v5  ;;  %v5188_v23 = vrot.slane %v497_v10, %v640_v5  ;;  %v5219_v33 = vld [vmem:[%s5076_s21 + $0x38] sm:$0xff]  ;;  %v5222_v34 = vld [vmem:[%s5076_s21 + $0x40] sm:$0xff]  ;;  %s4847_s23 = scalar_lea.vmem %s8558_s8, 8192 }
  0x45   : > { %265 = vst [vmem:[#allocation2 + $0x470] sm:$0x1] %v4934_v1  ;;  %266 = vst [vmem:[#allocation2 + $0x478] sm:$0x1] %v4934_v1  ;;  %v5190_v24 = vrot.slane %v496_v9, %v644_v6  ;;  %v5204_v28 = vrot.slane %v497_v10, %v644_v6  ;;  %v5206_v29 = vrot.slane %v496_v9, %v1531_v7  ;;  %v5236_v39 = vld [vmem:[%s5076_s21 + $0x48] sm:$0xff]  ;;  %v5239_v40 = vld [vmem:[%s5076_s21 + $0x50] sm:$0xff]  ;;  %p4848_p8 = scmp.ne.s32.totalorder %s8558_s8, %s4847_s23 }
  0x46   : > { %273 = vst.msk [vmem:[#allocation2 + $0x47] ss:$8 sm:$0x3] %vm5082_vm0, %v4934_v1  ;;  %276 = vst.msk [vmem:[#allocation2 + $0x87] ss:$8 sm:$0x3] %vm5082_vm0, %v4934_v1  ;;  %v5208_v30 = vrot.slane %v497_v10, %v1531_v7  ;;  %v5210_v31 = vrot.slane %v496_v9, %v2116_v8  ;;  %v5224_v35 = vrot.slane %v497_v10, %v2116_v8 }
  0x47   : > { %279 = vst.msk [vmem:[#allocation2 + $0xc7] ss:$8 sm:$0x3] %vm5082_vm0, %v4934_v1  ;;  %282 = vst.msk [vmem:[#allocation2 + $0x107] ss:$8 sm:$0x3] %vm5082_vm0, %v4934_v1  ;;  %v5226_v36 = vrot.slane %v496_v9, %v2700_v12  ;;  %v5228_v37 = vrot.slane %v497_v10, %v2700_v12  ;;  %v5230_v38 = vrot.slane %v496_v9, %v3285_v13 }
  0x48   : > { %285 = vst.msk [vmem:[#allocation2 + $0x147] ss:$8 sm:$0x3] %vm5082_vm0, %v4934_v1  ;;  %288 = vst.msk [vmem:[#allocation2 + $0x187] ss:$8 sm:$0x3] %vm5082_vm0, %v4934_v1  ;;  %v5244_v42 = vrot.slane %v497_v10, %v3285_v13  ;;  %v5246_v43 = vrot.slane %v496_v9, %v3805_v17  ;;  %v573_v47 = vmul.f32 %v5168_v14, %v5176_v18 }
  0x49   : > { %291 = vst.msk [vmem:[#allocation2 + $0x1c7] ss:$8 sm:$0x3] %vm5082_vm0, %v4934_v1  ;;  %294 = vst.msk [vmem:[#allocation2 + $0x207] ss:$8 sm:$0x3] %vm5082_vm0, %v4934_v1  ;;  %v5259_v49 = vrot.slane %v497_v10, %v3805_v17  ;;  %v5269_v54 = vmul.f32 %v5210_v31, %v5176_v18  ;;  %v5273_v55 = vmul.f32 %v5226_v36, %v5182_v20 }
  0x4a   : > { %297 = vst.msk [vmem:[#allocation2 + $0x247] ss:$8 sm:$0x3] %vm5082_vm0, %v4934_v1  ;;  %300 = vst.msk [vmem:[#allocation2 + $0x287] ss:$8 sm:$0x3] %vm5082_vm0, %v4934_v1  ;;  %v5279_v59 = vadd.f32 %v5172_v16, %v573_v47  ;;  %v5287_v62 = vmul.f32 %v5230_v38, %v5199_v26  ;;  %v5296_v4 = vmul.f32 %v5246_v43, %v5199_v26 }
  0x4b   : > { %303 = vst.msk [vmem:[#allocation2 + $0x2c7] ss:$8 sm:$0x3] %vm5082_vm0, %v4934_v1  ;;  %306 = vst.msk [vmem:[#allocation2 + $0x307] ss:$8 sm:$0x3] %vm5082_vm0, %v4934_v1  ;;  %v574_v5 = vmul.f32 %v5170_v15, %v5179_v19  ;;  %v5323_v47 = vmul.f32 %v5228_v37, %v5196_v25  ;;  %v5390_v3 = vmul.f32 %v5190_v24, %v5176_v18 }
  0x4c   : > { %309 = vst.msk [vmem:[#allocation2 + $0x347] ss:$8 sm:$0x3] %vm5082_vm0, %v4934_v1  ;;  %312 = vst.msk [vmem:[#allocation2 + $0x387] ss:$8 sm:$0x3] %vm5082_vm0, %v4934_v1  ;;  %v5394_v2 = vmul.f32 %v5226_v36, %v5216_v32  ;;  %v5429_v60 = vmul.f32 %v5208_v30, %v5196_v25 }
  0x4d   : > { %315 = vst.msk [vmem:[#allocation2 + $0x3c7] ss:$8 sm:$0x3] %vm5082_vm0, %v4934_v1  ;;  %318 = vst.msk [vmem:[#allocation2 + $0x407] ss:$8 sm:$0x3] %vm5082_vm0, %v4934_v1 }
  0x4e   : > { %321 = vst.msk [vmem:[#allocation2 + $0x70] ss:$8 sm:$0x3] %vm5082_vm0, %v4934_v1  ;;  %324 = vst.msk [vmem:[#allocation2 + $0xb0] ss:$8 sm:$0x3] %vm5082_vm0, %v4934_v1 }
  0x4f   : > { %327 = vst.msk [vmem:[#allocation2 + $0xf0] ss:$8 sm:$0x3] %vm5082_vm0, %v4934_v1  ;;  %330 = vst.msk [vmem:[#allocation2 + $0x130] ss:$8 sm:$0x3] %vm5082_vm0, %v4934_v1 }
  0x50   : > { %333 = vst.msk [vmem:[#allocation2 + $0x170] ss:$8 sm:$0x3] %vm5082_vm0, %v4934_v1  ;;  %336 = vst.msk [vmem:[#allocation2 + $0x1b0] ss:$8 sm:$0x3] %vm5082_vm0, %v4934_v1 }
  0x51   : > { %339 = vst.msk [vmem:[#allocation2 + $0x1f0] ss:$8 sm:$0x3] %vm5082_vm0, %v4934_v1  ;;  %342 = vst.msk [vmem:[#allocation2 + $0x230] ss:$8 sm:$0x3] %vm5082_vm0, %v4934_v1 }
  0x52   : > { %345 = vst.msk [vmem:[#allocation2 + $0x270] ss:$8 sm:$0x3] %vm5082_vm0, %v4934_v1  ;;  %348 = vst.msk [vmem:[#allocation2 + $0x2b0] ss:$8 sm:$0x3] %vm5082_vm0, %v4934_v1 }
  0x53   : > { %351 = vst.msk [vmem:[#allocation2 + $0x2f0] ss:$8 sm:$0x3] %vm5082_vm0, %v4934_v1  ;;  %354 = vst.msk [vmem:[#allocation2 + $0x330] ss:$8 sm:$0x3] %vm5082_vm0, %v4934_v1 }
  0x54   : > { %357 = vst.msk [vmem:[#allocation2 + $0x370] ss:$8 sm:$0x3] %vm5082_vm0, %v4934_v1  ;;  %360 = vst.msk [vmem:[#allocation2 + $0x3b0] ss:$8 sm:$0x3] %vm5082_vm0, %v4934_v1 }
  0x55   : > { %363 = vst.msk [vmem:[#allocation2 + $0x3f0] ss:$8 sm:$0x3] %vm5082_vm0, %v4934_v1  ;;  %366 = vst.msk [vmem:[#allocation2 + $0x430] ss:$8 sm:$0x3] %vm5082_vm0, %v4934_v1 }
  0x56   : > { %8864 = vst [vmem:[#allocation9_spill] sm:$0xff] %v5168_v14  ;;  %8865 = vst [vmem:[#allocation10_spill] sm:$0xff] %v5170_v15  ;;  %v5242_v41 = vld [vmem:[%s5076_s21 + $0x58] sm:$0xff]  ;;  %v380_v44 = vld [vmem:[%s5076_s21 + $0x60] sm:$0xff]  ;;  %v5257_v48 = vmul.f32 0.0, %v5186_v22  ;;  %v5265_v53 = vmul.f32 0.0, %v5206_v29 }
  0x57   : > { %8866 = vst [vmem:[#allocation11_spill] sm:$0xff] %v5172_v16  ;;  %8867 = vst [vmem:[#allocation12_spill] sm:$0xff] %v5184_v21  ;;  %v381_v45 = vld [vmem:[%s5076_s21 + $0x68] sm:$0xff]  ;;  %v382_v46 = vld [vmem:[%s5076_s21 + $0x70] sm:$0xff]  ;;  %v5283_v61 = vmul.f32 0.0, %v5190_v24  ;;  %v5306_v11 = vmul.f32 0.0, %v5188_v23 }
  0x58   : > { %8868 = vst [vmem:[#allocation13_spill] sm:$0xff] %v5190_v24  ;;  %432 = vst [vmem:[#allocation2 + $0x50] sm:$0xff] %v5176_v18  ;;  %v383_v50 = vld [vmem:[%s5076_s21 + $0x78] sm:$0xff]  ;;  %v384_v51 = vld [vmem:[%s5076_s21 + $0x80] sm:$0xff]  ;;  %v5309_v12 = vmul.f32 0.0, %v5208_v30  ;;  %p9224_p9 = scmp.ne.s32.totalorder %s8858_s25, 0 }
  0x59   : > { %433 = vst [vmem:[#allocation2 + $0x58] sm:$0xff] %v5179_v19  ;;  %434 = vst [vmem:[#allocation2 + $0x60] sm:$0xff] %v5182_v20  ;;  %v385_v52 = vld [vmem:[%s5076_s21 + $0x88] sm:$0xff]  ;;  %v386_v56 = vld [vmem:[%s5076_s21 + $0x90] sm:$0xff]  ;;  %s4935_s28 = smov [#allocation6]  }
  0x5a   : > { %8869 = vst [vmem:[#allocation14_spill] sm:$0xff] %v5199_v26  ;;  %8870 = vst [vmem:[#allocation15_spill] sm:$0xff] %v5204_v28  ;;  %v387_v57 = vld [vmem:[%s5076_s21 + $0x98] sm:$0xff]  ;;  %v388_v58 = vld [vmem:[%s5076_s21 + $0xa0] sm:$0xff]  ;;  %p4849_p11 = pnand %p4848_p8, %p9224_p9  ;;  %s4851_s29 = sshll.u32 %s4935_s28, 4  ;;  %s4852_s29 = int_to_ptr.vmem [resolvable:$false] %s4851_s29 }
  0x5b   : > { %435 = vst [vmem:[#allocation2 + $0x68] sm:$0xff] %v5196_v25  ;;  %436 = vst [vmem:[#allocation2 + $0x90] sm:$0xff] %v5199_v26  ;;  %v389_v63 = vld [vmem:[%s5076_s21 + $0xa8] sm:$0xff]  ;;  %v390_v0 = vld [vmem:[%s5076_s21 + $0xb0] sm:$0xff]  ;;  %s4853_s30 = scalar_lea.vmem %s4852_s29, 16384  ;;  %p4854_p6 = scmp.lt.s32.totalorder %s8558_s8, %s4852_s29 }
  0x5c   : > { %437 = vst [vmem:[#allocation2 + $0x98] sm:$0xff] %v5202_v27  ;;  %8871 = vst [vmem:[#allocation16_spill] sm:$0xff] %v5216_v32  ;;  %v391_v1 = vld [vmem:[%s5076_s21 + $0xb8] sm:$0xff]  ;;  %v392_v6 = vld [vmem:[%s5076_s21 + $0xc0] sm:$0xff]  ;;  %p4850_p0 = pneg %p4849_p11  ;;  %p4855_p13 = scmp.lt.s32.totalorder %s4853_s30, %s4847_s23 }
  0x5d   : > { %438 = vst [vmem:[#allocation2 + $0xa0] sm:$0xff] %v5216_v32  ;;  %439 = vst [vmem:[#allocation2 + $0xa8] sm:$0xff] %v5219_v33  ;;  %v393_v7 = vld [vmem:[%s5076_s21 + $0xc8] sm:$0xff]  ;;  %v394_v8 = vld [vmem:[%s5076_s21 + $0xd0] sm:$0xff] }
  0x5e   : > { %440 = vst [vmem:[#allocation2 + $0xd0] sm:$0xff] %v5222_v34  ;;  %8872 = vst [vmem:[#allocation17_spill] sm:$0xff] %v5242_v41  ;;  %v395_v13 = vld [vmem:[%s5076_s21 + $0xd8] sm:$0xff]  ;;  %v396_v17 = vld [vmem:[%s5076_s21 + $0xe0] sm:$0xff]  ;;  %p4856_p2 = por %p4855_p13, %p4854_p6 }
  0x5f   : > { %8873 = vst [vmem:[#allocation18_spill] sm:$0xff] %v5246_v43  ;;  %441 = vst [vmem:[#allocation2 + $0xd8] sm:$0xff] %v5236_v39  ;;  %v412_v10 = vld [vmem:[%s5076_s21 + $0x160] sm:$0xff] }
  0x60   : > { %442 = vst [vmem:[#allocation2 + $0xe0] sm:$0xff] %v5239_v40  ;;  %443 = vst [vmem:[#allocation2 + $0xe8] sm:$0xff] %v5242_v41  ;;  %p4857_p5 = pnand %p4856_p2, %p4850_p0 }
  0x61   : > { %8874 = vst [vmem:[#allocation19_spill] sm:$0xff] %v5259_v49  ;;  %444 = vst [vmem:[#allocation2 + $0x110] sm:$0xff] %v380_v44  ;;  %v397_v44 = vld [vmem:[%s5076_s21 + $0xe8] sm:$0xff] }
  0x62   : > { %445 = vst [vmem:[#allocation2 + $0x118] sm:$0xff] %v381_v45  ;;  %446 = vst [vmem:[#allocation2 + $0x120] sm:$0xff] %v382_v46  ;;  %v5315_v45 = vmul.f32 0.0, %v5204_v28  ;;  %v5319_v46 = vmul.f32 %v5224_v35, %v5179_v19 }
  0x63   : > { %447 = vst [vmem:[#allocation2 + $0x128] sm:$0xff] %v383_v50  ;;  %448 = vst [vmem:[#allocation2 + $0x150] sm:$0xff] %v384_v51  ;;  %v5327_v50 = vmul.f32 %v5244_v42, %v5202_v27  ;;  %v398_v51 = vld [vmem:[%s5076_s21 + $0xf0] sm:$0xff] }
  0x64   : > { %449 = vst [vmem:[#allocation2 + $0x158] sm:$0xff] %v385_v52  ;;  %450 = vst [vmem:[#allocation2 + $0x160] sm:$0xff] %v386_v56  ;;  %v399_v52 = vld [vmem:[%s5076_s21 + $0xf8] sm:$0xff]  ;;  %v400_v56 = vld [vmem:[%s5076_s21 + $0x100] sm:$0xff] }
  0x65   : > { %451 = vst [vmem:[#allocation2 + $0x168] sm:$0xff] %v387_v57  ;;  %452 = vst [vmem:[#allocation2 + $0x190] sm:$0xff] %v388_v58  ;;  %v5333_v57 = vadd.f32 %v5184_v21, %v574_v5  ;;  %v5357_v5 = vmul.f32 %v5246_v43, %v5216_v32  ;;  %v5376_v58 = vmul.f32 %v5206_v29, %v5182_v20 }
  0x66   : > { %453 = vst [vmem:[#allocation2 + $0x198] sm:$0xff] %v389_v63  ;;  %454 = vst [vmem:[#allocation2 + $0x1a0] sm:$0xff] %v390_v0  ;;  %v575_v0 = vmul.f32 %v5168_v14, %v5182_v20  ;;  %v5372_v63 = vmul.f32 %v5186_v22, %v5176_v18 }
  0x67   : > { %455 = vst [vmem:[#allocation2 + $0x1a8] sm:$0xff] %v391_v1  ;;  %456 = vst [vmem:[#allocation2 + $0x1d0] sm:$0xff] %v392_v6  ;;  %v401_v1 = vld [vmem:[%s5076_s21 + $0x108] sm:$0xff]  ;;  %v402_v6 = vld [vmem:[%s5076_s21 + $0x110] sm:$0xff] }
  0x68   : > { %457 = vst [vmem:[#allocation2 + $0x1d8] sm:$0xff] %v393_v7  ;;  %458 = vst [vmem:[#allocation2 + $0x1e0] sm:$0xff] %v394_v8  ;;  %v403_v7 = vld [vmem:[%s5076_s21 + $0x118] sm:$0xff]  ;;  %v5368_v8 = vmul.f32 %v5259_v49, %v5219_v33 }
  0x69   : > { %459 = vst [vmem:[#allocation2 + $0x1e8] sm:$0xff] %v395_v13  ;;  %460 = vst [vmem:[#allocation2 + $0x210] sm:$0xff] %v396_v17  ;;  %v5347_v17 = vmul.f32 %v5259_v49, %v5202_v27  ;;  %v576_v13 = vmul.f32 %v5170_v15, %v5196_v25 }
  0x6a   : > { %461 = vst [vmem:[#allocation2 + $0x218] sm:$0xff] %v397_v44  ;;  %462 = vst [vmem:[#allocation2 + $0x220] sm:$0xff] %v398_v51  ;;  %v404_v44 = vld [vmem:[%s5076_s21 + $0x120] sm:$0xff]  ;;  %v405_v51 = vld [vmem:[%s5076_s21 + $0x128] sm:$0xff] }
  0x6b   : > { %463 = vst [vmem:[#allocation2 + $0x228] sm:$0xff] %v399_v52  ;;  %464 = vst [vmem:[#allocation2 + $0x250] sm:$0xff] %v400_v56  ;;  %v406_v52 = vld [vmem:[%s5076_s21 + $0x130] sm:$0xff]  ;;  %v5353_v56 = vadd.f32 %v5172_v16, %v575_v0  ;;  %v409_v0 = vld [vmem:[%s5076_s21 + $0x148] sm:$0xff]  ;;  %v5386_v9 = vadd.f32 %v5184_v21, %v576_v13 }
  0x6c   : > { %465 = vst [vmem:[#allocation2 + $0x258] sm:$0xff] %v401_v1  ;;  %466 = vst [vmem:[#allocation2 + $0x260] sm:$0xff] %v402_v6  ;;  %v577_v1 = vmul.f32 %v5168_v14, %v5199_v26  ;;  %v407_v6 = vld [vmem:[%s5076_s21 + $0x138] sm:$0xff]  ;;  %v413_v13 = vld [vmem:[%s5076_s21 + $0x168] sm:$0xff] }
  0x6d   : > { %467 = vst [vmem:[#allocation2 + $0x268] sm:$0xff] %v403_v7  ;;  %468 = vst [vmem:[#allocation2 + $0x290] sm:$0xff] %v404_v44  ;;  %v408_v7 = vld [vmem:[%s5076_s21 + $0x140] sm:$0xff]  ;;  %v5380_v44 = vmul.f32 %v5210_v31, %v5199_v26  ;;  %v578_v26 = vmul.f32 %v5170_v15, %v5202_v27 }
  0x6e   : > { %469 = vst [vmem:[#allocation2 + $0x298] sm:$0xff] %v405_v51  ;;  %470 = vst [vmem:[#allocation2 + $0x2a0] sm:$0xff] %v406_v52  ;;  %v410_v51 = vld [vmem:[%s5076_s21 + $0x150] sm:$0xff]  ;;  %v411_v52 = vld [vmem:[%s5076_s21 + $0x158] sm:$0xff]  ;;  %v5404_v18 = vadd.f32 %v5172_v16, %v577_v1  ;;  %v5415_v1 = vmul.f32 %v5246_v43, %v5222_v34 }
  0x6f   : > { %8875 = vst [vmem:[#allocation20_spill] sm:$0xff] %v5368_v8  ;;  %8876 = vst [vmem:[#allocation21_spill] sm:$0xff] %v5380_v44  ;;  %v424_v8 = vld [vmem:[%s5076_s21 + $0x1c0] sm:$0xff]  ;;  %v5452_v44 = vmul.f32 %v5244_v42, %v5236_v39 }
  0x70   : > { %471 = vst [vmem:[#allocation2 + $0x2a8] sm:$0xff] %v407_v6  ;;  %472 = vst [vmem:[#allocation2 + $0x2d0] sm:$0xff] %v408_v7  ;;  %v5398_v6 = vmul.f32 %v5230_v38, %v5222_v34  ;;  %v414_v7 = vld [vmem:[%s5076_s21 + $0x170] sm:$0xff] }
  0x71   : > { %473 = vst [vmem:[#allocation2 + $0x2d8] sm:$0xff] %v409_v0  ;;  %8877 = vst [vmem:[#allocation22_spill] sm:$0xff] %v5390_v3  ;;  %v415_v0 = vld [vmem:[%s5076_s21 + $0x178] sm:$0xff]  ;;  %v421_v3 = vld [vmem:[%s5076_s21 + $0x1a8] sm:$0xff] }
  0x72   : > { %8878 = vst [vmem:[#allocation23_spill] sm:$0xff] %v5394_v2  ;;  %8879 = vst [vmem:[#allocation24_spill] sm:$0xff] %v5398_v6  ;;  %v5443_v6 = vadd.f32 %v5184_v21, %v578_v26  ;;  %v427_v26 = vld [vmem:[%s5076_s21 + $0x1d8] sm:$0xff]  ;;  %v5472_v2 = vmul.f32 %v5190_v24, %v5182_v20  ;;  %v5487_v20 = vmul.f32 %v5246_v43, %v5239_v40  ;;  %v2602_v24 = vld [vmem:[#allocation2 + $0x50] sm:$0xfe] }
  0x73   : > { %474 = vst [vmem:[#allocation2 + $0x2e0] sm:$0xff] %v410_v51  ;;  %475 = vst [vmem:[#allocation2 + $0x2e8] sm:$0xff] %v411_v52  ;;  %v417_v51 = vld [vmem:[%s5076_s21 + $0x188] sm:$0xff]  ;;  %v418_v52 = vld [vmem:[%s5076_s21 + $0x190] sm:$0xff] }
  0x74   : > { %476 = vst [vmem:[#allocation2 + $0x310] sm:$0xff] %v412_v10  ;;  %477 = vst [vmem:[#allocation2 + $0x318] sm:$0xff] %v413_v13  ;;  %v416_v10 = vld [vmem:[%s5076_s21 + $0x180] sm:$0xff]  ;;  %v5421_v13 = vmul.f32 %v5188_v23, %v5179_v19 }
  0x75   : > { %478 = vst [vmem:[#allocation2 + $0x320] sm:$0xff] %v414_v7  ;;  %479 = vst [vmem:[#allocation2 + $0x328] sm:$0xff] %v415_v0  ;;  %v419_v7 = vld [vmem:[%s5076_s21 + $0x198] sm:$0xff]  ;;  %v420_v0 = vld [vmem:[%s5076_s21 + $0x1a0] sm:$0xff] }
  0x76   : > { %8880 = vst [vmem:[#allocation25_spill] sm:$0xff] %v5415_v1  ;;  %8881 = vst [vmem:[#allocation26_spill] sm:$0xff] %v5421_v13  ;;  %v5433_v1 = vmul.f32 %v5224_v35, %v5202_v27  ;;  %v5448_v27 = vmul.f32 %v5204_v28, %v5179_v19  ;;  %v5461_v19 = vmul.f32 %v5259_v49, %v5236_v39 }
  0x77   : > { %480 = vst [vmem:[#allocation2 + $0x350] sm:$0xff] %v416_v10  ;;  %481 = vst [vmem:[#allocation2 + $0x358] sm:$0xff] %v417_v51  ;;  %v5437_v10 = vmul.f32 %v5228_v37, %v5219_v33  ;;  %v422_v51 = vld [vmem:[%s5076_s21 + $0x1b0] sm:$0xff]  ;;  %v580_v39 = vmul.f32 %v5170_v15, %v5219_v33  ;;  %v2018_v15 = vld [vmem:[#allocation2 + $0x40] sm:$0x80] }
  0x78   : > { %482 = vst [vmem:[#allocation2 + $0x360] sm:$0xff] %v418_v52  ;;  %8882 = vst [vmem:[#allocation27_spill] sm:$0xff] %v5429_v60  ;;  %v423_v52 = vld [vmem:[%s5076_s21 + $0x1b8] sm:$0xff] }
  0x79   : > { %8883 = vst [vmem:[#allocation28_spill] sm:$0xff] %v5433_v1  ;;  %8884 = vst [vmem:[#allocation29_spill] sm:$0xff] %v5437_v10 }
  0x7a   : > { %483 = vst [vmem:[#allocation2 + $0x368] sm:$0xff] %v419_v7  ;;  %484 = vst [vmem:[#allocation2 + $0x390] sm:$0xff] %v420_v0  ;;  %v426_v7 = vld [vmem:[%s5076_s21 + $0x1d0] sm:$0xff]  ;;  %v5491_v0 = vmul.f32 %v5204_v28, %v5196_v25  ;;  %v581_v25 = vmul.f32 %v5168_v14, %v5222_v34  ;;  %v3187_v28 = vld [vmem:[#allocation2 + $0x80] sm:$0x80] }
  0x7b   : > { %485 = vst [vmem:[#allocation2 + $0x398] sm:$0xff] %v421_v3  ;;  %8885 = vst [vmem:[#allocation30_spill] sm:$0xff] %v5443_v6  ;;  %v425_v3 = vld [vmem:[%s5076_s21 + $0x1c8] sm:$0xff]  ;;  %v1466_v34 = vld [vmem:[#allocation2 + $0x18] sm:$0xfe] }
  0x7c   : > { %8886 = vst [vmem:[#allocation31_spill] sm:$0xff] %v5448_v27  ;;  %8887 = vst [vmem:[#allocation32_spill] sm:$0xff] %v5452_v44  ;;  %v579_v27 = vmul.f32 %v5168_v14, %v5216_v32  ;;  %v8896_v44 = vrot.slane %v5257_v48, 7 }
  0x7d   : > { %486 = vst [vmem:[#allocation2 + $0x3a0] sm:$0xff] %v422_v51  ;;  %487 = vst [vmem:[#allocation2 + $0x3a8] sm:$0xff] %v423_v52  ;;  %v428_v51 = vld [vmem:[%s5076_s21 + $0x1e0] sm:$0xff]  ;;  %v430_v52 = vld [vmem:[%s5076_s21 + $0x1f0] sm:$0xff] }
  0x7e   : > { %488 = vst [vmem:[#allocation2 + $0x3d0] sm:$0xff] %v424_v8  ;;  %8888 = vst [vmem:[#allocation33_spill] sm:$0xff] %v5461_v19  ;;  %v429_v8 = vld [vmem:[%s5076_s21 + $0x1e8] sm:$0xff]  ;;  %v5483_v6 = vadd.f32 %v5172_v16, %v579_v27 }
  0x7f   : > { %489 = vst [vmem:[#allocation2 + $0x3d8] sm:$0xff] %v425_v3  ;;  %490 = vst [vmem:[#allocation2 + $0x3e0] sm:$0xff] %v426_v7  ;;  %v431_v3 = vld [vmem:[%s5076_s21 + $0x1f8] sm:$0xff]  ;;  %v5480_v7 = vld [vmem:[%s8609_s1 + $0x10] ss:$0 sm:$0xff] }
  0x80   : > { %491 = vst [vmem:[#allocation2 + $0x3e8] sm:$0xff] %v427_v26  ;;  %8889 = vst [vmem:[#allocation34_spill] sm:$0xff] %v5472_v2  ;;  %v712_v26 = vld [vmem:[#allocation2] sm:$0x80]  ;;  %v5500_v27 = vmul.f32 %v5480_v7, %v5216_v32  ;;  %v5504_v43 = vmul.f32 %v5480_v7, %v5239_v40  ;;  %v713_v2 = vld [vmem:[#allocation2 + $0x8] sm:$0x80] }
  0x81   : > { %492 = vst [vmem:[#allocation2 + $0x410] sm:$0xff] %v428_v51  ;;  %493 = vst [vmem:[#allocation2 + $0x418] sm:$0xff] %v429_v8  ;;  %v5495_v51 = vmul.f32 %v5259_v49, %v5242_v41  ;;  %v816_v8 = vmul.f32 %v5186_v22, %v712_v26  ;;  %v2706_v26 = vmul.f32 %v5226_v36, %v2602_v24  ;;  %v2019_v24 = vld [vmem:[#allocation2 + $0x48] sm:$0x80]  ;;  %v8897_v41 = vrot.slane %v5265_v53, 1 }
  0x82   : > { %494 = vst [vmem:[#allocation2 + $0x420] sm:$0xff] %v430_v52  ;;  %8890 = vst [vmem:[#allocation35_spill] sm:$0xff] %v5483_v6  ;;  %v1465_v52 = vld [vmem:[#allocation2 + $0x10] sm:$0xfe] }
  0x83   : > { %8891 = vst [vmem:[#allocation36_spill] sm:$0xff] %v5487_v20  ;;  %8892 = vst [vmem:[#allocation37_spill] sm:$0xff] %v5491_v0  ;;  %v1537_v49 = vmul.f32 %v5206_v29, %v1465_v52  ;;  %v5512_v20 = vadd.f32 %v5184_v21, %v580_v39  ;;  %v1009_v32 = vrot.slane %v816_v8, 7  ;;  %v3291_v0 = vmul.f32 %v5230_v38, %v3187_v28 }
  0x84   : > { %8893 = vst [vmem:[#allocation38_spill] sm:$0xff] %v5495_v51  ;;  %495 = vst [vmem:[#allocation2 + $0x428] sm:$0xff] %v431_v3  ;;  %v2122_v3 = vmul.f32 %v5210_v31, %v2018_v15  ;;  %v3939_v51 = vld [vmem:[#allocation2 + $0x90] sm:$0xfe]  ;;  %v2898_v6 = vrot.slane %v2706_v26, 1  ;;  %v817_v15 = vmul.f32 %v5188_v23, %v713_v2  ;;  %v1538_v28 = vmul.f32 %v5208_v30, %v1466_v34 }
  0x85   : > { %8894 = vst [vmem:[#allocation39_spill] sm:$0xff] %v5504_v43  ;;  %8895 = vst [vmem:[#allocation40_spill] sm:$0xff] %v5512_v20  ;;  %v4011_v40 = vmul.f32 %v5480_v7, %v3939_v51  ;;  %v1730_v14 = vrot.slane %v1537_v49, 1  ;;  %v1011_v39 = vsel %vm1008_vm1, %v1009_v32, %v8896_v44  ;;  %v3483_v21 = vrot.slane %v3291_v0, 7  ;;  %v2603_v20 = vld [vmem:[#allocation2 + $0x58] sm:$0xfe] }
  0x86   : > { %v2314_v52 = vrot.slane %v2122_v3, 7  ;;  %v3188_v51 = vld [vmem:[#allocation2 + $0x88] sm:$0x80]  ;;  %v1233_v19 = vadd.f32 %v1011_v39, %v5279_v59  ;;  %v8898_v3 = vrot.slane %v5269_v54, 7  ;;  %v5532_v32 = vld [vmem:[%s8609_s1 + $0x18] ss:$0 sm:$0xff]  ;;  %v5535_v0 = vadd.f32 %v5172_v16, %v581_v25 }
  0x87   : > { %v4203_v8 = vrot.slane %v4011_v40, 1  ;;  %v1732_v49 = vsel %vm1729_vm2, %v1730_v14, %v8897_v41  ;;  %v3940_v44 = vld [vmem:[#allocation2 + $0x98] sm:$0xfe]  ;;  %v8900_v26 = vrot.slane %v5273_v55, 1  ;;  %v8901_v40 = vrot.slane %v5287_v62, 7 }
  0x88   : > { %v2316_v2 = vsel %vm1008_vm1, %v2314_v52, %v8898_v3  ;;  %8899 = vst [vmem:[#allocation41_spill] sm:$0xff] %v5535_v0  ;;  %v1012_v41 = vrot.slane %v817_v15, 7  ;;  %v1733_v34 = vrot.slane %v1538_v28, 1  ;;  %v1401_v52 = vadd.f32 %v5283_v61, %v1233_v19  ;;  %v716_v25 = vld [vmem:[#allocation2 + $0x20] sm:$0x7f] }
  0x89   : > { %v2900_v59 = vsel %vm1729_vm2, %v2898_v6, %v8900_v26  ;;  %v3485_v14 = vsel %vm1008_vm1, %v3483_v21, %v8901_v40  ;;  %v2123_v39 = vmul.f32 %v5224_v35, %v2019_v24  ;;  %v2707_v3 = vmul.f32 %v5228_v37, %v2603_v20 }
  0x8a   : > { %v3292_v10 = vmul.f32 %v5244_v42, %v3188_v51  ;;  %v8902_v16 = vrot.slane %v5500_v27, 1  ;;  %v8903_v6 = vrot.slane %v5306_v11, 7  ;;  %v4012_v21 = vmul.f32 %v5532_v32, %v3940_v44  ;;  %v1467_v51 = vld [vmem:[#allocation2 + $0x30] sm:$0x1] }
  0x8b   : > { %v5556_v19 = vmul.f32 %v5532_v32, %v5219_v33  ;;  %v1954_v15 = vadd.f32 %v1732_v49, %v1401_v52  ;;  %v2317_v24 = vrot.slane %v2123_v39, 7  ;;  %v2901_v28 = vrot.slane %v2707_v3, 1  ;;  %v2606_v44 = vld [vmem:[#allocation2 + $0x70] sm:$0x1]  ;;  %v3191_v39 = vld [vmem:[#allocation2 + $0xa0] sm:$0x7f] }
  0x8c   : > { %v4205_v0 = vsel %vm1729_vm2, %v4203_v8, %v8902_v16  ;;  %v1014_v26 = vsel %vm1008_vm1, %v1012_v41, %v8903_v6  ;;  %v8904_v40 = vrot.slane %v5309_v12, 1  ;;  %v3486_v8 = vrot.slane %v3292_v10, 7  ;;  %v2022_v6 = vld [vmem:[#allocation2 + $0x60] sm:$0x7f]  ;;  %v3941_v3 = vld [vmem:[#allocation2 + $0xb0] sm:$0x1] }
  0x8d   : > { %v1234_v20 = vadd.f32 %v1014_v26, %v5333_v57  ;;  %v4206_v1 = vrot.slane %v4012_v21, 1  ;;  %v820_v41 = vmul.f32 %v5186_v22, %v716_v25  ;;  %v2538_v60 = vadd.f32 %v2316_v2, %v1954_v15 }
  0x8e   : > { %v1735_v16 = vsel %vm1729_vm2, %v1733_v34, %v8904_v40  ;;  %v8905_v49 = vrot.slane %v5319_v46, 7  ;;  %v8906_v26 = vrot.slane %v5323_v47, 1  ;;  %v8907_v34 = vrot.slane %v5327_v50, 7 }
  0x8f   : > { %v1402_v33 = vadd.f32 %v5315_v45, %v1234_v20  ;;  %v1015_v21 = vrot.slane %v820_v41, 7  ;;  %v1541_v2 = vmul.f32 %v5206_v29, %v1467_v51  ;;  %v3122_v15 = vadd.f32 %v2900_v59, %v2538_v60  ;;  %v717_v60 = vld [vmem:[#allocation2 + $0x28] sm:$0x7f] }
  0x90   : > { %v2319_v57 = vsel %vm1008_vm1, %v2317_v24, %v8905_v49  ;;  %v2903_v10 = vsel %vm1729_vm2, %v2901_v28, %v8906_v26  ;;  %v3488_v25 = vsel %vm1008_vm1, %v3486_v8, %v8907_v34  ;;  %v2126_v40 = vmul.f32 %v5210_v31, %v2022_v6  ;;  %v1468_v34 = vld [vmem:[#allocation2 + $0x38] sm:$0x1] }
  0x91   : > { %v1955_v20 = vadd.f32 %v1735_v16, %v1402_v33  ;;  %v2710_v24 = vmul.f32 %v5226_v36, %v2606_v44  ;;  %v8908_v49 = vrot.slane %v5257_v48, 7  ;;  %v1736_v13 = vrot.slane %v1541_v2, 1 }
  0x92   : > { %v3295_v28 = vmul.f32 %v5230_v38, %v3191_v39  ;;  %v4015_v26 = vmul.f32 %v5480_v7, %v3941_v3  ;;  %v3707_v43 = vadd.f32 %v3485_v14, %v3122_v15  ;;  %v2320_v51 = vrot.slane %v2126_v40, 7  ;;  %v2023_v39 = vld [vmem:[#allocation2 + $0x68] sm:$0x7f] }
  0x93   : > { %v1016_v52 = vsel %vm1008_vm1, %v8908_v49, %v1015_v21  ;;  %v2539_v8 = vadd.f32 %v2319_v57, %v1955_v20  ;;  %v8909_v59 = vrot.slane %v5556_v19, 1  ;;  %v8910_v6 = vrot.slane %v5265_v53, 1  ;;  %v3192_v21 = vld [vmem:[#allocation2 + $0xa8] sm:$0x7f] }
  0x94   : > { %v1235_v41 = vadd.f32 %v1016_v52, %v5353_v56  ;;  %v2904_v44 = vrot.slane %v2710_v24, 1  ;;  %v3489_v33 = vrot.slane %v3295_v28, 7  ;;  %v3875_v3 = vadd.f32 %v5296_v4, %v3707_v43  ;;  %v2607_v52 = vld [vmem:[#allocation2 + $0x78] sm:$0x1] }
  0x95   : > { %v4208_v16 = vsel %vm1729_vm2, %v4206_v1, %v8909_v59  ;;  %v1737_v48 = vsel %vm1729_vm2, %v8910_v6, %v1736_v13  ;;  %v3123_v14 = vadd.f32 %v2903_v10, %v2539_v8  ;;  %v4209_v56 = vrot.slane %v4015_v26, 1  ;;  %v3942_v4 = vld [vmem:[#allocation2 + $0xb8] sm:$0x1]  ;;  %v718_v8 = vld [vmem:[#allocation2 + $0x40] sm:$0x80] }
  0x96   : > { %v1403_v57 = vadd.f32 %v5283_v61, %v1235_v41  ;;  %v8911_v2 = vrot.slane %v5269_v54, 7  ;;  %v8912_v53 = vrot.slane %v5273_v55, 1  ;;  %v8913_v15 = vrot.slane %v5287_v62, 7 }
  0x97   : > { %v821_v43 = vmul.f32 %v5188_v23, %v717_v60  ;;  %v4427_v61 = vadd.f32 %v4205_v0, %v3875_v3  ;;  %v3708_v10 = vadd.f32 %v3488_v25, %v3123_v14  ;;  %v1542_v24 = vmul.f32 %v5208_v30, %v1468_v34  ;;  %v2024_v3 = vld [vmem:[#allocation2 + $0x80] sm:$0x80]  ;;  %v2608_v14 = vld [vmem:[#allocation2 + $0x90] sm:$0xfe] }
  0x98   : > { %v2321_v1 = vsel %vm1008_vm1, %v8911_v2, %v2320_v51  ;;  %v2905_v13 = vsel %vm1729_vm2, %v8912_v53, %v2904_v44  ;;  %v3490_v20 = vsel %vm1008_vm1, %v8913_v15, %v3489_v33  ;;  %v1956_v40 = vadd.f32 %v1737_v48, %v1403_v57  ;;  %v1469_v48 = vld [vmem:[#allocation2 + $0x50] sm:$0xfe]  ;;  %v3193_v57 = vld [vmem:[#allocation2 + $0xc0] sm:$0x80] }
  0x99   : > { %v1017_v49 = vrot.slane %v821_v43, 7  ;;  %v2127_v54 = vmul.f32 %v5224_v35, %v2023_v39  ;;  %v2711_v28 = vmul.f32 %v5228_v37, %v2607_v52  ;;  %v3296_v55 = vmul.f32 %v5244_v42, %v3192_v21  ;;  %4491 = vst [vmem:[%s5607_s4] sm:$0xff] %v4427_v61 }
  0x9a   : > { %v3876_v62 = vadd.f32 %v5347_v17, %v3708_v10  ;;  %v2540_v26 = vadd.f32 %v2321_v1, %v1956_v40  ;;  %v1738_v0 = vrot.slane %v1542_v24, 1  ;;  %v4016_v25 = vmul.f32 %v5532_v32, %v3942_v4 }
  0x9b   : > { %v8914_v41 = vrot.slane %v5306_v11, 7  ;;  %v2322_v60 = vrot.slane %v2127_v54, 7  ;;  %v2906_v59 = vrot.slane %v2711_v28, 1  ;;  %v3491_v6 = vrot.slane %v3296_v55, 7  ;;  %v719_v28 = vld [vmem:[#allocation2 + $0x48] sm:$0x80] }
  0x9c   : > { %v4428_v44 = vadd.f32 %v4208_v16, %v3876_v62  ;;  %v3124_v33 = vadd.f32 %v2905_v13, %v2540_v26  ;;  %v8915_v34 = vrot.slane %v5500_v27, 1  ;;  %v8916_v11 = vrot.slane %v5309_v12, 1  ;;  %v3943_v12 = vld [vmem:[#allocation2 + $0xd0] sm:$0xfe]  ;;  %v1470_v55 = vld [vmem:[#allocation2 + $0x58] sm:$0xfe] }
  0x9d   : > { %v1018_v51 = vsel %vm1008_vm1, %v8914_v41, %v1017_v49  ;;  %v8917_v21 = vrot.slane %v5319_v46, 7  ;;  %v8918_v16 = vrot.slane %v5323_v47, 1  ;;  %v4211_v27 = vrot.slane %v4016_v25, 1  ;;  %v2609_v41 = vld [vmem:[#allocation2 + $0x98] sm:$0xfe] }
  0x9e   : > { %v4210_v17 = vsel %vm1729_vm2, %v8915_v34, %v4209_v56  ;;  %v1236_v39 = vadd.f32 %v1018_v51, %v5386_v9  ;;  %v1739_v52 = vsel %vm1729_vm2, %v8916_v11, %v1738_v0  ;;  %4492 = vst [vmem:[%s5607_s4 + $0x8] sm:$0xff] %v4428_v44  ;;  %v3709_v56 = vadd.f32 %v3490_v20, %v3124_v33  ;;  %v8925_v44 = vld [vmem:[#allocation23_spill] sm:$0xff]  ;;  %v8928_v11 = vld [vmem:[#allocation22_spill] sm:$0xff] }
  0x9f   : > { %v2323_v2 = vsel %vm1008_vm1, %v8917_v21, %v2322_v60  ;;  %v2907_v1 = vsel %vm1729_vm2, %v8918_v16, %v2906_v59  ;;  %v822_v53 = vmul.f32 %v5186_v22, %v718_v8  ;;  %v1543_v13 = vmul.f32 %v5206_v29, %v1469_v48  ;;  %v2025_v8 = vld [vmem:[#allocation2 + $0x88] sm:$0x80]  ;;  %v8923_v59 = vld [vmem:[#allocation21_spill] sm:$0xff] }
  0xa0   : > { %v1404_v9 = vadd.f32 %v5315_v45, %v1236_v39  ;;  %v8919_v15 = vrot.slane %v5327_v50, 7  ;;  %v2128_v43 = vmul.f32 %v5210_v31, %v2024_v3  ;;  %v2712_v47 = vmul.f32 %v5226_v36, %v2608_v14  ;;  %v8927_v14 = vld [vmem:[#allocation39_spill] sm:$0xff] }
  0xa1   : > { %v3297_v4 = vmul.f32 %v5230_v38, %v3193_v57  ;;  %v3877_v61 = vadd.f32 %v5357_v5, %v3709_v56  ;;  %v1019_v10 = vrot.slane %v822_v53, 7  ;;  %v1740_v45 = vrot.slane %v1543_v13, 1 }
  0xa2   : > { %v3492_v46 = vsel %vm1008_vm1, %v8919_v15, %v3491_v6  ;;  %v1957_v20 = vadd.f32 %v1739_v52, %v1404_v9  ;;  %v8920_v40 = vrot.slane %v5556_v19, 1  ;;  %v2324_v49 = vrot.slane %v2128_v43, 7  ;;  %v8929_v9 = vld [vmem:[#allocation24_spill] sm:$0xff] }
  0xa3   : > { %v2908_v50 = vrot.slane %v2712_v47, 1  ;;  %v4017_v54 = vmul.f32 %v5480_v7, %v3943_v12  ;;  %v4429_v62 = vadd.f32 %v4210_v17, %v3877_v61  ;;  %v8921_v0 = vrot.slane %v5372_v63, 7  ;;  %v3194_v17 = vld [vmem:[#allocation2 + $0xc8] sm:$0x80]  ;;  %v8931_v61 = vld [vmem:[#allocation20_spill] sm:$0xff] }
  0xa4   : > { %v4212_v24 = vsel %vm1729_vm2, %v8920_v40, %v4211_v27  ;;  %v2541_v26 = vadd.f32 %v2323_v2, %v1957_v20  ;;  %v3493_v25 = vrot.slane %v3297_v4, 7  ;;  %v8922_v51 = vrot.slane %v5376_v58, 1  ;;  %v3944_v27 = vld [vmem:[#allocation2 + $0xd8] sm:$0xfe] }
  0xa5   : > { %v1021_v5 = vsel %vm1008_vm1, %v1019_v10, %v8921_v0  ;;  %v8924_v6 = vrot.slane %v8923_v59, 7  ;;  %v8926_v33 = vrot.slane %v8925_v44, 1  ;;  %4493 = vst [vmem:[%s5607_s4 + $0x10] sm:$0xff] %v4429_v62  ;;  %v4213_v3 = vrot.slane %v4017_v54, 1  ;;  %v1471_v54 = vld [vmem:[#allocation2 + $0x70] sm:$0x1] }
  0xa6   : > { %v1237_v19 = vadd.f32 %v1021_v5, %v5404_v18  ;;  %v1742_v60 = vsel %vm1729_vm2, %v1740_v45, %v8922_v51  ;;  %v3125_v39 = vadd.f32 %v2907_v1, %v2541_v26  ;;  %v4214_v57 = vrot.slane %v8927_v14, 1  ;;  %v8932_v45 = vld [vmem:[#allocation26_spill] sm:$0xff]  ;;  %v8935_v26 = vld [vmem:[#allocation27_spill] sm:$0xff]  ;;  %v8937_v51 = vld [vmem:[#allocation28_spill] sm:$0xff] }
  0xa7   : > { %v2326_v48 = vsel %vm1008_vm1, %v2324_v49, %v8924_v6  ;;  %v2910_v34 = vsel %vm1729_vm2, %v2908_v50, %v8926_v33  ;;  %v823_v18 = vmul.f32 %v5188_v23, %v719_v28  ;;  %v1544_v21 = vmul.f32 %v5208_v30, %v1470_v55  ;;  %v722_v50 = vld [vmem:[#allocation2 + $0x60] sm:$0x7f]  ;;  %v8934_v55 = vld [vmem:[#allocation30_spill] sm:$0xff] }
  0xa8   : > { %v1405_v52 = vadd.f32 %v8928_v11, %v1237_v19  ;;  %v2129_v2 = vmul.f32 %v5224_v35, %v2025_v8  ;;  %v2713_v16 = vmul.f32 %v5228_v37, %v2609_v41  ;;  %v3710_v56 = vadd.f32 %v3492_v46, %v3125_v39  ;;  %v2028_v8 = vld [vmem:[#allocation2 + $0xa0] sm:$0x7f]  ;;  %v2612_v41 = vld [vmem:[#allocation2 + $0xb0] sm:$0x1] }
  0xa9   : > { %v8930_v53 = vrot.slane %v8929_v9, 7  ;;  %v1022_v1 = vrot.slane %v823_v18, 7  ;;  %v3298_v12 = vmul.f32 %v5244_v42, %v3194_v17  ;;  %v1743_v43 = vrot.slane %v1544_v21, 1  ;;  %v8939_v33 = vld [vmem:[#allocation29_spill] sm:$0xff] }
  0xaa   : > { %v1958_v15 = vadd.f32 %v1742_v60, %v1405_v52  ;;  %v2327_v47 = vrot.slane %v2129_v2, 7  ;;  %v2911_v4 = vrot.slane %v2713_v16, 1  ;;  %v3878_v20 = vadd.f32 %v8931_v61, %v3710_v56  ;;  %v3197_v18 = vld [vmem:[#allocation2 + $0xe0] sm:$0x7f]  ;;  %v8942_v52 = vld [vmem:[#allocation31_spill] sm:$0xff] }
  0xab   : > { %v3495_v13 = vsel %vm1008_vm1, %v3493_v25, %v8930_v53  ;;  %v4215_v10 = vsel %vm1729_vm2, %v4213_v3, %v4214_v57  ;;  %v8933_v40 = vrot.slane %v8932_v45, 7  ;;  %v4018_v49 = vmul.f32 %v5532_v32, %v3944_v27  ;;  %v8941_v3 = vld [vmem:[#allocation17_spill] sm:$0xff] }
  0xac   : > { %v2542_v28 = vadd.f32 %v2326_v48, %v1958_v15  ;;  %v8936_v0 = vrot.slane %v8935_v26, 1  ;;  %v3496_v25 = vrot.slane %v3298_v12, 7  ;;  %v4430_v19 = vadd.f32 %v4212_v24, %v3878_v20 }
  0xad   : > { %v1024_v46 = vsel %vm1008_vm1, %v1022_v1, %v8933_v40  ;;  %v8938_v60 = vrot.slane %v8937_v51, 7  ;;  %v8940_v17 = vrot.slane %v8939_v33, 1  ;;  %v5687_v48 = vmul.f32 %v5532_v32, %v8941_v3  ;;  %v2613_v3 = vld [vmem:[#allocation2 + $0xb8] sm:$0x1] }
  0xae   : > { %v1238_v62 = vadd.f32 %v1024_v46, %v8934_v55  ;;  %v1745_v5 = vsel %vm1729_vm2, %v1743_v43, %v8936_v0  ;;  %v3126_v11 = vadd.f32 %v2910_v34, %v2542_v28  ;;  %v4216_v2 = vrot.slane %v4018_v49, 1  ;;  %4494 = vst [vmem:[%s5607_s4 + $0x18] sm:$0xff] %v4430_v19  ;;  %v8943_v34 = vld [vmem:[#allocation32_spill] sm:$0xff]  ;;  %v3945_v46 = vld [vmem:[#allocation2 + $0xf0] sm:$0x1]  ;;  %v8945_v49 = vld [vmem:[#allocation25_spill] sm:$0xff] }
  0xaf   : > { %v2329_v6 = vsel %vm1008_vm1, %v2327_v47, %v8938_v60  ;;  %v2913_v39 = vsel %vm1729_vm2, %v2911_v4, %v8940_v17  ;;  %v826_v16 = vmul.f32 %v5186_v22, %v722_v50  ;;  %v4217_v24 = vrot.slane %v5687_v48, 1  ;;  %v1472_v0 = vld [vmem:[#allocation2 + $0x78] sm:$0x1] }
  0xb0   : > { %v1406_v21 = vadd.f32 %v8942_v52, %v1238_v62  ;;  %v1547_v27 = vmul.f32 %v5206_v29, %v1471_v54  ;;  %v2132_v56 = vmul.f32 %v5210_v31, %v2028_v8  ;;  %v2716_v53 = vmul.f32 %v5226_v36, %v2612_v41  ;;  %v723_v62 = vld [vmem:[#allocation2 + $0x68] sm:$0x7f] }
  0xb1   : > { %v3711_v1 = vadd.f32 %v3495_v13, %v3126_v11  ;;  %v1025_v15 = vrot.slane %v826_v16, 7  ;;  %v3301_v43 = vmul.f32 %v5230_v38, %v3197_v18  ;;  %v8944_v47 = vrot.slane %v8943_v34, 7  ;;  %v3198_v18 = vld [vmem:[#allocation2 + $0xe8] sm:$0x7f] }
  0xb2   : > { %v1959_v12 = vadd.f32 %v1745_v5, %v1406_v21  ;;  %v1746_v61 = vrot.slane %v1547_v27, 1  ;;  %v2330_v20 = vrot.slane %v2132_v56, 7  ;;  %v2914_v40 = vrot.slane %v2716_v53, 1  ;;  %v2029_v5 = vld [vmem:[#allocation2 + $0xa8] sm:$0x7f] }
  0xb3   : > { %v3498_v4 = vsel %vm1008_vm1, %v3496_v25, %v8944_v47  ;;  %v3879_v50 = vadd.f32 %v8945_v49, %v3711_v1  ;;  %v4218_v28 = vsel %vm1729_vm2, %v4216_v2, %v4217_v24  ;;  %v8946_v13 = vrot.slane %v5372_v63, 7  ;;  %v8947_v25 = vld [vmem:[#allocation35_spill] sm:$0xff]  ;;  %v8951_v16 = vld [vmem:[#allocation34_spill] sm:$0xff]  ;;  %v8952_v47 = vld [vmem:[#allocation33_spill] sm:$0xff] }
  0xb4   : > { %v2543_v54 = vadd.f32 %v2329_v6, %v1959_v12  ;;  %v8948_v41 = vrot.slane %v5376_v58, 1  ;;  %v8949_v60 = vrot.slane %v8923_v59, 7  ;;  %v3499_v17 = vrot.slane %v3301_v43, 7 }
  0xb5   : > { %v1026_v55 = vsel %vm1008_vm1, %v8946_v13, %v1025_v15  ;;  %v4431_v63 = vadd.f32 %v4215_v10, %v3879_v50  ;;  %v8950_v52 = vrot.slane %v8925_v44, 1  ;;  %v4021_v2 = vmul.f32 %v5480_v7, %v3945_v46  ;;  %v3946_v50 = vld [vmem:[#allocation2 + $0xf8] sm:$0x1] }
  0xb6   : > { %v1239_v8 = vadd.f32 %v1026_v55, %v8947_v25  ;;  %v1747_v19 = vsel %vm1729_vm2, %v8948_v41, %v1746_v61  ;;  %v2331_v6 = vsel %vm1008_vm1, %v8949_v60, %v2330_v20  ;;  %v3127_v11 = vadd.f32 %v2913_v39, %v2543_v54 }
  0xb7   : > { %v2915_v21 = vsel %vm1729_vm2, %v8950_v52, %v2914_v40  ;;  %v827_v58 = vmul.f32 %v5188_v23, %v723_v62  ;;  %v1548_v56 = vmul.f32 %v5208_v30, %v1472_v0  ;;  %v2133_v59 = vmul.f32 %v5224_v35, %v2029_v5  ;;  %4495 = vst [vmem:[%s5607_s4 + $0x20] sm:$0xff] %v4431_v63  ;;  %v1473_v5 = vld [vmem:[#allocation2 + $0x90] sm:$0xfe]  ;;  %v8962_v52 = vld [vmem:[#allocation16_spill] sm:$0xff] }
  0xb8   : > { %v1407_v27 = vadd.f32 %v8951_v16, %v1239_v8  ;;  %v3712_v53 = vadd.f32 %v3498_v4, %v3127_v11  ;;  %v4219_v1 = vrot.slane %v4021_v2, 1  ;;  %v2717_v10 = vmul.f32 %v5228_v37, %v2613_v3  ;;  %v724_v4 = vld [vmem:[#allocation2 + $0x80] sm:$0x80]  ;;  %v8956_v8 = vld [vmem:[#allocation40_spill] sm:$0xff]  ;;  %v5761_v2 = vld [vmem:[#allocation2 + $0xd0] sm:$0xff] }
  0xb9   : > { %v3302_v39 = vmul.f32 %v5244_v42, %v3198_v18  ;;  %v1027_v12 = vrot.slane %v827_v58, 7  ;;  %v1748_v15 = vrot.slane %v1548_v56, 1  ;;  %v2332_v43 = vrot.slane %v2133_v59, 7  ;;  %v8960_v18 = vld [vmem:[#allocation37_spill] sm:$0xff] }
  0xba   : > { %v1960_v44 = vadd.f32 %v1747_v19, %v1407_v27  ;;  %v3880_v61 = vadd.f32 %v8952_v47, %v3712_v53  ;;  %v8953_v20 = vrot.slane %v8929_v9, 7  ;;  %v2916_v46 = vrot.slane %v2717_v10, 1  ;;  %v8963_v56 = vld [vmem:[#allocation13_spill] sm:$0xff] }
  0xbb   : > { %v3501_v49 = vrot.slane %v3302_v39, 7  ;;  %v4220_v13 = vsel %vm1729_vm2, %v4214_v57, %v4219_v1  ;;  %v8954_v55 = vrot.slane %v8932_v45, 7  ;;  %v8955_v0 = vrot.slane %v8935_v26, 1  ;;  %v8959_v26 = vld [vmem:[#allocation14_spill] sm:$0xff]  ;;  %v2614_v39 = vld [vmem:[#allocation2 + $0xd0] sm:$0xfe] }
  0xbc   : > { %v3500_v40 = vsel %vm1008_vm1, %v8953_v20, %v3499_v17  ;;  %v2544_v54 = vadd.f32 %v2331_v6, %v1960_v44  ;;  %v4432_v25 = vadd.f32 %v4218_v28, %v3880_v61  ;;  %v8957_v19 = vrot.slane %v8937_v51, 7  ;;  %v2030_v28 = vld [vmem:[#allocation2 + $0xc0] sm:$0x80] }
  0xbd   : > { %v1028_v62 = vsel %vm1008_vm1, %v8954_v55, %v1027_v12  ;;  %v1749_v9 = vsel %vm1729_vm2, %v8955_v0, %v1748_v15  ;;  %v8958_v14 = vrot.slane %v8939_v33, 1  ;;  %v4022_v45 = vmul.f32 %v5532_v32, %v3946_v50  ;;  %v5768_v44 = vld [vmem:[#allocation2 + $0xe0] sm:$0xff]  ;;  %v8964_v12 = vld [vmem:[#allocation36_spill] sm:$0xff] }
  0xbe   : > { %v1240_v41 = vadd.f32 %v1028_v62, %v8956_v8  ;;  %v2333_v60 = vsel %vm1008_vm1, %v8957_v19, %v2332_v43  ;;  %v3128_v6 = vadd.f32 %v2915_v21, %v2544_v54  ;;  %v828_v17 = vmul.f32 %v5186_v22, %v724_v4  ;;  %4496 = vst [vmem:[%s5607_s4 + $0x28] sm:$0xff] %v4432_v25  ;;  %v3199_v20 = vld [vmem:[#allocation2 + $0x100] sm:$0x80] }
  0xbf   : > { %v2917_v57 = vsel %vm1729_vm2, %v8958_v14, %v2916_v46  ;;  %v5749_v3 = vmul.f32 %v5186_v22, %v8959_v26  ;;  %v8961_v51 = vrot.slane %v8943_v34, 7  ;;  %v1549_v33 = vmul.f32 %v5206_v29, %v1473_v5  ;;  %v5795_v19 = vld [vmem:[#allocation2 + $0x120] sm:$0xff] }
  0xc0   : > { %v1408_v63 = vadd.f32 %v8960_v18, %v1240_v41  ;;  %v5759_v21 = vmul.f32 %v5206_v29, %v8962_v52  ;;  %v3713_v16 = vadd.f32 %v3500_v40, %v3128_v6  ;;  %v1029_v27 = vrot.slane %v828_v17, 7  ;;  %v5778_v40 = vld [vmem:[#allocation2 + $0x110] sm:$0xff]  ;;  %v725_v17 = vld [vmem:[#allocation2 + $0x88] sm:$0x80] }
  0xc1   : > { %v3502_v11 = vsel %vm1008_vm1, %v8961_v51, %v3501_v49  ;;  %v8659_v58 = vrot.slane %v5749_v3, 7  ;;  %v1345_v59 = vmul.f32 %v8963_v56, %v8959_v26  ;;  %v1750_v1 = vrot.slane %v1549_v33, 1  ;;  %v8965_v49 = vld [vmem:[#allocation41_spill] sm:$0xff]  ;;  %v727_v51 = vld [vmem:[#allocation2 + $0x98] sm:$0xff]  ;;  %v8966_v33 = vld [vmem:[#allocation18_spill] sm:$0xff] }
  0xc2   : > { %v1961_v53 = vadd.f32 %v1749_v9, %v1408_v63  ;;  %v8658_v34 = vrot.slane %v5759_v21, 1  ;;  %v2134_v10 = vmul.f32 %v5210_v31, %v2030_v28  ;;  %v3881_v15 = vadd.f32 %v8964_v12, %v3713_v16  ;;  %v8967_v16 = vld [vmem:[#allocation10_spill] sm:$0xff]  ;;  %v1474_v12 = vld [vmem:[#allocation2 + $0x98] sm:$0xfe] }
  0xc3   : > { %v4221_v43 = vrot.slane %v4022_v45, 1  ;;  %v1031_v47 = vsel %vm1008_vm1, %v1029_v27, %v8659_v58  ;;  %v5776_v61 = vmul.f32 %v5210_v31, %v5761_v2  ;;  %v2718_v0 = vmul.f32 %v5226_v36, %v2614_v39  ;;  %v5820_v39 = vld [vmem:[#allocation2 + $0xa8] sm:$0xff] }
  0xc4   : > { %v2545_v46 = vadd.f32 %v2333_v60, %v1961_v53  ;;  %v1241_v50 = vadd.f32 %v1031_v47, %v8965_v49  ;;  %v1752_v4 = vsel %vm1729_vm2, %v1750_v1, %v8658_v34  ;;  %v2334_v54 = vrot.slane %v2134_v10, 7  ;;  %v3947_v60 = vld [vmem:[#allocation2 + $0x110] sm:$0xfe]  ;;  %v2031_v49 = vld [vmem:[#allocation2 + $0xc8] sm:$0x80] }
  0xc5   : > { %v4433_v55 = vadd.f32 %v4220_v13, %v3881_v15  ;;  %v8657_v62 = vrot.slane %v5776_v61, 7  ;;  %v5788_v9 = vmul.f32 %v5226_v36, %v5768_v44  ;;  %v3303_v8 = vmul.f32 %v5230_v38, %v3199_v20  ;;  %v510_v13 = vld [vmem:[%s5076_s21 + $0x48] sm:$0xff]  ;;  %v5822_v15 = vld [vmem:[#allocation2 + $0xd8] sm:$0xff] }
  0xc6   : > { %v3129_v5 = vadd.f32 %v2917_v57, %v2545_v46  ;;  %v1409_v25 = vadd.f32 %v1345_v59, %v1241_v50  ;;  %v5793_v41 = vmul.f32 %v5230_v38, %v5778_v40  ;;  %v4222_v14 = vsel %vm1729_vm2, %v4217_v24, %v4221_v43  ;;  %v8968_v59 = vld [vmem:[#allocation38_spill] sm:$0xff]  ;;  %8969 = vst [vmem:[#allocation21_spill] sm:$0xff] %v5822_v15  ;;  %v2615_v50 = vld [vmem:[#allocation2 + $0xd8] sm:$0xfe] }
  0xc7   : > { %4497 = vst [vmem:[%s5607_s4 + $0x30] sm:$0xff] %v4433_v55  ;;  %v2336_v57 = vsel %vm1008_vm1, %v2334_v54, %v8657_v62  ;;  %v2918_v6 = vrot.slane %v2718_v0, 1  ;;  %v8655_v45 = vrot.slane %v5788_v9, 1  ;;  %v3503_v18 = vrot.slane %v3303_v8, 7  ;;  %v8970_v55 = vld [vmem:[#allocation12_spill] sm:$0xff]  ;;  %v4805_v62 = vld [vmem:[#allocation2 + $0xa0] sm:$0xff] }
  0xc8   : > { %v3714_v26 = vadd.f32 %v3502_v11, %v3129_v5  ;;  %v1962_v28 = vadd.f32 %v1752_v4, %v1409_v25  ;;  %v8653_v63 = vrot.slane %v5793_v41, 7  ;;  %v3819_v52 = vmul.f32 %v8966_v33, %v5778_v40  ;;  %v5832_v25 = vld [vmem:[#allocation2 + $0xe8] sm:$0xff] }
  0xc9   : > { %v4023_v48 = vmul.f32 %v5480_v7, %v3947_v60  ;;  %v5812_v24 = vmul.f32 %v5480_v7, %v5795_v19  ;;  %v582_v27 = vmul.f32 %v8967_v16, %v510_v13  ;;  %v2920_v11 = vsel %vm1729_vm2, %v2918_v6, %v8655_v45  ;;  %8971 = vst [vmem:[#allocation23_spill] sm:$0xff] %v5832_v25  ;;  %v8972_v60 = vld [vmem:[#allocation15_spill] sm:$0xff] }
  0xca   : > { %v3882_v53 = vadd.f32 %v8968_v59, %v3714_v26  ;;  %v2546_v1 = vadd.f32 %v2336_v57, %v1962_v28  ;;  %v829_v10 = vmul.f32 %v5188_v23, %v725_v17  ;;  %v3505_v43 = vsel %vm1008_vm1, %v3503_v18, %v8653_v63  ;;  %v3200_v18 = vld [vmem:[#allocation2 + $0x108] sm:$0x80]  ;;  %v2618_v63 = vld [vmem:[#allocation2 + $0xf0] sm:$0x1] }
  0xcb   : > { %v4223_v47 = vrot.slane %v4023_v48, 1  ;;  %v8652_v20 = vrot.slane %v5812_v24, 1  ;;  %v5829_v46 = vmul.f32 %v5188_v23, %v727_v51  ;;  %v657_v0 = vadd.f32 %v8970_v55, %v582_v27 }
  0xcc   : > { %v4434_v4 = vadd.f32 %v4222_v14, %v3882_v53  ;;  %v3130_v54 = vadd.f32 %v2920_v11, %v2546_v1  ;;  %v1032_v5 = vrot.slane %v829_v10, 7  ;;  %v1346_v13 = vmul.f32 %v8972_v60, %v727_v51  ;;  %v5856_v53 = vld [vmem:[#allocation2 + $0x118] sm:$0xff] }
  0xcd   : > { %v8650_v8 = vrot.slane %v5829_v46, 7  ;;  %v1550_v57 = vmul.f32 %v5208_v30, %v1474_v12  ;;  %v5839_v6 = vmul.f32 %v5208_v30, %v5820_v39  ;;  %v2135_v14 = vmul.f32 %v5224_v35, %v2031_v49  ;;  %8973 = vst [vmem:[#allocation39_spill] sm:$0xff] %v5856_v53 }
  0xce   : > { %4498 = vst [vmem:[%s5607_s4 + $0x38] sm:$0xff] %v4434_v4  ;;  %v3715_v17 = vadd.f32 %v3505_v43, %v3130_v54  ;;  %v5845_v26 = vmul.f32 %v5224_v35, %v5822_v15  ;;  %v2719_v28 = vmul.f32 %v5228_v37, %v2615_v50  ;;  %v5854_v59 = vmul.f32 %v5228_v37, %v5832_v25  ;;  %v3948_v43 = vld [vmem:[#allocation2 + $0x118] sm:$0xfe] }
  0xcf   : > { %v1034_v51 = vsel %vm1008_vm1, %v1032_v5, %v8650_v8  ;;  %v1753_v48 = vrot.slane %v1550_v57, 1  ;;  %v8651_v27 = vrot.slane %v5839_v6, 1  ;;  %v2337_v10 = vrot.slane %v2135_v14, 7  ;;  %v5864_v5 = vld [vmem:[#allocation2 + $0x128] sm:$0xff]  ;;  %v511_v57 = vld [vmem:[%s5076_s21 + $0x50] sm:$0xff] }
  0xd0   : > { %v3883_v1 = vadd.f32 %v3819_v52, %v3715_v17  ;;  %v1242_v11 = vadd.f32 %v1034_v51, %v657_v0  ;;  %v8654_v12 = vrot.slane %v5845_v26, 7  ;;  %v4225_v49 = vsel %vm1729_vm2, %v4223_v47, %v8652_v20  ;;  %8974 = vst [vmem:[#allocation22_spill] sm:$0xff] %v5864_v5  ;;  %v728_v47 = vld [vmem:[#allocation2 + $0xa0] sm:$0x7f]  ;;  %v1475_v14 = vld [vmem:[#allocation2 + $0xb0] sm:$0x1] }
  0xd1   : > { %v2921_v50 = vrot.slane %v2719_v28, 1  ;;  %v8656_v4 = vrot.slane %v5854_v59, 1  ;;  %v3304_v54 = vmul.f32 %v5244_v42, %v3200_v18  ;;  %v1755_v0 = vsel %vm1729_vm2, %v1753_v48, %v8651_v27  ;;  %v2034_v20 = vld [vmem:[#allocation2 + $0xe0] sm:$0x7f] }
  0xd2   : > { %v4435_v8 = vadd.f32 %v4225_v49, %v3883_v1  ;;  %v1410_v52 = vadd.f32 %v1346_v13, %v1242_v11  ;;  %v5872_v17 = vmul.f32 %v5244_v42, %v5856_v53  ;;  %v2339_v28 = vsel %vm1008_vm1, %v2337_v10, %v8654_v12  ;;  %v8976_v49 = vld [vmem:[#allocation9_spill] sm:$0xff]  ;;  %v8977_v10 = vld [vmem:[#allocation19_spill] sm:$0xff] }
  0xd3   : > { %v2923_v18 = vsel %vm1729_vm2, %v2921_v50, %v8656_v4  ;;  %v3506_v51 = vrot.slane %v3304_v54, 7  ;;  %v4024_v13 = vmul.f32 %v5532_v32, %v3948_v43  ;;  %v5885_v11 = vmul.f32 %v5532_v32, %v5864_v5 }
  0xd4   : > { %4499 = vst [vmem:[%s5607_s4 + $0x40] sm:$0xff] %v4435_v8  ;;  %v1963_v1 = vadd.f32 %v1755_v0, %v1410_v52  ;;  %v583_v27 = vmul.f32 %v8976_v49, %v511_v57  ;;  %v3820_v12 = vmul.f32 %v8977_v10, %v5856_v53  ;;  %v832_v50 = vmul.f32 %v5186_v22, %v728_v47  ;;  %v3203_v8 = vld [vmem:[#allocation2 + $0x120] sm:$0x7f]  ;;  %v8978_v0 = vld [vmem:[#allocation11_spill] sm:$0xff] }
  0xd5   : > { %8975 = vst [vmem:[#allocation24_spill] sm:$0xff] %v5885_v11  ;;  %v4226_v45 = vrot.slane %v4024_v13, 1  ;;  %v1553_v43 = vmul.f32 %v5206_v29, %v1475_v14  ;;  %v8667_v52 = vrot.slane %v5885_v11, 1  ;;  %v1347_v57 = vmul.f32 %v4805_v62, %v8963_v56  ;;  %v3949_v53 = vld [vmem:[#allocation2 + $0x130] sm:$0x1] }
  0xd6   : > { %v2547_v54 = vadd.f32 %v2339_v28, %v1963_v1  ;;  %v658_v4 = vadd.f32 %v8978_v0, %v583_v27  ;;  %v1035_v34 = vrot.slane %v832_v50, 7  ;;  %v2138_v48 = vmul.f32 %v5210_v31, %v2034_v20  ;;  %v512_v1 = vld [vmem:[%s5076_s21 + $0x58] sm:$0xff]  ;;  %v729_v62 = vld [vmem:[#allocation2 + $0xa8] sm:$0x7f] }
  0xd7   : > { %v1756_v58 = vrot.slane %v1553_v43, 1  ;;  %v2722_v13 = vmul.f32 %v5226_v36, %v2618_v63  ;;  %v8979_v14 = vrot.slane %v5872_v17, 7  ;;  %v4228_v28 = vsel %vm1729_vm2, %v4226_v45, %v8667_v52  ;;  %v1476_v11 = vld [vmem:[#allocation2 + $0xb8] sm:$0x1] }
  0xd8   : > { %v3131_v47 = vadd.f32 %v2923_v18, %v2547_v54  ;;  %v3307_v27 = vmul.f32 %v5230_v38, %v3203_v8  ;;  %v8980_v50 = vrot.slane %v5749_v3, 7  ;;  %v2340_v43 = vrot.slane %v2138_v48, 7 }
  0xd9   : > { %v3508_v25 = vsel %vm1008_vm1, %v3506_v51, %v8979_v14  ;;  %v2924_v63 = vrot.slane %v2722_v13, 1  ;;  %v3821_v18 = vmul.f32 %v8966_v33, %v5795_v19  ;;  %v4027_v14 = vmul.f32 %v5480_v7, %v3949_v53  ;;  %v2035_v13 = vld [vmem:[#allocation2 + $0xe8] sm:$0x7f] }
  0xda   : > { %v1036_v20 = vsel %vm1008_vm1, %v8980_v50, %v1035_v34  ;;  %v3716_v54 = vadd.f32 %v3508_v25, %v3131_v47  ;;  %v3509_v51 = vrot.slane %v3307_v27, 7  ;;  %v8981_v45 = vrot.slane %v5759_v21, 1  ;;  %v2619_v21 = vld [vmem:[#allocation2 + $0xf8] sm:$0x1] }
  0xdb   : > { %v1243_v15 = vadd.f32 %v1036_v20, %v658_v4  ;;  %v8982_v52 = vrot.slane %v5776_v61, 7  ;;  %v584_v34 = vmul.f32 %v8967_v16, %v512_v1  ;;  %v833_v48 = vmul.f32 %v5188_v23, %v729_v62  ;;  %v3950_v20 = vld [vmem:[#allocation2 + $0x138] sm:$0x1] }
  0xdc   : > { %v1757_v8 = vsel %vm1729_vm2, %v8981_v45, %v1756_v58  ;;  %v3884_v50 = vadd.f32 %v3820_v12, %v3716_v54  ;;  %v8983_v4 = vrot.slane %v5788_v9, 1  ;;  %v4229_v47 = vrot.slane %v4027_v14, 1  ;;  %v3204_v58 = vld [vmem:[#allocation2 + $0x128] sm:$0x7f]  ;;  %v513_v14 = vld [vmem:[%s5076_s21 + $0x60] sm:$0xff] }
  0xdd   : > { %v2341_v3 = vsel %vm1008_vm1, %v8982_v52, %v2340_v43  ;;  %v1411_v25 = vadd.f32 %v1347_v57, %v1243_v15  ;;  %v8984_v61 = vrot.slane %v5793_v41, 7  ;;  %v659_v27 = vadd.f32 %v8970_v55, %v584_v34  ;;  %v730_v34 = vld [vmem:[#allocation2 + $0xc0] sm:$0x80] }
  0xde   : > { %v2925_v53 = vsel %vm1729_vm2, %v8983_v4, %v2924_v63  ;;  %v1037_v1 = vrot.slane %v833_v48, 7  ;;  %v1554_v62 = vmul.f32 %v5208_v30, %v1476_v11  ;;  %v4436_v12 = vadd.f32 %v4228_v28, %v3884_v50 }
  0xdf   : > { %v3510_v52 = vsel %vm1008_vm1, %v8984_v61, %v3509_v51  ;;  %v1964_v15 = vadd.f32 %v1757_v8, %v1411_v25  ;;  %v1348_v9 = vmul.f32 %v8972_v60, %v5820_v39  ;;  %v2139_v57 = vmul.f32 %v5224_v35, %v2035_v13 }
  0xe0   : > { %v8985_v43 = vrot.slane %v5829_v46, 7  ;;  %v1758_v41 = vrot.slane %v1554_v62, 1  ;;  %v2723_v54 = vmul.f32 %v5228_v37, %v2619_v21  ;;  %v3308_v51 = vmul.f32 %v5244_v42, %v3204_v58  ;;  %4500 = vst [vmem:[%s5607_s4 + $0x48] sm:$0xff] %v4436_v12  ;;  %v1477_v58 = vld [vmem:[#allocation2 + $0xd0] sm:$0xfe] }
  0xe1   : > { %v2548_v11 = vadd.f32 %v2341_v3, %v1964_v15  ;;  %v8986_v28 = vrot.slane %v5812_v24, 1  ;;  %v2342_v8 = vrot.slane %v2139_v57, 7  ;;  %v3822_v46 = vmul.f32 %v8977_v10, %v5864_v5  ;;  %v2620_v57 = vld [vmem:[#allocation2 + $0x110] sm:$0xfe] }
  0xe2   : > { %v1038_v63 = vsel %vm1008_vm1, %v8985_v43, %v1037_v1  ;;  %v2926_v48 = vrot.slane %v2723_v54, 1  ;;  %v3511_v13 = vrot.slane %v3308_v51, 7  ;;  %v4028_v50 = vmul.f32 %v5532_v32, %v3950_v20 }
  0xe3   : > { %v4230_v45 = vsel %vm1729_vm2, %v8986_v28, %v4229_v47  ;;  %v1244_v39 = vadd.f32 %v1038_v63, %v659_v27  ;;  %v3132_v25 = vadd.f32 %v2925_v53, %v2548_v11  ;;  %v8987_v21 = vrot.slane %v5839_v6, 1  ;;  %v3205_v28 = vld [vmem:[#allocation2 + $0x140] sm:$0x80] }
  0xe4   : > { %v585_v24 = vmul.f32 %v8976_v49, %v513_v14  ;;  %v8988_v47 = vrot.slane %v5845_v26, 7  ;;  %v8989_v27 = vrot.slane %v5854_v59, 1  ;;  %v8990_v62 = vrot.slane %v5872_v17, 7  ;;  %v2036_v26 = vld [vmem:[#allocation2 + $0x100] sm:$0x80] }
  0xe5   : > { %v1412_v4 = vadd.f32 %v1348_v9, %v1244_v39  ;;  %v1759_v3 = vsel %vm1729_vm2, %v8987_v21, %v1758_v41  ;;  %v834_v53 = vmul.f32 %v5186_v22, %v730_v34  ;;  %v3717_v6 = vadd.f32 %v3510_v52, %v3132_v25  ;;  %v3951_v21 = vld [vmem:[#allocation2 + $0x150] sm:$0xfe] }
  0xe6   : > { %v2343_v61 = vsel %vm1008_vm1, %v8988_v47, %v2342_v8  ;;  %v2927_v1 = vsel %vm1729_vm2, %v8989_v27, %v2926_v48  ;;  %v3512_v32 = vsel %vm1008_vm1, %v8990_v62, %v3511_v13  ;;  %v4231_v15 = vrot.slane %v4028_v50, 1  ;;  %v5980_v48 = vld [vmem:[#allocation2 + $0x150] sm:$0xff]  ;;  %v5992_v27 = vld [vmem:[#allocation2 + $0x160] sm:$0xff] }
  0xe7   : > { %v1965_v12 = vadd.f32 %v1759_v3, %v1412_v4  ;;  %v5959_v9 = vmul.f32 %v5761_v2, %v5186_v22  ;;  %v660_v20 = vadd.f32 %v8978_v0, %v585_v24  ;;  %v1039_v59 = vrot.slane %v834_v53, 7  ;;  %v8991_v3 = vld [vmem:[#allocation24_spill] sm:$0xff] }
  0xe8   : > { %v1349_v43 = vmul.f32 %v5761_v2, %v8963_v56  ;;  %v1555_v17 = vmul.f32 %v5206_v29, %v1477_v58  ;;  %v3885_v63 = vadd.f32 %v3821_v18, %v3717_v6  ;;  %v5968_v54 = vmul.f32 %v5768_v44, %v5206_v29 }
  0xe9   : > { %v2549_v41 = vadd.f32 %v2343_v61, %v1965_v12  ;;  %v8676_v52 = vrot.slane %v5959_v9, 7  ;;  %v2140_v14 = vmul.f32 %v5210_v31, %v2036_v26  ;;  %v5973_v11 = vmul.f32 %v5778_v40, %v5210_v31  ;;  %v731_v12 = vld [vmem:[#allocation2 + $0xc8] sm:$0x80] }
  0xea   : > { %v1760_v51 = vrot.slane %v1555_v17, 1  ;;  %v2724_v2 = vmul.f32 %v5226_v36, %v2620_v57  ;;  %v4437_v39 = vadd.f32 %v4230_v45, %v3885_v63  ;;  %v8675_v34 = vrot.slane %v5968_v54, 1 }
  0xeb   : > { %v3133_v18 = vadd.f32 %v2927_v1, %v2549_v41  ;;  %v1041_v8 = vsel %vm1008_vm1, %v1039_v59, %v8676_v52  ;;  %v2344_v50 = vrot.slane %v2140_v14, 7  ;;  %v8671_v25 = vrot.slane %v5973_v11, 7  ;;  %v1478_v41 = vld [vmem:[#allocation2 + $0xd8] sm:$0xfe] }
  0xec   : > { %v1245_v13 = vadd.f32 %v1041_v8, %v660_v20  ;;  %v5985_v4 = vmul.f32 %v5795_v19, %v5226_v36  ;;  %4501 = vst [vmem:[%s5607_s4 + $0x50] sm:$0xff] %v4437_v39  ;;  %v8992_v24 = vrot.slane %v8991_v3, 1  ;;  %v2928_v47 = vrot.slane %v2724_v2, 1  ;;  %v8993_v8 = vld [vmem:[#allocation21_spill] sm:$0xff] }
  0xed   : > { %v3718_v45 = vadd.f32 %v3512_v32, %v3133_v18  ;;  %v3309_v61 = vmul.f32 %v5230_v38, %v3205_v28  ;;  %v1762_v62 = vsel %vm1729_vm2, %v1760_v51, %v8675_v34  ;;  %v6000_v6 = vmul.f32 %v5230_v38, %v5980_v48  ;;  %v514_v32 = vld [vmem:[%s5076_s21 + $0x68] sm:$0xff] }
  0xee   : > { %v4232_v58 = vsel %vm1729_vm2, %v8992_v24, %v4231_v15  ;;  %v1413_v1 = vadd.f32 %v1349_v43, %v1245_v13  ;;  %v8670_v53 = vrot.slane %v5985_v4, 1  ;;  %v2346_v15 = vsel %vm1008_vm1, %v2344_v50, %v8671_v25  ;;  %v2037_v13 = vld [vmem:[#allocation2 + $0x108] sm:$0x80]  ;;  %v2621_v50 = vld [vmem:[#allocation2 + $0x118] sm:$0xfe] }
  0xef   : > { %v3886_v26 = vadd.f32 %v3822_v46, %v3718_v45  ;;  %v3513_v57 = vrot.slane %v3309_v61, 7  ;;  %v4029_v20 = vmul.f32 %v5480_v7, %v3951_v21  ;;  %v8669_v43 = vrot.slane %v6000_v6, 7 }
  0xf0   : > { %v1966_v59 = vadd.f32 %v1762_v62, %v1413_v1  ;;  %v3823_v17 = vmul.f32 %v8966_v33, %v5980_v48  ;;  %v6012_v63 = vmul.f32 %v5480_v7, %v5992_v27  ;;  %v2930_v51 = vsel %vm1729_vm2, %v2928_v47, %v8670_v53  ;;  %v8994_v1 = vld [vmem:[#allocation23_spill] sm:$0xff] }
  0xf1   : > { %v4438_v46 = vadd.f32 %v4232_v58, %v3886_v26  ;;  %v586_v14 = vmul.f32 %v8967_v16, %v514_v32  ;;  %v835_v2 = vmul.f32 %v5188_v23, %v731_v12  ;;  %v3515_v39 = vsel %vm1008_vm1, %v3513_v57, %v8669_v43  ;;  %v8995_v26 = vld [vmem:[#allocation39_spill] sm:$0xff] }
  0xf2   : > { %v2550_v28 = vadd.f32 %v2346_v15, %v1966_v59  ;;  %v4233_v18 = vrot.slane %v4029_v20, 1  ;;  %v6024_v7 = vmul.f32 %v8993_v8, %v5188_v23  ;;  %v8674_v21 = vrot.slane %v6012_v63, 1  ;;  %v3206_v20 = vld [vmem:[#allocation2 + $0x148] sm:$0x80]  ;;  %v515_v43 = vld [vmem:[%s5076_s21 + $0x70] sm:$0xff] }
  0xf3   : > { %4502 = vst [vmem:[%s5607_s4 + $0x58] sm:$0xff] %v4438_v46  ;;  %v661_v45 = vadd.f32 %v8970_v55, %v586_v14  ;;  %v1042_v3 = vrot.slane %v835_v2, 7  ;;  %v1556_v24 = vmul.f32 %v5208_v30, %v1478_v41  ;;  %v1350_v61 = vmul.f32 %v8993_v8, %v8972_v60  ;;  %v6051_v14 = vld [vmem:[#allocation2 + $0x158] sm:$0xff] }
  0xf4   : > { %v3134_v58 = vadd.f32 %v2930_v51, %v2550_v28  ;;  %v8668_v47 = vrot.slane %v6024_v7, 7  ;;  %v6035_v62 = vmul.f32 %v8994_v1, %v5208_v30  ;;  %v2141_v12 = vmul.f32 %v5224_v35, %v2037_v13  ;;  %8996 = vst [vmem:[#allocation20_spill] sm:$0xff] %v6051_v14  ;;  %v3952_v13 = vld [vmem:[#allocation2 + $0x158] sm:$0xfe] }
  0xf5   : > { %v1763_v32 = vrot.slane %v1556_v24, 1  ;;  %v6040_v15 = vmul.f32 %v8995_v26, %v5224_v35  ;;  %v2725_v57 = vmul.f32 %v5228_v37, %v2621_v50  ;;  %v6049_v51 = vmul.f32 %v5864_v5, %v5228_v37 }
  0xf6   : > { %v3719_v59 = vadd.f32 %v3515_v39, %v3134_v58  ;;  %v1044_v41 = vsel %vm1008_vm1, %v1042_v3, %v8668_v47  ;;  %v8673_v46 = vrot.slane %v6035_v62, 1  ;;  %v4235_v2 = vsel %vm1729_vm2, %v4233_v18, %v8674_v21  ;;  %v6059_v47 = vld [vmem:[#allocation2 + $0x168] sm:$0xff] }
  0xf7   : > { %v1246_v28 = vadd.f32 %v1044_v41, %v661_v45  ;;  %v2347_v8 = vrot.slane %v2141_v12, 7  ;;  %v8672_v39 = vrot.slane %v6040_v15, 7  ;;  %v2931_v24 = vrot.slane %v2725_v57, 1  ;;  %8997 = vst [vmem:[#allocation26_spill] sm:$0xff] %v6059_v47  ;;  %v734_v45 = vld [vmem:[#allocation2 + $0xe0] sm:$0x7f] }
  0xf8   : > { %v3887_v50 = vadd.f32 %v3823_v17, %v3719_v59  ;;  %v8679_v3 = vrot.slane %v6049_v51, 1  ;;  %v3310_v58 = vmul.f32 %v5244_v42, %v3206_v20  ;;  %v1765_v25 = vsel %vm1729_vm2, %v1763_v32, %v8673_v46  ;;  %v1479_v12 = vld [vmem:[#allocation2 + $0xf0] sm:$0x1]  ;;  %v6077_v32 = vld [vmem:[%s8609_s1 + $0x18] ss:$0 sm:$0xff] }
  0xf9   : > { %v1414_v53 = vadd.f32 %v1350_v61, %v1246_v28  ;;  %v2349_v18 = vsel %vm1008_vm1, %v2347_v8, %v8672_v39  ;;  %v6070_v17 = vmul.f32 %v5244_v42, %v6051_v14  ;;  %v3824_v61 = vmul.f32 %v8977_v10, %v6051_v14 }
  0xfa   : > { %v4439_v57 = vadd.f32 %v4235_v2, %v3887_v50  ;;  %v3516_v20 = vrot.slane %v3310_v58, 7  ;;  %v4030_v59 = vmul.f32 %v6077_v32, %v3952_v13  ;;  %v6083_v8 = vmul.f32 %v6077_v32, %v6059_v47  ;;  %v2040_v50 = vld [vmem:[#allocation2 + $0x120] sm:$0x7f]  ;;  %v2624_v58 = vld [vmem:[#allocation2 + $0x130] sm:$0x1] }
  0xfb   : > { %v1967_v41 = vadd.f32 %v1765_v25, %v1414_v53  ;;  %v587_v2 = vmul.f32 %v8976_v49, %v515_v43  ;;  %v2933_v39 = vsel %vm1729_vm2, %v2931_v24, %v8679_v3  ;;  %v838_v21 = vmul.f32 %v5186_v22, %v734_v45  ;;  %v3209_v53 = vld [vmem:[#allocation2 + $0x160] sm:$0x7f] }
  0xfc   : > { %4503 = vst [vmem:[%s5607_s4 + $0x60] sm:$0xff] %v4439_v57  ;;  %v4236_v46 = vrot.slane %v4030_v59, 1  ;;  %v1559_v25 = vmul.f32 %v5206_v29, %v1479_v12  ;;  %v8682_v34 = vrot.slane %v6083_v8, 1  ;;  %v1351_v43 = vmul.f32 %v5768_v44, %v8963_v56  ;;  %v3953_v59 = vld [vmem:[#allocation2 + $0x170] sm:$0x1] }
  0xfd   : > { %v2551_v13 = vadd.f32 %v2349_v18, %v1967_v41  ;;  %v662_v52 = vadd.f32 %v8978_v0, %v587_v2  ;;  %v1045_v57 = vrot.slane %v838_v21, 7  ;;  %v2144_v14 = vmul.f32 %v5210_v31, %v2040_v50  ;;  %v516_v2 = vld [vmem:[%s5076_s21 + $0x78] sm:$0xff]  ;;  %v735_v44 = vld [vmem:[#allocation2 + $0xe8] sm:$0x7f] }
  0xfe   : > { %v1766_v28 = vrot.slane %v1559_v25, 1  ;;  %v2728_v24 = vmul.f32 %v5226_v36, %v2624_v58  ;;  %v8998_v3 = vrot.slane %v6070_v17, 7  ;;  %v4238_v18 = vsel %vm1729_vm2, %v4236_v46, %v8682_v34  ;;  %v6114_v46 = vld [vmem:[%s8609_s1 + $0x10] ss:$0 sm:$0xff] }
  0xff   : > { %v3135_v45 = vadd.f32 %v2933_v39, %v2551_v13  ;;  %v3313_v41 = vmul.f32 %v5230_v38, %v3209_v53  ;;  %v8999_v21 = vrot.slane %v5959_v9, 7  ;;  %v2350_v25 = vrot.slane %v2144_v14, 7  ;;  %v1480_v53 = vld [vmem:[#allocation2 + $0xf8] sm:$0x1] }
 0x100   : > { %v3518_v12 = vsel %vm1008_vm1, %v3516_v20, %v8998_v3  ;;  %v2934_v58 = vrot.slane %v2728_v24, 1  ;;  %v3825_v39 = vmul.f32 %v8966_v33, %v5992_v27  ;;  %v4033_v20 = vmul.f32 %v6114_v46, %v3953_v59 }
 0x101   : > { %v1046_v50 = vsel %vm1008_vm1, %v8999_v21, %v1045_v57  ;;  %v3720_v13 = vadd.f32 %v3518_v12, %v3135_v45  ;;  %v3519_v3 = vrot.slane %v3313_v41, 7  ;;  %v9000_v9 = vrot.slane %v5968_v54, 1  ;;  %v2041_v12 = vld [vmem:[#allocation2 + $0x128] sm:$0x7f]  ;;  %v2625_v54 = vld [vmem:[#allocation2 + $0x138] sm:$0x1] }
 0x102   : > { %v1247_v5 = vadd.f32 %v1046_v50, %v662_v52  ;;  %v9001_v14 = vrot.slane %v5973_v11, 7  ;;  %v588_v45 = vmul.f32 %v8967_v16, %v516_v2  ;;  %v839_v52 = vmul.f32 %v5188_v23, %v735_v44 }
 0x103   : > { %v1767_v57 = vsel %vm1729_vm2, %v9000_v9, %v1766_v28  ;;  %v3888_v41 = vadd.f32 %v3824_v61, %v3720_v13  ;;  %v9002_v50 = vrot.slane %v5985_v4, 1  ;;  %v4239_v34 = vrot.slane %v4033_v20, 1  ;;  %v3210_v28 = vld [vmem:[#allocation2 + $0x168] sm:$0x7f] }
 0x104   : > { %v2351_v24 = vsel %vm1008_vm1, %v9001_v14, %v2350_v25  ;;  %v1415_v21 = vadd.f32 %v1351_v43, %v1247_v5  ;;  %v9003_v11 = vrot.slane %v6000_v6, 7  ;;  %v663_v2 = vadd.f32 %v8970_v55, %v588_v45  ;;  %v517_v45 = vld [vmem:[%s5076_s21 + $0x80] sm:$0xff] }
 0x105   : > { %v2935_v59 = vsel %vm1729_vm2, %v9002_v50, %v2934_v58  ;;  %v1047_v9 = vrot.slane %v839_v52, 7  ;;  %v1560_v44 = vmul.f32 %v5208_v30, %v1480_v53  ;;  %v4440_v61 = vadd.f32 %v4238_v18, %v3888_v41  ;;  %v3954_v58 = vld [vmem:[#allocation2 + $0x178] sm:$0x1] }
 0x106   : > { %v3520_v25 = vsel %vm1008_vm1, %v9003_v11, %v3519_v3  ;;  %v1968_v5 = vadd.f32 %v1767_v57, %v1415_v21  ;;  %v1352_v4 = vmul.f32 %v8994_v1, %v8972_v60  ;;  %v2145_v43 = vmul.f32 %v5224_v35, %v2041_v12  ;;  %v736_v12 = vld [vmem:[#allocation2 + $0x100] sm:$0x80] }
 0x107   : > { %v9004_v13 = vrot.slane %v6024_v7, 7  ;;  %v1768_v6 = vrot.slane %v1560_v44, 1  ;;  %v2729_v3 = vmul.f32 %v5228_v37, %v2625_v54  ;;  %v3314_v14 = vmul.f32 %v5244_v42, %v3210_v28  ;;  %4504 = vst [vmem:[%s5607_s4 + $0x68] sm:$0xff] %v4440_v61 }
 0x108   : > { %v2552_v53 = vadd.f32 %v2351_v24, %v1968_v5  ;;  %v9005_v18 = vrot.slane %v6012_v63, 1  ;;  %v2352_v52 = vrot.slane %v2145_v43, 7  ;;  %v3826_v7 = vmul.f32 %v8977_v10, %v6059_v47 }
 0x109   : > { %v1048_v20 = vsel %vm1008_vm1, %v9004_v13, %v1047_v9  ;;  %v2936_v41 = vrot.slane %v2729_v3, 1  ;;  %v3521_v21 = vrot.slane %v3314_v14, 7  ;;  %v4034_v50 = vmul.f32 %v6077_v32, %v3954_v58  ;;  %v1481_v9 = vld [vmem:[#allocation2 + $0x110] sm:$0xfe] }
 0x10a   : > { %v4240_v57 = vsel %vm1729_vm2, %v9005_v18, %v4239_v34  ;;  %v1248_v1 = vadd.f32 %v1048_v20, %v663_v2  ;;  %v3136_v54 = vadd.f32 %v2935_v59, %v2552_v53  ;;  %v9006_v28 = vrot.slane %v6035_v62, 1  ;;  %v2626_v20 = vld [vmem:[#allocation2 + $0x150] sm:$0xfe] }
 0x10b   : > { %v589_v63 = vmul.f32 %v8976_v49, %v517_v45  ;;  %v9007_v34 = vrot.slane %v6040_v15, 7  ;;  %v9008_v44 = vrot.slane %v6049_v51, 1  ;;  %v9009_v5 = vrot.slane %v6070_v17, 7  ;;  %v2042_v15 = vld [vmem:[#allocation2 + $0x140] sm:$0x80] }
 0x10c   : > { %v1416_v11 = vadd.f32 %v1352_v4, %v1248_v1  ;;  %v1769_v24 = vsel %vm1729_vm2, %v9006_v28, %v1768_v6  ;;  %v840_v4 = vmul.f32 %v5186_v22, %v736_v12  ;;  %v3721_v62 = vadd.f32 %v3520_v25, %v3136_v54  ;;  %v3211_v12 = vld [vmem:[#allocation2 + $0x180] sm:$0x80]  ;;  %v6186_v54 = vld [vmem:[#allocation2 + $0x190] sm:$0xff] }
 0x10d   : > { %v2353_v2 = vsel %vm1008_vm1, %v9007_v34, %v2352_v52  ;;  %v2937_v61 = vsel %vm1729_vm2, %v9008_v44, %v2936_v41  ;;  %v3522_v59 = vsel %vm1008_vm1, %v9009_v5, %v3521_v21  ;;  %v4241_v58 = vrot.slane %v4034_v50, 1  ;;  %v6198_v5 = vld [vmem:[#allocation2 + $0x1a0] sm:$0xff] }
 0x10e   : > { %v1969_v43 = vadd.f32 %v1769_v24, %v1416_v11  ;;  %v6165_v13 = vmul.f32 %v5778_v40, %v5186_v22  ;;  %v664_v6 = vadd.f32 %v8978_v0, %v589_v63  ;;  %v1049_v51 = vrot.slane %v840_v4, 7 }
 0x10f   : > { %v1353_v3 = vmul.f32 %v5778_v40, %v8963_v56  ;;  %v1561_v17 = vmul.f32 %v5206_v29, %v1481_v9  ;;  %v3889_v14 = vadd.f32 %v3825_v39, %v3721_v62  ;;  %v6174_v53 = vmul.f32 %v5795_v19, %v5206_v29  ;;  %v3955_v9 = vld [vmem:[#allocation2 + $0x190] sm:$0xfe] }
 0x110   : > { %v2553_v45 = vadd.f32 %v2353_v2, %v1969_v43  ;;  %v8691_v25 = vrot.slane %v6165_v13, 7  ;;  %v2146_v1 = vmul.f32 %v5210_v31, %v2042_v15  ;;  %v6179_v52 = vmul.f32 %v5980_v48, %v5210_v31 }
 0x111   : > { %v1770_v18 = vrot.slane %v1561_v17, 1  ;;  %v2730_v40 = vmul.f32 %v5226_v36, %v2626_v20  ;;  %v4441_v41 = vadd.f32 %v4240_v57, %v3889_v14  ;;  %v8687_v50 = vrot.slane %v6174_v53, 1 }
 0x112   : > { %v3137_v39 = vadd.f32 %v2937_v61, %v2553_v45  ;;  %v1051_v21 = vsel %vm1008_vm1, %v1049_v51, %v8691_v25  ;;  %v2354_v28 = vrot.slane %v2146_v1, 7  ;;  %v8686_v24 = vrot.slane %v6179_v52, 7 }
 0x113   : > { %v1249_v11 = vadd.f32 %v1051_v21, %v664_v6  ;;  %v6191_v63 = vmul.f32 %v5992_v27, %v5226_v36  ;;  %4505 = vst [vmem:[%s5607_s4 + $0x70] sm:$0xff] %v4441_v41  ;;  %v9010_v34 = vrot.slane %v6083_v8, 1  ;;  %v2938_v44 = vrot.slane %v2730_v40, 1  ;;  %v737_v8 = vld [vmem:[#allocation2 + $0x108] sm:$0x80] }
 0x114   : > { %v3722_v57 = vadd.f32 %v3522_v59, %v3137_v39  ;;  %v3315_v61 = vmul.f32 %v5230_v38, %v3211_v12  ;;  %v1772_v62 = vsel %vm1729_vm2, %v1770_v18, %v8687_v50  ;;  %v6206_v15 = vmul.f32 %v5230_v38, %v6186_v54  ;;  %v518_v59 = vld [vmem:[%s5076_s21 + $0x88] sm:$0xff]  ;;  %v1482_v18 = vld [vmem:[#allocation2 + $0x118] sm:$0xfe] }
 0x115   : > { %v4242_v2 = vsel %vm1729_vm2, %v9010_v34, %v4241_v58  ;;  %v1417_v4 = vadd.f32 %v1353_v3, %v1249_v11  ;;  %v8685_v43 = vrot.slane %v6191_v63, 1  ;;  %v2356_v58 = vsel %vm1008_vm1, %v2354_v28, %v8686_v24  ;;  %v2043_v28 = vld [vmem:[#allocation2 + $0x148] sm:$0x80]  ;;  %v519_v24 = vld [vmem:[%s5076_s21 + $0x90] sm:$0xff] }
 0x116   : > { %v3890_v20 = vadd.f32 %v3826_v7, %v3722_v57  ;;  %v3523_v6 = vrot.slane %v3315_v61, 7  ;;  %v4035_v51 = vmul.f32 %v6114_v46, %v3955_v9  ;;  %v8683_v17 = vrot.slane %v6206_v15, 7  ;;  %v2627_v9 = vld [vmem:[#allocation2 + $0x158] sm:$0xfe] }
 0x117   : > { %v1970_v3 = vadd.f32 %v1772_v62, %v1417_v4  ;;  %v3827_v14 = vmul.f32 %v8966_v33, %v6186_v54  ;;  %v6218_v45 = vmul.f32 %v6114_v46, %v6198_v5  ;;  %v2940_v1 = vsel %vm1729_vm2, %v2938_v44, %v8685_v43  ;;  %v6265_v43 = vld [vmem:[#allocation2 + $0x1a8] sm:$0xff] }
 0x118   : > { %v4442_v7 = vadd.f32 %v4242_v2, %v3890_v20  ;;  %v590_v40 = vmul.f32 %v8967_v16, %v518_v59  ;;  %v841_v12 = vmul.f32 %v5188_v23, %v737_v8  ;;  %v3525_v39 = vsel %vm1008_vm1, %v3523_v6, %v8683_v17  ;;  %v9011_v59 = vld [vmem:[#allocation22_spill] sm:$0xff]  ;;  %v9012_v6 = vld [vmem:[#allocation20_spill] sm:$0xff]  ;;  %9014 = vst [vmem:[#allocation27_spill] sm:$0xff] %v6265_v43 }
 0x119   : > { %v2554_v41 = vadd.f32 %v2356_v58, %v1970_v3  ;;  %v4243_v21 = vrot.slane %v4035_v51, 1  ;;  %v6230_v11 = vmul.f32 %v8995_v26, %v5188_v23  ;;  %v8690_v57 = vrot.slane %v6218_v45, 1 }
 0x11a   : > { %4506 = vst [vmem:[%s5607_s4 + $0x78] sm:$0xff] %v4442_v7  ;;  %v665_v34 = vadd.f32 %v8970_v55, %v590_v40  ;;  %v1052_v2 = vrot.slane %v841_v12, 7  ;;  %v1562_v44 = vmul.f32 %v5208_v30, %v1482_v18  ;;  %v1354_v62 = vmul.f32 %v8995_v26, %v8972_v60  ;;  %v3212_v18 = vld [vmem:[#allocation2 + $0x188] sm:$0x80]  ;;  %v6257_v12 = vld [vmem:[#allocation2 + $0x198] sm:$0xff] }
 0x11b   : > { %v3138_v61 = vadd.f32 %v2940_v1, %v2554_v41  ;;  %v8684_v4 = vrot.slane %v6230_v11, 7  ;;  %v6241_v8 = vmul.f32 %v9011_v59, %v5208_v30  ;;  %v2147_v58 = vmul.f32 %v5224_v35, %v2043_v28  ;;  %9013 = vst [vmem:[#allocation30_spill] sm:$0xff] %v6257_v12 }
 0x11c   : > { %v1773_v20 = vrot.slane %v1562_v44, 1  ;;  %v6246_v51 = vmul.f32 %v9012_v6, %v5224_v35  ;;  %v2731_v3 = vmul.f32 %v5228_v37, %v2627_v9  ;;  %v6255_v40 = vmul.f32 %v6059_v47, %v5228_v37  ;;  %v3956_v44 = vld [vmem:[#allocation2 + $0x198] sm:$0xfe] }
 0x11d   : > { %v3723_v7 = vadd.f32 %v3525_v39, %v3138_v61  ;;  %v1054_v26 = vsel %vm1008_vm1, %v1052_v2, %v8684_v4  ;;  %v8688_v1 = vrot.slane %v6241_v8, 1  ;;  %v4245_v41 = vsel %vm1729_vm2, %v4243_v21, %v8690_v57  ;;  %v2630_v57 = vld [vmem:[#allocation2 + $0x170] sm:$0x1] }
 0x11e   : > { %v1250_v28 = vadd.f32 %v1054_v26, %v665_v34  ;;  %v2357_v9 = vrot.slane %v2147_v58, 7  ;;  %v8689_v39 = vrot.slane %v6246_v51, 7  ;;  %v2941_v17 = vrot.slane %v2731_v3, 1  ;;  %v740_v58 = vld [vmem:[#allocation2 + $0x120] sm:$0x7f] }
 0x11f   : > { %v3891_v61 = vadd.f32 %v3827_v14, %v3723_v7  ;;  %v8696_v2 = vrot.slane %v6255_v40, 1  ;;  %v3316_v4 = vmul.f32 %v5244_v42, %v3212_v18  ;;  %v1775_v21 = vsel %vm1729_vm2, %v1773_v20, %v8688_v1  ;;  %v1483_v3 = vld [vmem:[#allocation2 + $0x130] sm:$0x1] }
 0x120   : > { %v1418_v50 = vadd.f32 %v1354_v62, %v1250_v28  ;;  %v2359_v34 = vsel %vm1008_vm1, %v2357_v9, %v8689_v39  ;;  %v6276_v14 = vmul.f32 %v5244_v42, %v6257_v12  ;;  %v3828_v62 = vmul.f32 %v8977_v10, %v6257_v12  ;;  %v2046_v39 = vld [vmem:[#allocation2 + $0x160] sm:$0x7f] }
 0x121   : > { %v4443_v18 = vadd.f32 %v4245_v41, %v3891_v61  ;;  %v3526_v7 = vrot.slane %v3316_v4, 7  ;;  %v4036_v26 = vmul.f32 %v6077_v32, %v3956_v44  ;;  %v6284_v1 = vmul.f32 %v6077_v32, %v6265_v43  ;;  %v3215_v44 = vld [vmem:[#allocation2 + $0x1a0] sm:$0x7f] }
 0x122   : > { %v1971_v28 = vadd.f32 %v1775_v21, %v1418_v50  ;;  %v591_v9 = vmul.f32 %v8976_v49, %v519_v24  ;;  %v2943_v4 = vsel %vm1729_vm2, %v2941_v17, %v8696_v2  ;;  %v844_v61 = vmul.f32 %v5186_v22, %v740_v58 }
 0x123   : > { %9015 = vst [vmem:[#allocation28_spill] sm:$0xff] %v6284_v1  ;;  %4507 = vst [vmem:[%s5607_s4 + $0x80] sm:$0xff] %v4443_v18  ;;  %v4246_v41 = vrot.slane %v4036_v26, 1  ;;  %v1565_v50 = vmul.f32 %v5206_v29, %v1483_v3  ;;  %v8698_v25 = vrot.slane %v6284_v1, 1  ;;  %v1355_v24 = vmul.f32 %v5795_v19, %v8963_v56  ;;  %v3957_v26 = vld [vmem:[#allocation2 + $0x1b0] sm:$0x1] }
 0x124   : > { %v2555_v21 = vadd.f32 %v2359_v34, %v1971_v28  ;;  %v666_v20 = vadd.f32 %v8978_v0, %v591_v9  ;;  %v1055_v18 = vrot.slane %v844_v61, 7  ;;  %v2150_v47 = vmul.f32 %v5210_v31, %v2046_v39  ;;  %v520_v9 = vld [vmem:[%s5076_s21 + $0x98] sm:$0xff]  ;;  %v741_v19 = vld [vmem:[#allocation2 + $0x128] sm:$0x7f] }
 0x125   : > { %v1776_v12 = vrot.slane %v1565_v50, 1  ;;  %v2734_v17 = vmul.f32 %v5226_v36, %v2630_v57  ;;  %v9016_v2 = vrot.slane %v6276_v14, 7  ;;  %v4248_v34 = vsel %vm1729_vm2, %v4246_v41, %v8698_v25  ;;  %v1484_v1 = vld [vmem:[#allocation2 + $0x138] sm:$0x1] }
 0x126   : > { %v3139_v58 = vadd.f32 %v2943_v4, %v2555_v21  ;;  %v3319_v28 = vmul.f32 %v5230_v38, %v3215_v44  ;;  %v9017_v61 = vrot.slane %v6165_v13, 7  ;;  %v2360_v50 = vrot.slane %v2150_v47, 7 }
 0x127   : > { %v3528_v3 = vsel %vm1008_vm1, %v3526_v7, %v9016_v2  ;;  %v2944_v57 = vrot.slane %v2734_v17, 1  ;;  %v3829_v4 = vmul.f32 %v8966_v33, %v6198_v5  ;;  %v4039_v7 = vmul.f32 %v6114_v46, %v3957_v26  ;;  %v2047_v17 = vld [vmem:[#allocation2 + $0x168] sm:$0x7f] }
 0x128   : > { %v1056_v39 = vsel %vm1008_vm1, %v9017_v61, %v1055_v18  ;;  %v3724_v21 = vadd.f32 %v3528_v3, %v3139_v58  ;;  %v3529_v2 = vrot.slane %v3319_v28, 7  ;;  %v9018_v41 = vrot.slane %v6174_v53, 1  ;;  %v2631_v53 = vld [vmem:[#allocation2 + $0x178] sm:$0x1] }
 0x129   : > { %v1251_v6 = vadd.f32 %v1056_v39, %v666_v20  ;;  %v9019_v25 = vrot.slane %v6179_v52, 7  ;;  %v592_v47 = vmul.f32 %v8967_v16, %v520_v9  ;;  %v845_v18 = vmul.f32 %v5188_v23, %v741_v19  ;;  %v3958_v39 = vld [vmem:[#allocation2 + $0x1b8] sm:$0x1] }
 0x12a   : > { %v1777_v44 = vsel %vm1729_vm2, %v9018_v41, %v1776_v12  ;;  %v3892_v61 = vadd.f32 %v3828_v62, %v3724_v21  ;;  %v9020_v20 = vrot.slane %v6191_v63, 1  ;;  %v4249_v3 = vrot.slane %v4039_v7, 1  ;;  %v3216_v12 = vld [vmem:[#allocation2 + $0x1a8] sm:$0x7f]  ;;  %v521_v7 = vld [vmem:[%s5076_s21 + $0xa0] sm:$0xff] }
 0x12b   : > { %v2361_v13 = vsel %vm1008_vm1, %v9019_v25, %v2360_v50  ;;  %v1419_v58 = vadd.f32 %v1355_v24, %v1251_v6  ;;  %v9021_v52 = vrot.slane %v6206_v15, 7  ;;  %v667_v28 = vadd.f32 %v8970_v55, %v592_v47  ;;  %v742_v47 = vld [vmem:[#allocation2 + $0x140] sm:$0x80] }
 0x12c   : > { %v2945_v26 = vsel %vm1729_vm2, %v9020_v20, %v2944_v57  ;;  %v1057_v9 = vrot.slane %v845_v18, 7  ;;  %v1566_v19 = vmul.f32 %v5208_v30, %v1484_v1  ;;  %v4444_v62 = vadd.f32 %v4248_v34, %v3892_v61 }
 0x12d   : > { %v3530_v25 = vsel %vm1008_vm1, %v9021_v52, %v3529_v2  ;;  %v1972_v6 = vadd.f32 %v1777_v44, %v1419_v58  ;;  %v1356_v63 = vmul.f32 %v9011_v59, %v8972_v60  ;;  %v2151_v24 = vmul.f32 %v5224_v35, %v2047_v17 }
 0x12e   : > { %v9022_v50 = vrot.slane %v6230_v11, 7  ;;  %v1778_v15 = vrot.slane %v1566_v19, 1  ;;  %v2735_v21 = vmul.f32 %v5228_v37, %v2631_v53  ;;  %v3320_v2 = vmul.f32 %v5244_v42, %v3216_v12  ;;  %4508 = vst [vmem:[%s5607_s4 + $0x88] sm:$0xff] %v4444_v62  ;;  %v1485_v12 = vld [vmem:[#allocation2 + $0x150] sm:$0xfe] }
 0x12f   : > { %v2556_v1 = vadd.f32 %v2361_v13, %v1972_v6  ;;  %v9023_v34 = vrot.slane %v6218_v45, 1  ;;  %v2362_v44 = vrot.slane %v2151_v24, 7  ;;  %v3830_v11 = vmul.f32 %v8977_v10, %v6265_v43 }
 0x130   : > { %v1058_v57 = vsel %vm1008_vm1, %v9022_v50, %v1057_v9  ;;  %v2946_v18 = vrot.slane %v2735_v21, 1  ;;  %v3531_v17 = vrot.slane %v3320_v2, 7  ;;  %v4040_v61 = vmul.f32 %v6077_v32, %v3958_v39  ;;  %v2632_v39 = vld [vmem:[#allocation2 + $0x190] sm:$0xfe] }
 0x131   : > { %v4250_v41 = vsel %vm1729_vm2, %v9023_v34, %v4249_v3  ;;  %v1252_v59 = vadd.f32 %v1058_v57, %v667_v28  ;;  %v3140_v58 = vadd.f32 %v2945_v26, %v2556_v1  ;;  %v9024_v53 = vrot.slane %v6241_v8, 1 }
 0x132   : > { %v593_v45 = vmul.f32 %v8976_v49, %v521_v7  ;;  %v9025_v3 = vrot.slane %v6246_v51, 7  ;;  %v9026_v28 = vrot.slane %v6255_v40, 1  ;;  %v9027_v19 = vrot.slane %v6276_v14, 7  ;;  %v2048_v51 = vld [vmem:[#allocation2 + $0x180] sm:$0x80] }
 0x133   : > { %v1420_v20 = vadd.f32 %v1356_v63, %v1252_v59  ;;  %v1779_v13 = vsel %vm1729_vm2, %v9024_v53, %v1778_v15  ;;  %v846_v62 = vmul.f32 %v5186_v22, %v742_v47  ;;  %v3725_v8 = vadd.f32 %v3530_v25, %v3140_v58  ;;  %v3217_v59 = vld [vmem:[#allocation2 + $0x1c0] sm:$0x80] }
 0x134   : > { %v2363_v52 = vsel %vm1008_vm1, %v9025_v3, %v2362_v44  ;;  %v2947_v9 = vsel %vm1729_vm2, %v9026_v28, %v2946_v18  ;;  %v3532_v26 = vsel %vm1008_vm1, %v9027_v19, %v3531_v17  ;;  %v4251_v63 = vrot.slane %v4040_v61, 1  ;;  %v6382_v17 = vld [vmem:[#allocation2 + $0x1d0] sm:$0xff] }
 0x135   : > { %v1973_v6 = vadd.f32 %v1779_v13, %v1420_v20  ;;  %v6361_v24 = vmul.f32 %v5980_v48, %v5186_v22  ;;  %v668_v50 = vadd.f32 %v8978_v0, %v593_v45  ;;  %v1059_v40 = vrot.slane %v846_v62, 7  ;;  %v3959_v13 = vld [vmem:[#allocation2 + $0x1d0] sm:$0xfe]  ;;  %v9028_v45 = vld [vmem:[#allocation28_spill] sm:$0xff] }
 0x136   : > { %v1357_v57 = vmul.f32 %v5980_v48, %v8963_v56  ;;  %v1567_v14 = vmul.f32 %v5206_v29, %v1485_v12  ;;  %v3893_v15 = vadd.f32 %v3829_v4, %v3725_v8  ;;  %v6370_v2 = vmul.f32 %v5992_v27, %v5206_v29 }
 0x137   : > { %v2557_v21 = vadd.f32 %v2363_v52, %v1973_v6  ;;  %v8707_v25 = vrot.slane %v6361_v24, 7  ;;  %v2152_v1 = vmul.f32 %v5210_v31, %v2048_v51  ;;  %v6375_v34 = vmul.f32 %v6186_v54, %v5210_v31  ;;  %v743_v51 = vld [vmem:[#allocation2 + $0x148] sm:$0x80] }
 0x138   : > { %v1780_v7 = vrot.slane %v1567_v14, 1  ;;  %v2736_v48 = vmul.f32 %v5226_v36, %v2632_v39  ;;  %v4445_v44 = vadd.f32 %v4250_v41, %v3893_v15  ;;  %v8703_v18 = vrot.slane %v6370_v2, 1 }
 0x139   : > { %v3141_v4 = vadd.f32 %v2947_v9, %v2557_v21  ;;  %v1061_v47 = vsel %vm1008_vm1, %v1059_v40, %v8707_v25  ;;  %v2364_v58 = vrot.slane %v2152_v1, 7  ;;  %v8702_v20 = vrot.slane %v6375_v34, 7  ;;  %v6394_v9 = vld [vmem:[#allocation2 + $0x1e0] sm:$0xff] }
 0x13a   : > { %v1253_v61 = vadd.f32 %v1061_v47, %v668_v50  ;;  %v6387_v53 = vmul.f32 %v6198_v5, %v5226_v36  ;;  %4509 = vst [vmem:[%s5607_s4 + $0x90] sm:$0xff] %v4445_v44  ;;  %v9029_v12 = vrot.slane %v9028_v45, 1  ;;  %v2948_v52 = vrot.slane %v2736_v48, 1 }
 0x13b   : > { %v3726_v41 = vadd.f32 %v3532_v26, %v3141_v4  ;;  %v3321_v28 = vmul.f32 %v5230_v38, %v3217_v59  ;;  %v1782_v62 = vsel %vm1729_vm2, %v1780_v7, %v8703_v18  ;;  %v6402_v6 = vmul.f32 %v5230_v38, %v6382_v17  ;;  %v522_v26 = vld [vmem:[%s5076_s21 + $0xa8] sm:$0xff]  ;;  %v1486_v7 = vld [vmem:[#allocation2 + $0x158] sm:$0xfe] }
 0x13c   : > { %v4252_v3 = vsel %vm1729_vm2, %v9029_v12, %v4251_v63  ;;  %v1421_v19 = vadd.f32 %v1357_v57, %v1253_v61  ;;  %v8701_v8 = vrot.slane %v6387_v53, 1  ;;  %v2366_v63 = vsel %vm1008_vm1, %v2364_v58, %v8702_v20  ;;  %v9030_v61 = vld [vmem:[#allocation20_spill] sm:$0xff]  ;;  %v523_v20 = vld [vmem:[%s5076_s21 + $0xb0] sm:$0xff] }
 0x13d   : > { %v3894_v39 = vadd.f32 %v3830_v11, %v3726_v41  ;;  %v3533_v50 = vrot.slane %v3321_v28, 7  ;;  %v4041_v40 = vmul.f32 %v6114_v46, %v3959_v13  ;;  %v8699_v14 = vrot.slane %v6402_v6, 7  ;;  %v2049_v13 = vld [vmem:[#allocation2 + $0x188] sm:$0x80]  ;;  %v2633_v41 = vld [vmem:[#allocation2 + $0x198] sm:$0xfe] }
 0x13e   : > { %v1974_v57 = vadd.f32 %v1782_v62, %v1421_v19  ;;  %v3831_v15 = vmul.f32 %v8966_v33, %v6382_v17  ;;  %v6414_v21 = vmul.f32 %v6114_v46, %v6394_v9  ;;  %v2950_v1 = vsel %vm1729_vm2, %v2948_v52, %v8701_v8  ;;  %v6461_v8 = vld [vmem:[#allocation2 + $0x1e8] sm:$0xff] }
 0x13f   : > { %v4446_v11 = vadd.f32 %v4252_v3, %v3894_v39  ;;  %v594_v48 = vmul.f32 %v8967_v16, %v522_v26  ;;  %v847_v59 = vmul.f32 %v5188_v23, %v743_v51  ;;  %v3535_v4 = vsel %vm1008_vm1, %v3533_v50, %v8699_v14  ;;  %v9031_v26 = vld [vmem:[#allocation26_spill] sm:$0xff]  ;;  %9034 = vst [vmem:[#allocation17_spill] sm:$0xff] %v6461_v8 }
 0x140   : > { %v2558_v44 = vadd.f32 %v2366_v63, %v1974_v57  ;;  %v4253_v47 = vrot.slane %v4041_v40, 1  ;;  %v6426_v58 = vmul.f32 %v9030_v61, %v5188_v23  ;;  %v8706_v45 = vrot.slane %v6414_v21, 1  ;;  %v9032_v50 = vld [vmem:[#allocation30_spill] sm:$0xff] }
 0x141   : > { %4510 = vst [vmem:[%s5607_s4 + $0x98] sm:$0xff] %v4446_v11  ;;  %v669_v12 = vadd.f32 %v8970_v55, %v594_v48  ;;  %v1062_v3 = vrot.slane %v847_v59, 7  ;;  %v1568_v52 = vmul.f32 %v5208_v30, %v1486_v7  ;;  %v1358_v62 = vmul.f32 %v9030_v61, %v8972_v60  ;;  %v3218_v7 = vld [vmem:[#allocation2 + $0x1c8] sm:$0x80] }
 0x142   : > { %v3142_v28 = vadd.f32 %v2950_v1, %v2558_v44  ;;  %v8700_v19 = vrot.slane %v6426_v58, 7  ;;  %v6437_v51 = vmul.f32 %v9031_v26, %v5208_v30  ;;  %v2153_v63 = vmul.f32 %v5224_v35, %v2049_v13  ;;  %v6453_v44 = vld [vmem:[#allocation2 + $0x1d8] sm:$0xff] }
 0x143   : > { %v1783_v39 = vrot.slane %v1568_v52, 1  ;;  %v6442_v40 = vmul.f32 %v9032_v50, %v5224_v35  ;;  %v2737_v57 = vmul.f32 %v5228_v37, %v2633_v41  ;;  %v6451_v59 = vmul.f32 %v6265_v43, %v5228_v37  ;;  %9033 = vst [vmem:[#allocation29_spill] sm:$0xff] %v6453_v44  ;;  %v3960_v52 = vld [vmem:[#allocation2 + $0x1d8] sm:$0xfe] }
 0x144   : > { %v3727_v11 = vadd.f32 %v3535_v4, %v3142_v28  ;;  %v1064_v1 = vsel %vm1008_vm1, %v1062_v3, %v8700_v19  ;;  %v8704_v48 = vrot.slane %v6437_v51, 1  ;;  %v4255_v61 = vsel %vm1729_vm2, %v4253_v47, %v8706_v45  ;;  %v2636_v45 = vld [vmem:[#allocation2 + $0x1b0] sm:$0x1] }
 0x145   : > { %v1254_v13 = vadd.f32 %v1064_v1, %v669_v12  ;;  %v2367_v41 = vrot.slane %v2153_v63, 7  ;;  %v8705_v4 = vrot.slane %v6442_v40, 7  ;;  %v2951_v14 = vrot.slane %v2737_v57, 1  ;;  %v746_v63 = vld [vmem:[#allocation2 + $0x160] sm:$0x7f] }
 0x146   : > { %v3895_v28 = vadd.f32 %v3831_v15, %v3727_v11  ;;  %v8712_v3 = vrot.slane %v6451_v59, 1  ;;  %v3322_v19 = vmul.f32 %v5244_v42, %v3218_v7  ;;  %v1785_v47 = vsel %vm1729_vm2, %v1783_v39, %v8704_v48  ;;  %v1487_v57 = vld [vmem:[#allocation2 + $0x170] sm:$0x1] }
 0x147   : > { %v1422_v18 = vadd.f32 %v1358_v62, %v1254_v13  ;;  %v2369_v12 = vsel %vm1008_vm1, %v2367_v41, %v8705_v4  ;;  %v6472_v15 = vmul.f32 %v5244_v42, %v6453_v44  ;;  %v3832_v62 = vmul.f32 %v8977_v10, %v6453_v44  ;;  %v2052_v4 = vld [vmem:[#allocation2 + $0x1a0] sm:$0x7f] }
 0x148   : > { %v4447_v7 = vadd.f32 %v4255_v61, %v3895_v28  ;;  %v3536_v11 = vrot.slane %v3322_v19, 7  ;;  %v4042_v1 = vmul.f32 %v6077_v32, %v3960_v52  ;;  %v6480_v48 = vmul.f32 %v6077_v32, %v6461_v8  ;;  %v3221_v52 = vld [vmem:[#allocation2 + $0x1e0] sm:$0x7f] }
 0x149   : > { %v1975_v13 = vadd.f32 %v1785_v47, %v1422_v18  ;;  %v595_v41 = vmul.f32 %v8976_v49, %v523_v20  ;;  %v2953_v19 = vsel %vm1729_vm2, %v2951_v14, %v8712_v3  ;;  %v850_v28 = vmul.f32 %v5186_v22, %v746_v63 }
 0x14a   : > { %9035 = vst [vmem:[#allocation31_spill] sm:$0xff] %v6480_v48  ;;  %4511 = vst [vmem:[%s5607_s4 + $0xa0] sm:$0xff] %v4447_v7  ;;  %v4256_v61 = vrot.slane %v4042_v1, 1  ;;  %v1571_v18 = vmul.f32 %v5206_v29, %v1487_v57  ;;  %v8714_v25 = vrot.slane %v6480_v48, 1  ;;  %v1359_v20 = vmul.f32 %v5992_v27, %v8963_v56  ;;  %v3961_v1 = vld [vmem:[#allocation2 + $0x1f0] sm:$0x1] }
 0x14b   : > { %v2559_v47 = vadd.f32 %v2369_v12, %v1975_v13  ;;  %v670_v39 = vadd.f32 %v8978_v0, %v595_v41  ;;  %v1065_v7 = vrot.slane %v850_v28, 7  ;;  %v2156_v43 = vmul.f32 %v5210_v31, %v2052_v4  ;;  %v524_v41 = vld [vmem:[%s5076_s21 + $0xb8] sm:$0xff]  ;;  %v747_v27 = vld [vmem:[#allocation2 + $0x168] sm:$0x7f] }
 0x14c   : > { %v1786_v44 = vrot.slane %v1571_v18, 1  ;;  %v2740_v14 = vmul.f32 %v5226_v36, %v2636_v45  ;;  %v9036_v3 = vrot.slane %v6472_v15, 7  ;;  %v4258_v12 = vsel %vm1729_vm2, %v4256_v61, %v8714_v25  ;;  %v1488_v48 = vld [vmem:[#allocation2 + $0x178] sm:$0x1] }
 0x14d   : > { %v3143_v63 = vadd.f32 %v2953_v19, %v2559_v47  ;;  %v3325_v13 = vmul.f32 %v5230_v38, %v3221_v52  ;;  %v9037_v28 = vrot.slane %v6361_v24, 7  ;;  %v2370_v18 = vrot.slane %v2156_v43, 7 }
 0x14e   : > { %v3538_v57 = vsel %vm1008_vm1, %v3536_v11, %v9036_v3  ;;  %v2954_v45 = vrot.slane %v2740_v14, 1  ;;  %v3833_v19 = vmul.f32 %v8966_v33, %v6394_v9  ;;  %v4045_v11 = vmul.f32 %v6114_v46, %v3961_v1  ;;  %v2053_v14 = vld [vmem:[#allocation2 + $0x1a8] sm:$0x7f] }
 0x14f   : > { %v1066_v4 = vsel %vm1008_vm1, %v9037_v28, %v1065_v7  ;;  %v3728_v47 = vadd.f32 %v3538_v57, %v3143_v63  ;;  %v3539_v3 = vrot.slane %v3325_v13, 7  ;;  %v9038_v61 = vrot.slane %v6370_v2, 1  ;;  %v2637_v2 = vld [vmem:[#allocation2 + $0x1b8] sm:$0x1] }
 0x150   : > { %v1255_v50 = vadd.f32 %v1066_v4, %v670_v39  ;;  %v9039_v25 = vrot.slane %v6375_v34, 7  ;;  %v596_v43 = vmul.f32 %v8967_v16, %v524_v41  ;;  %v851_v7 = vmul.f32 %v5188_v23, %v747_v27  ;;  %v3962_v4 = vld [vmem:[#allocation2 + $0x1f8] sm:$0x1] }
 0x151   : > { %v1787_v52 = vsel %vm1729_vm2, %v9038_v61, %v1786_v44  ;;  %v3896_v28 = vadd.f32 %v3832_v62, %v3728_v47  ;;  %v9040_v39 = vrot.slane %v6387_v53, 1  ;;  %v4259_v57 = vrot.slane %v4045_v11, 1  ;;  %v3222_v44 = vld [vmem:[#allocation2 + $0x1e8] sm:$0x7f]  ;;  %v525_v11 = vld [vmem:[%s5076_s21 + $0xc0] sm:$0xff] }
 0x152   : > { %v2371_v24 = vsel %vm1008_vm1, %v9039_v25, %v2370_v18  ;;  %v1423_v63 = vadd.f32 %v1359_v20, %v1255_v50  ;;  %v9041_v34 = vrot.slane %v6402_v6, 7  ;;  %v671_v13 = vadd.f32 %v8970_v55, %v596_v43  ;;  %v748_v43 = vld [vmem:[#allocation2 + $0x180] sm:$0x80] }
 0x153   : > { %v2955_v1 = vsel %vm1729_vm2, %v9040_v39, %v2954_v45  ;;  %v1067_v41 = vrot.slane %v851_v7, 7  ;;  %v1572_v27 = vmul.f32 %v5208_v30, %v1488_v48  ;;  %v4448_v62 = vadd.f32 %v4258_v12, %v3896_v28 }
 0x154   : > { %v3540_v25 = vsel %vm1008_vm1, %v9041_v34, %v3539_v3  ;;  %v1976_v50 = vadd.f32 %v1787_v52, %v1423_v63  ;;  %v1360_v53 = vmul.f32 %v9031_v26, %v8972_v60  ;;  %v2157_v20 = vmul.f32 %v5224_v35, %v2053_v14 }
 0x155   : > { %v9042_v18 = vrot.slane %v6426_v58, 7  ;;  %v1788_v6 = vrot.slane %v1572_v27, 1  ;;  %v2741_v47 = vmul.f32 %v5228_v37, %v2637_v2  ;;  %v3326_v3 = vmul.f32 %v5244_v42, %v3222_v44  ;;  %4512 = vst [vmem:[%s5607_s4 + $0xa8] sm:$0xff] %v4448_v62  ;;  %v1489_v44 = vld [vmem:[#allocation2 + $0x190] sm:$0xfe] }
 0x156   : > { %v2560_v48 = vadd.f32 %v2371_v24, %v1976_v50  ;;  %v9043_v12 = vrot.slane %v6414_v21, 1  ;;  %v2372_v52 = vrot.slane %v2157_v20, 7  ;;  %v3834_v58 = vmul.f32 %v8977_v10, %v6461_v8  ;;  %v2638_v20 = vld [vmem:[#allocation2 + $0x1d0] sm:$0xfe] }
 0x157   : > { %v1068_v45 = vsel %vm1008_vm1, %v9042_v18, %v1067_v41  ;;  %v2956_v7 = vrot.slane %v2741_v47, 1  ;;  %v3541_v14 = vrot.slane %v3326_v3, 7  ;;  %v4046_v28 = vmul.f32 %v6077_v32, %v3962_v4 }
 0x158   : > { %v4260_v61 = vsel %vm1729_vm2, %v9043_v12, %v4259_v57  ;;  %v1256_v26 = vadd.f32 %v1068_v45, %v671_v13  ;;  %v3144_v63 = vadd.f32 %v2955_v1, %v2560_v48  ;;  %v9044_v2 = vrot.slane %v6437_v51, 1  ;;  %v3223_v12 = vld [vmem:[#allocation2 + $0x200] sm:$0x80] }
 0x159   : > { %v597_v21 = vmul.f32 %v8976_v49, %v525_v11  ;;  %v9045_v57 = vrot.slane %v6442_v40, 7  ;;  %v9046_v13 = vrot.slane %v6451_v59, 1  ;;  %v9047_v27 = vrot.slane %v6472_v15, 7  ;;  %v2054_v40 = vld [vmem:[#allocation2 + $0x1c0] sm:$0x80] }
 0x15a   : > { %v1424_v39 = vadd.f32 %v1360_v53, %v1256_v26  ;;  %v1789_v24 = vsel %vm1729_vm2, %v9044_v2, %v1788_v6  ;;  %v852_v1 = vmul.f32 %v5186_v22, %v748_v43  ;;  %v3729_v51 = vadd.f32 %v3540_v25, %v3144_v63  ;;  %v3963_v2 = vld [vmem:[#allocation2 + $0x210] sm:$0xfe] }
 0x15b   : > { %v2373_v34 = vsel %vm1008_vm1, %v9045_v57, %v2372_v52  ;;  %v2957_v41 = vsel %vm1729_vm2, %v9046_v13, %v2956_v7  ;;  %v3542_v32 = vsel %vm1008_vm1, %v9047_v27, %v3541_v14  ;;  %v4261_v50 = vrot.slane %v4046_v28, 1  ;;  %v6578_v7 = vld [vmem:[#allocation2 + $0x210] sm:$0xff]  ;;  %v6590_v13 = vld [vmem:[#allocation2 + $0x220] sm:$0xff] }
 0x15c   : > { %v1977_v62 = vadd.f32 %v1789_v24, %v1424_v39  ;;  %v6557_v53 = vmul.f32 %v6186_v54, %v5186_v22  ;;  %v672_v4 = vadd.f32 %v8978_v0, %v597_v21  ;;  %v1069_v59 = vrot.slane %v852_v1, 7  ;;  %v9048_v24 = vld [vmem:[#allocation31_spill] sm:$0xff] }
 0x15d   : > { %v1361_v18 = vmul.f32 %v6186_v54, %v8963_v56  ;;  %v1573_v15 = vmul.f32 %v5206_v29, %v1489_v44  ;;  %v3897_v45 = vadd.f32 %v3833_v19, %v3729_v51  ;;  %v6566_v47 = vmul.f32 %v6198_v5, %v5206_v29 }
 0x15e   : > { %v2561_v6 = vadd.f32 %v2373_v34, %v1977_v62  ;;  %v8723_v25 = vrot.slane %v6557_v53, 7  ;;  %v2158_v11 = vmul.f32 %v5210_v31, %v2054_v40  ;;  %v6571_v48 = vmul.f32 %v6382_v17, %v5210_v31  ;;  %v749_v62 = vld [vmem:[#allocation2 + $0x188] sm:$0x80] }
 0x15f   : > { %v1790_v3 = vrot.slane %v1573_v15, 1  ;;  %v2742_v54 = vmul.f32 %v5226_v36, %v2638_v20  ;;  %v4449_v26 = vadd.f32 %v4260_v61, %v3897_v45  ;;  %v8722_v43 = vrot.slane %v6566_v47, 1 }
 0x160   : > { %v3145_v19 = vadd.f32 %v2957_v41, %v2561_v6  ;;  %v1071_v52 = vsel %vm1008_vm1, %v1069_v59, %v8723_v25  ;;  %v2374_v28 = vrot.slane %v2158_v11, 7  ;;  %v8718_v63 = vrot.slane %v6571_v48, 7  ;;  %v1490_v6 = vld [vmem:[#allocation2 + $0x198] sm:$0xfe] }
 0x161   : > { %v1257_v14 = vadd.f32 %v1071_v52, %v672_v4  ;;  %v6583_v39 = vmul.f32 %v6394_v9, %v5226_v36  ;;  %4513 = vst [vmem:[%s5607_s4 + $0xb0] sm:$0xff] %v4449_v26  ;;  %v9049_v21 = vrot.slane %v9048_v24, 1  ;;  %v2958_v57 = vrot.slane %v2742_v54, 1  ;;  %v9050_v52 = vld [vmem:[#allocation30_spill] sm:$0xff] }
 0x162   : > { %v3730_v61 = vadd.f32 %v3542_v32, %v3145_v19  ;;  %v3327_v34 = vmul.f32 %v5230_v38, %v3223_v12  ;;  %v1792_v27 = vsel %vm1729_vm2, %v1790_v3, %v8722_v43  ;;  %v6598_v51 = vmul.f32 %v5230_v38, %v6578_v7  ;;  %v526_v32 = vld [vmem:[%s5076_s21 + $0xc8] sm:$0xff] }
 0x163   : > { %v4262_v44 = vsel %vm1729_vm2, %v9049_v21, %v4261_v50  ;;  %v1425_v41 = vadd.f32 %v1361_v18, %v1257_v14  ;;  %v8717_v1 = vrot.slane %v6583_v39, 1  ;;  %v2376_v50 = vsel %vm1008_vm1, %v2374_v28, %v8718_v63  ;;  %v2055_v14 = vld [vmem:[#allocation2 + $0x1c8] sm:$0x80]  ;;  %v2639_v28 = vld [vmem:[#allocation2 + $0x1d8] sm:$0xfe] }
 0x164   : > { %v3898_v40 = vadd.f32 %v3834_v58, %v3730_v61  ;;  %v3543_v20 = vrot.slane %v3327_v34, 7  ;;  %v4047_v4 = vmul.f32 %v6114_v46, %v3963_v2  ;;  %v8716_v18 = vrot.slane %v6598_v51, 7 }
 0x165   : > { %v1978_v59 = vadd.f32 %v1792_v27, %v1425_v41  ;;  %v3835_v15 = vmul.f32 %v8966_v33, %v6578_v7  ;;  %v6610_v45 = vmul.f32 %v6114_v46, %v6590_v13  ;;  %v2960_v3 = vsel %vm1729_vm2, %v2958_v57, %v8717_v1  ;;  %v9051_v41 = vld [vmem:[#allocation27_spill] sm:$0xff] }
 0x166   : > { %v4450_v58 = vadd.f32 %v4262_v44, %v3898_v40  ;;  %v598_v11 = vmul.f32 %v8967_v16, %v526_v32  ;;  %v853_v54 = vmul.f32 %v5188_v23, %v749_v62  ;;  %v3545_v26 = vsel %vm1008_vm1, %v3543_v20, %v8716_v18  ;;  %v9052_v40 = vld [vmem:[#allocation29_spill] sm:$0xff]  ;;  %v527_v18 = vld [vmem:[%s5076_s21 + $0xd0] sm:$0xff] }
 0x167   : > { %v2562_v12 = vadd.f32 %v2376_v50, %v1978_v59  ;;  %v4263_v19 = vrot.slane %v4047_v4, 1  ;;  %v6622_v46 = vmul.f32 %v9050_v52, %v5188_v23  ;;  %v8721_v2 = vrot.slane %v6610_v45, 1  ;;  %v3224_v4 = vld [vmem:[#allocation2 + $0x208] sm:$0x80] }
 0x168   : > { %4514 = vst [vmem:[%s5607_s4 + $0xb8] sm:$0xff] %v4450_v58  ;;  %v673_v61 = vadd.f32 %v8970_v55, %v598_v11  ;;  %v1072_v24 = vrot.slane %v853_v54, 7  ;;  %v1574_v21 = vmul.f32 %v5208_v30, %v1490_v6  ;;  %v1362_v34 = vmul.f32 %v9050_v52, %v8972_v60  ;;  %v6649_v11 = vld [vmem:[#allocation2 + $0x218] sm:$0xff] }
 0x169   : > { %v3146_v44 = vadd.f32 %v2960_v3, %v2562_v12  ;;  %v8715_v57 = vrot.slane %v6622_v46, 7  ;;  %v6633_v27 = vmul.f32 %v9051_v41, %v5208_v30  ;;  %v2159_v62 = vmul.f32 %v5224_v35, %v2055_v14  ;;  %9053 = vst [vmem:[#allocation32_spill] sm:$0xff] %v6649_v11  ;;  %v3964_v14 = vld [vmem:[#allocation2 + $0x218] sm:$0xfe] }
 0x16a   : > { %v1793_v32 = vrot.slane %v1574_v21, 1  ;;  %v6638_v50 = vmul.f32 %v9052_v40, %v5224_v35  ;;  %v2743_v20 = vmul.f32 %v5228_v37, %v2639_v28  ;;  %v6647_v3 = vmul.f32 %v6461_v8, %v5228_v37 }
 0x16b   : > { %v3731_v59 = vadd.f32 %v3545_v26, %v3146_v44  ;;  %v1074_v6 = vsel %vm1008_vm1, %v1072_v24, %v8715_v57  ;;  %v8720_v58 = vrot.slane %v6633_v27, 1  ;;  %v4265_v54 = vsel %vm1729_vm2, %v4263_v19, %v8721_v2  ;;  %v6657_v57 = vld [vmem:[#allocation2 + $0x228] sm:$0xff] }
 0x16c   : > { %v1258_v12 = vadd.f32 %v1074_v6, %v673_v61  ;;  %v2377_v52 = vrot.slane %v2159_v62, 7  ;;  %v8719_v26 = vrot.slane %v6638_v50, 7  ;;  %v2961_v21 = vrot.slane %v2743_v20, 1  ;;  %9054 = vst [vmem:[#allocation25_spill] sm:$0xff] %v6657_v57  ;;  %v752_v61 = vld [vmem:[#allocation2 + $0x1a0] sm:$0x7f] }
 0x16d   : > { %v3899_v28 = vadd.f32 %v3835_v15, %v3731_v59  ;;  %v8726_v24 = vrot.slane %v6647_v3, 1  ;;  %v3328_v44 = vmul.f32 %v5244_v42, %v3224_v4  ;;  %v1795_v63 = vsel %vm1729_vm2, %v1793_v32, %v8720_v58  ;;  %v1491_v62 = vld [vmem:[#allocation2 + $0x1b0] sm:$0x1]  ;;  %v6675_v32 = vld [vmem:[%s8609_s1 + $0x18] ss:$0 sm:$0xff] }
 0x16e   : > { %v1426_v1 = vadd.f32 %v1362_v34, %v1258_v12  ;;  %v2379_v19 = vsel %vm1008_vm1, %v2377_v52, %v8719_v26  ;;  %v6668_v15 = vmul.f32 %v5244_v42, %v6649_v11  ;;  %v3836_v34 = vmul.f32 %v8977_v10, %v6649_v11 }
 0x16f   : > { %v4451_v20 = vadd.f32 %v4265_v54, %v3899_v28  ;;  %v3546_v4 = vrot.slane %v3328_v44, 7  ;;  %v4048_v59 = vmul.f32 %v6675_v32, %v3964_v14  ;;  %v6681_v52 = vmul.f32 %v6675_v32, %v6657_v57  ;;  %v2058_v28 = vld [vmem:[#allocation2 + $0x1e0] sm:$0x7f]  ;;  %v2642_v44 = vld [vmem:[#allocation2 + $0x1f0] sm:$0x1] }
 0x170   : > { %v1979_v6 = vadd.f32 %v1795_v63, %v1426_v1  ;;  %v599_v54 = vmul.f32 %v8976_v49, %v527_v18  ;;  %v2963_v26 = vsel %vm1729_vm2, %v2961_v21, %v8726_v24  ;;  %v856_v2 = vmul.f32 %v5186_v22, %v752_v61  ;;  %v3227_v1 = vld [vmem:[#allocation2 + $0x220] sm:$0x7f] }
 0x171   : > { %4515 = vst [vmem:[%s5607_s4 + $0xc0] sm:$0xff] %v4451_v20  ;;  %v4266_v58 = vrot.slane %v4048_v59, 1  ;;  %v1577_v63 = vmul.f32 %v5206_v29, %v1491_v62  ;;  %v8729_v43 = vrot.slane %v6681_v52, 1  ;;  %v1363_v18 = vmul.f32 %v6198_v5, %v8963_v56  ;;  %v3965_v59 = vld [vmem:[#allocation2 + $0x230] sm:$0x1] }
 0x172   : > { %v2563_v14 = vadd.f32 %v2379_v19, %v1979_v6  ;;  %v674_v25 = vadd.f32 %v8978_v0, %v599_v54  ;;  %v1075_v20 = vrot.slane %v856_v2, 7  ;;  %v2162_v11 = vmul.f32 %v5210_v31, %v2058_v28  ;;  %v528_v54 = vld [vmem:[%s5076_s21 + $0xd8] sm:$0xff]  ;;  %v753_v5 = vld [vmem:[#allocation2 + $0x1a8] sm:$0x7f] }
 0x173   : > { %v1796_v12 = vrot.slane %v1577_v63, 1  ;;  %v2746_v21 = vmul.f32 %v5226_v36, %v2642_v44  ;;  %v9055_v24 = vrot.slane %v6668_v15, 7  ;;  %v4268_v19 = vsel %vm1729_vm2, %v4266_v58, %v8729_v43  ;;  %v6712_v58 = vld [vmem:[%s8609_s1 + $0x10] ss:$0 sm:$0xff] }
 0x174   : > { %v3147_v61 = vadd.f32 %v2963_v26, %v2563_v14  ;;  %v3331_v6 = vmul.f32 %v5230_v38, %v3227_v1  ;;  %v9056_v2 = vrot.slane %v6557_v53, 7  ;;  %v2380_v63 = vrot.slane %v2162_v11, 7  ;;  %v1492_v1 = vld [vmem:[#allocation2 + $0x1b8] sm:$0x1] }
 0x175   : > { %v3548_v62 = vsel %vm1008_vm1, %v3546_v4, %v9055_v24  ;;  %v2964_v44 = vrot.slane %v2746_v21, 1  ;;  %v3837_v26 = vmul.f32 %v8966_v33, %v6590_v13  ;;  %v4051_v4 = vmul.f32 %v6712_v58, %v3965_v59 }
 0x176   : > { %v1076_v28 = vsel %vm1008_vm1, %v9056_v2, %v1075_v20  ;;  %v3732_v14 = vadd.f32 %v3548_v62, %v3147_v61  ;;  %v3549_v24 = vrot.slane %v3331_v6, 7  ;;  %v9057_v53 = vrot.slane %v6566_v47, 1  ;;  %v2059_v62 = vld [vmem:[#allocation2 + $0x1e8] sm:$0x7f]  ;;  %v2643_v47 = vld [vmem:[#allocation2 + $0x1f8] sm:$0x1] }
 0x177   : > { %v1259_v8 = vadd.f32 %v1076_v28, %v674_v25  ;;  %v9058_v11 = vrot.slane %v6571_v48, 7  ;;  %v600_v61 = vmul.f32 %v8967_v16, %v528_v54  ;;  %v857_v25 = vmul.f32 %v5188_v23, %v753_v5 }
 0x178   : > { %v1797_v20 = vsel %vm1729_vm2, %v9057_v53, %v1796_v12  ;;  %v3900_v6 = vadd.f32 %v3836_v34, %v3732_v14  ;;  %v9059_v28 = vrot.slane %v6583_v39, 1  ;;  %v4269_v43 = vrot.slane %v4051_v4, 1  ;;  %v3228_v12 = vld [vmem:[#allocation2 + $0x228] sm:$0x7f] }
 0x179   : > { %v2381_v21 = vsel %vm1008_vm1, %v9058_v11, %v2380_v63  ;;  %v1427_v2 = vadd.f32 %v1363_v18, %v1259_v8  ;;  %v9060_v48 = vrot.slane %v6598_v51, 7  ;;  %v675_v54 = vadd.f32 %v8970_v55, %v600_v61  ;;  %v529_v61 = vld [vmem:[%s5076_s21 + $0xe0] sm:$0xff] }
 0x17a   : > { %v2965_v59 = vsel %vm1729_vm2, %v9059_v28, %v2964_v44  ;;  %v1077_v53 = vrot.slane %v857_v25, 7  ;;  %v1578_v5 = vmul.f32 %v5208_v30, %v1492_v1  ;;  %v4452_v34 = vadd.f32 %v4268_v19, %v3900_v6  ;;  %v3966_v44 = vld [vmem:[#allocation2 + $0x238] sm:$0x1] }
 0x17b   : > { %v3550_v63 = vsel %vm1008_vm1, %v9060_v48, %v3549_v24  ;;  %v1980_v8 = vadd.f32 %v1797_v20, %v1427_v2  ;;  %v1364_v39 = vmul.f32 %v9051_v41, %v8972_v60  ;;  %v2163_v18 = vmul.f32 %v5224_v35, %v2059_v62  ;;  %v754_v62 = vld [vmem:[#allocation2 + $0x1c0] sm:$0x80] }
 0x17c   : > { %v9061_v14 = vrot.slane %v6622_v46, 7  ;;  %v1798_v51 = vrot.slane %v1578_v5, 1  ;;  %v2747_v24 = vmul.f32 %v5228_v37, %v2643_v47  ;;  %v3332_v11 = vmul.f32 %v5244_v42, %v3228_v12  ;;  %4516 = vst [vmem:[%s5607_s4 + $0xc8] sm:$0xff] %v4452_v34 }
 0x17d   : > { %v2564_v1 = vadd.f32 %v2381_v21, %v1980_v8  ;;  %v9062_v19 = vrot.slane %v6610_v45, 1  ;;  %v2382_v25 = vrot.slane %v2163_v18, 7  ;;  %v3838_v46 = vmul.f32 %v8977_v10, %v6657_v57 }
 0x17e   : > { %v1078_v4 = vsel %vm1008_vm1, %v9061_v14, %v1077_v53  ;;  %v2966_v6 = vrot.slane %v2747_v24, 1  ;;  %v3551_v2 = vrot.slane %v3332_v11, 7  ;;  %v4052_v28 = vmul.f32 %v6675_v32, %v3966_v44  ;;  %v1493_v53 = vld [vmem:[#allocation2 + $0x1d0] sm:$0xfe] }
 0x17f   : > { %v4270_v20 = vsel %vm1729_vm2, %v9062_v19, %v4269_v43  ;;  %v1260_v41 = vadd.f32 %v1078_v4, %v675_v54  ;;  %v3148_v47 = vadd.f32 %v2965_v59, %v2564_v1  ;;  %v9063_v12 = vrot.slane %v6633_v27, 1  ;;  %v2644_v4 = vld [vmem:[#allocation2 + $0x210] sm:$0xfe] }
 0x180   : > { %v601_v45 = vmul.f32 %v8976_v49, %v529_v61  ;;  %v9064_v43 = vrot.slane %v6638_v50, 7  ;;  %v9065_v5 = vrot.slane %v6647_v3, 1  ;;  %v9066_v8 = vrot.slane %v6668_v15, 7  ;;  %v2060_v50 = vld [vmem:[#allocation2 + $0x200] sm:$0x80] }
 0x181   : > { %v1428_v48 = vadd.f32 %v1364_v39, %v1260_v41  ;;  %v1799_v21 = vsel %vm1729_vm2, %v9063_v12, %v1798_v51  ;;  %v858_v39 = vmul.f32 %v5186_v22, %v754_v62  ;;  %v3733_v27 = vadd.f32 %v3550_v63, %v3148_v47  ;;  %v3229_v62 = vld [vmem:[#allocation2 + $0x240] sm:$0x80]  ;;  %v6784_v47 = vld [vmem:[#allocation2 + $0x250] sm:$0xff] }
 0x182   : > { %v2383_v54 = vsel %vm1008_vm1, %v9064_v43, %v2382_v25  ;;  %v2967_v34 = vsel %vm1729_vm2, %v9065_v5, %v2966_v6  ;;  %v3552_v59 = vsel %vm1008_vm1, %v9066_v8, %v3551_v2  ;;  %v4271_v44 = vrot.slane %v4052_v28, 1  ;;  %v6796_v8 = vld [vmem:[#allocation2 + $0x260] sm:$0xff] }
 0x183   : > { %v1981_v18 = vadd.f32 %v1799_v21, %v1428_v48  ;;  %v6763_v14 = vmul.f32 %v6382_v17, %v5186_v22  ;;  %v676_v51 = vadd.f32 %v8978_v0, %v601_v45  ;;  %v1079_v3 = vrot.slane %v858_v39, 7 }
 0x184   : > { %v1365_v24 = vmul.f32 %v6382_v17, %v8963_v56  ;;  %v1579_v15 = vmul.f32 %v5206_v29, %v1493_v53  ;;  %v3901_v11 = vadd.f32 %v3837_v26, %v3733_v27  ;;  %v6772_v1 = vmul.f32 %v6394_v9, %v5206_v29  ;;  %v3967_v53 = vld [vmem:[#allocation2 + $0x250] sm:$0xfe] }
 0x185   : > { %v2565_v61 = vadd.f32 %v2383_v54, %v1981_v18  ;;  %v8738_v63 = vrot.slane %v6763_v14, 7  ;;  %v2164_v41 = vmul.f32 %v5210_v31, %v2060_v50  ;;  %v6777_v25 = vmul.f32 %v6578_v7, %v5210_v31 }
 0x186   : > { %v1800_v19 = vrot.slane %v1579_v15, 1  ;;  %v2748_v17 = vmul.f32 %v5226_v36, %v2644_v4  ;;  %v4453_v6 = vadd.f32 %v4270_v20, %v3901_v11  ;;  %v8734_v28 = vrot.slane %v6772_v1, 1 }
 0x187   : > { %v3149_v26 = vadd.f32 %v2967_v34, %v2565_v61  ;;  %v1081_v2 = vsel %vm1008_vm1, %v1079_v3, %v8738_v63  ;;  %v2384_v12 = vrot.slane %v2164_v41, 7  ;;  %v8733_v21 = vrot.slane %v6777_v25, 7 }
 0x188   : > { %v1261_v48 = vadd.f32 %v1081_v2, %v676_v51  ;;  %v6789_v45 = vmul.f32 %v6590_v13, %v5226_v36  ;;  %4517 = vst [vmem:[%s5607_s4 + $0xd0] sm:$0xff] %v4453_v6  ;;  %v9067_v43 = vrot.slane %v6681_v52, 1  ;;  %v2968_v5 = vrot.slane %v2748_v17, 1  ;;  %v755_v52 = vld [vmem:[#allocation2 + $0x1c8] sm:$0x80] }
 0x189   : > { %v3734_v20 = vadd.f32 %v3552_v59, %v3149_v26  ;;  %v3333_v34 = vmul.f32 %v5230_v38, %v3229_v62  ;;  %v1802_v27 = vsel %vm1729_vm2, %v1800_v19, %v8734_v28  ;;  %v6804_v50 = vmul.f32 %v5230_v38, %v6784_v47  ;;  %v530_v59 = vld [vmem:[%s5076_s21 + $0xe8] sm:$0xff]  ;;  %v1494_v19 = vld [vmem:[#allocation2 + $0x1d8] sm:$0xfe] }
 0x18a   : > { %v4272_v54 = vsel %vm1729_vm2, %v9067_v43, %v4271_v44  ;;  %v1429_v39 = vadd.f32 %v1365_v24, %v1261_v48  ;;  %v8732_v18 = vrot.slane %v6789_v45, 1  ;;  %v2386_v44 = vsel %vm1008_vm1, %v2384_v12, %v8733_v21  ;;  %v2061_v12 = vld [vmem:[#allocation2 + $0x208] sm:$0x80]  ;;  %v531_v21 = vld [vmem:[%s5076_s21 + $0xf0] sm:$0xff] }
 0x18b   : > { %v3902_v4 = vadd.f32 %v3838_v46, %v3734_v20  ;;  %v3553_v51 = vrot.slane %v3333_v34, 7  ;;  %v4053_v3 = vmul.f32 %v6712_v58, %v3967_v53  ;;  %v8730_v15 = vrot.slane %v6804_v50, 7  ;;  %v2645_v53 = vld [vmem:[#allocation2 + $0x218] sm:$0xfe] }
 0x18c   : > { %v1982_v24 = vadd.f32 %v1802_v27, %v1429_v39  ;;  %v3839_v11 = vmul.f32 %v8966_v33, %v6784_v47  ;;  %v6816_v61 = vmul.f32 %v6712_v58, %v6796_v8  ;;  %v2970_v41 = vsel %vm1729_vm2, %v2968_v5, %v8732_v18  ;;  %v6863_v18 = vld [vmem:[#allocation2 + $0x268] sm:$0xff] }
 0x18d   : > { %v4454_v46 = vadd.f32 %v4272_v54, %v3902_v4  ;;  %v602_v17 = vmul.f32 %v8967_v16, %v530_v59  ;;  %v859_v62 = vmul.f32 %v5188_v23, %v755_v52  ;;  %v3555_v26 = vsel %vm1008_vm1, %v3553_v51, %v8730_v15  ;;  %v9068_v59 = vld [vmem:[#allocation17_spill] sm:$0xff]  ;;  %v9069_v51 = vld [vmem:[#allocation32_spill] sm:$0xff]  ;;  %9071 = vst [vmem:[#allocation34_spill] sm:$0xff] %v6863_v18 }
 0x18e   : > { %v2566_v6 = vadd.f32 %v2386_v44, %v1982_v24  ;;  %v4273_v2 = vrot.slane %v4053_v3, 1  ;;  %v6828_v48 = vmul.f32 %v9052_v40, %v5188_v23  ;;  %v8737_v20 = vrot.slane %v6816_v61, 1 }
 0x18f   : > { %4518 = vst [vmem:[%s5607_s4 + $0xd8] sm:$0xff] %v4454_v46  ;;  %v677_v43 = vadd.f32 %v8970_v55, %v602_v17  ;;  %v1082_v54 = vrot.slane %v859_v62, 7  ;;  %v1580_v5 = vmul.f32 %v5208_v30, %v1494_v19  ;;  %v1366_v27 = vmul.f32 %v9052_v40, %v8972_v60  ;;  %v3230_v19 = vld [vmem:[#allocation2 + $0x248] sm:$0x80]  ;;  %v6855_v62 = vld [vmem:[#allocation2 + $0x258] sm:$0xff] }
 0x190   : > { %v3150_v34 = vadd.f32 %v2970_v41, %v2566_v6  ;;  %v8731_v39 = vrot.slane %v6828_v48, 7  ;;  %v6839_v52 = vmul.f32 %v9068_v59, %v5208_v30  ;;  %v2165_v44 = vmul.f32 %v5224_v35, %v2061_v12  ;;  %9070 = vst [vmem:[#allocation35_spill] sm:$0xff] %v6855_v62 }
 0x191   : > { %v1803_v4 = vrot.slane %v1580_v5, 1  ;;  %v6844_v3 = vmul.f32 %v9069_v51, %v5224_v35  ;;  %v2749_v24 = vmul.f32 %v5228_v37, %v2645_v53  ;;  %v6853_v17 = vmul.f32 %v6657_v57, %v5228_v37  ;;  %v3968_v5 = vld [vmem:[#allocation2 + $0x258] sm:$0xfe] }
 0x192   : > { %v3735_v46 = vadd.f32 %v3555_v26, %v3150_v34  ;;  %v1084_v40 = vsel %vm1008_vm1, %v1082_v54, %v8731_v39  ;;  %v8735_v41 = vrot.slane %v6839_v52, 1  ;;  %v4275_v6 = vsel %vm1729_vm2, %v4273_v2, %v8737_v20  ;;  %v2648_v20 = vld [vmem:[#allocation2 + $0x230] sm:$0x1] }
 0x193   : > { %v1262_v12 = vadd.f32 %v1084_v40, %v677_v43  ;;  %v2387_v53 = vrot.slane %v2165_v44, 7  ;;  %v8736_v26 = vrot.slane %v6844_v3, 7  ;;  %v2971_v15 = vrot.slane %v2749_v24, 1  ;;  %v758_v44 = vld [vmem:[#allocation2 + $0x1e0] sm:$0x7f] }
 0x194   : > { %v3903_v34 = vadd.f32 %v3839_v11, %v3735_v46  ;;  %v8743_v54 = vrot.slane %v6853_v17, 1  ;;  %v3334_v39 = vmul.f32 %v5244_v42, %v3230_v19  ;;  %v1805_v2 = vsel %vm1729_vm2, %v1803_v4, %v8735_v41  ;;  %v1495_v24 = vld [vmem:[#allocation2 + $0x1f0] sm:$0x1] }
 0x195   : > { %v1430_v28 = vadd.f32 %v1366_v27, %v1262_v12  ;;  %v2389_v43 = vsel %vm1008_vm1, %v2387_v53, %v8736_v26  ;;  %v6874_v11 = vmul.f32 %v5244_v42, %v6855_v62  ;;  %v3840_v27 = vmul.f32 %v8977_v10, %v6855_v62  ;;  %v2064_v26 = vld [vmem:[#allocation2 + $0x220] sm:$0x7f] }
 0x196   : > { %v4455_v19 = vadd.f32 %v4275_v6, %v3903_v34  ;;  %v3556_v46 = vrot.slane %v3334_v39, 7  ;;  %v4054_v40 = vmul.f32 %v6675_v32, %v3968_v5  ;;  %v6882_v41 = vmul.f32 %v6675_v32, %v6863_v18  ;;  %v3233_v5 = vld [vmem:[#allocation2 + $0x260] sm:$0x7f] }
 0x197   : > { %v1983_v12 = vadd.f32 %v1805_v2, %v1430_v28  ;;  %v603_v53 = vmul.f32 %v8976_v49, %v531_v21  ;;  %v2973_v39 = vsel %vm1729_vm2, %v2971_v15, %v8743_v54  ;;  %v862_v34 = vmul.f32 %v5186_v22, %v758_v44 }
 0x198   : > { %9072 = vst [vmem:[#allocation33_spill] sm:$0xff] %v6882_v41  ;;  %4519 = vst [vmem:[%s5607_s4 + $0xe0] sm:$0xff] %v4455_v19  ;;  %v4276_v6 = vrot.slane %v4054_v40, 1  ;;  %v1583_v28 = vmul.f32 %v5206_v29, %v1495_v24  ;;  %v8745_v63 = vrot.slane %v6882_v41, 1  ;;  %v1367_v21 = vmul.f32 %v6394_v9, %v8963_v56  ;;  %v3969_v40 = vld [vmem:[#allocation2 + $0x270] sm:$0x1] }
 0x199   : > { %v2567_v2 = vadd.f32 %v2389_v43, %v1983_v12  ;;  %v678_v4 = vadd.f32 %v8978_v0, %v603_v53  ;;  %v1085_v19 = vrot.slane %v862_v34, 7  ;;  %v2168_v57 = vmul.f32 %v5210_v31, %v2064_v26  ;;  %v532_v53 = vld [vmem:[%s5076_s21 + $0xf8] sm:$0xff]  ;;  %v759_v9 = vld [vmem:[#allocation2 + $0x1e8] sm:$0x7f] }
 0x19a   : > { %v1806_v62 = vrot.slane %v1583_v28, 1  ;;  %v2752_v15 = vmul.f32 %v5226_v36, %v2648_v20  ;;  %v9073_v54 = vrot.slane %v6874_v11, 7  ;;  %v4278_v43 = vsel %vm1729_vm2, %v4276_v6, %v8745_v63  ;;  %v1496_v41 = vld [vmem:[#allocation2 + $0x1f8] sm:$0x1] }
 0x19b   : > { %v3151_v44 = vadd.f32 %v2973_v39, %v2567_v2  ;;  %v3337_v12 = vmul.f32 %v5230_v38, %v3233_v5  ;;  %v9074_v34 = vrot.slane %v6763_v14, 7  ;;  %v2390_v28 = vrot.slane %v2168_v57, 7 }
 0x19c   : > { %v3558_v24 = vsel %vm1008_vm1, %v3556_v46, %v9073_v54  ;;  %v2974_v20 = vrot.slane %v2752_v15, 1  ;;  %v3841_v39 = vmul.f32 %v8966_v33, %v6796_v8  ;;  %v4057_v46 = vmul.f32 %v6712_v58, %v3969_v40  ;;  %v2065_v15 = vld [vmem:[#allocation2 + $0x228] sm:$0x7f] }
 0x19d   : > { %v1086_v26 = vsel %vm1008_vm1, %v9074_v34, %v1085_v19  ;;  %v3736_v2 = vadd.f32 %v3558_v24, %v3151_v44  ;;  %v3559_v54 = vrot.slane %v3337_v12, 7  ;;  %v9075_v6 = vrot.slane %v6772_v1, 1  ;;  %v2649_v1 = vld [vmem:[#allocation2 + $0x238] sm:$0x1] }
 0x19e   : > { %v1263_v51 = vadd.f32 %v1086_v26, %v678_v4  ;;  %v9076_v63 = vrot.slane %v6777_v25, 7  ;;  %v604_v57 = vmul.f32 %v8967_v16, %v532_v53  ;;  %v863_v19 = vmul.f32 %v5188_v23, %v759_v9  ;;  %v3970_v26 = vld [vmem:[#allocation2 + $0x278] sm:$0x1] }
 0x19f   : > { %v1807_v5 = vsel %vm1729_vm2, %v9075_v6, %v1806_v62  ;;  %v3904_v34 = vadd.f32 %v3840_v27, %v3736_v2  ;;  %v9077_v4 = vrot.slane %v6789_v45, 1  ;;  %v4279_v24 = vrot.slane %v4057_v46, 1  ;;  %v3234_v62 = vld [vmem:[#allocation2 + $0x268] sm:$0x7f]  ;;  %v533_v46 = vld [vmem:[%s5076_s21 + $0x100] sm:$0xff] }
 0x1a0   : > { %v2391_v14 = vsel %vm1008_vm1, %v9076_v63, %v2390_v28  ;;  %v1431_v44 = vadd.f32 %v1367_v21, %v1263_v51  ;;  %v9078_v25 = vrot.slane %v6804_v50, 7  ;;  %v679_v12 = vadd.f32 %v8970_v55, %v604_v57  ;;  %v760_v57 = vld [vmem:[#allocation2 + $0x200] sm:$0x80] }
 0x1a1   : > { %v2975_v40 = vsel %vm1729_vm2, %v9077_v4, %v2974_v20  ;;  %v1087_v53 = vrot.slane %v863_v19, 7  ;;  %v1584_v9 = vmul.f32 %v5208_v30, %v1496_v41  ;;  %v4456_v27 = vadd.f32 %v4278_v43, %v3904_v34 }
 0x1a2   : > { %v3560_v63 = vsel %vm1008_vm1, %v9078_v25, %v3559_v54  ;;  %v1984_v51 = vadd.f32 %v1807_v5, %v1431_v44  ;;  %v1368_v45 = vmul.f32 %v9068_v59, %v8972_v60  ;;  %v2169_v21 = vmul.f32 %v5224_v35, %v2065_v15 }
 0x1a3   : > { %v9079_v28 = vrot.slane %v6828_v48, 7  ;;  %v1808_v50 = vrot.slane %v1584_v9, 1  ;;  %v2753_v2 = vmul.f32 %v5228_v37, %v2649_v1  ;;  %v3338_v54 = vmul.f32 %v5244_v42, %v3234_v62  ;;  %4520 = vst [vmem:[%s5607_s4 + $0xe8] sm:$0xff] %v4456_v27  ;;  %v1497_v62 = vld [vmem:[#allocation2 + $0x210] sm:$0xfe] }
 0x1a4   : > { %v2568_v41 = vadd.f32 %v2391_v14, %v1984_v51  ;;  %v9080_v43 = vrot.slane %v6816_v61, 1  ;;  %v2392_v5 = vrot.slane %v2169_v21, 7  ;;  %v3842_v48 = vmul.f32 %v8977_v10, %v6863_v18 }
 0x1a5   : > { %v1088_v20 = vsel %vm1008_vm1, %v9079_v28, %v1087_v53  ;;  %v2976_v19 = vrot.slane %v2753_v2, 1  ;;  %v3561_v15 = vrot.slane %v3338_v54, 7  ;;  %v4058_v34 = vmul.f32 %v6675_v32, %v3970_v26  ;;  %v2650_v26 = vld [vmem:[#allocation2 + $0x250] sm:$0xfe] }
 0x1a6   : > { %v4280_v6 = vsel %vm1729_vm2, %v9080_v43, %v4279_v24  ;;  %v1264_v59 = vadd.f32 %v1088_v20, %v679_v12  ;;  %v3152_v44 = vadd.f32 %v2975_v40, %v2568_v41  ;;  %v9081_v1 = vrot.slane %v6839_v52, 1 }
 0x1a7   : > { %v605_v61 = vmul.f32 %v8976_v49, %v533_v46  ;;  %v9082_v24 = vrot.slane %v6844_v3, 7  ;;  %v9083_v12 = vrot.slane %v6853_v17, 1  ;;  %v9084_v9 = vrot.slane %v6874_v11, 7  ;;  %v2066_v3 = vld [vmem:[#allocation2 + $0x240] sm:$0x80] }
 0x1a8   : > { %v1432_v4 = vadd.f32 %v1368_v45, %v1264_v59  ;;  %v1809_v14 = vsel %vm1729_vm2, %v9081_v1, %v1808_v50  ;;  %v864_v27 = vmul.f32 %v5186_v22, %v760_v57  ;;  %v3737_v52 = vadd.f32 %v3560_v63, %v3152_v44  ;;  %v3235_v59 = vld [vmem:[#allocation2 + $0x280] sm:$0x80] }
 0x1a9   : > { %v2393_v25 = vsel %vm1008_vm1, %v9082_v24, %v2392_v5  ;;  %v2977_v53 = vsel %vm1729_vm2, %v9083_v12, %v2976_v19  ;;  %v3562_v40 = vsel %vm1008_vm1, %v9084_v9, %v3561_v15  ;;  %v4281_v45 = vrot.slane %v4058_v34, 1  ;;  %v6980_v15 = vld [vmem:[#allocation2 + $0x290] sm:$0xff] }
 0x1aa   : > { %v1985_v51 = vadd.f32 %v1809_v14, %v1432_v4  ;;  %v6959_v21 = vmul.f32 %v6578_v7, %v5186_v22  ;;  %v680_v28 = vadd.f32 %v8978_v0, %v605_v61  ;;  %v1089_v17 = vrot.slane %v864_v27, 7  ;;  %v3971_v14 = vld [vmem:[#allocation2 + $0x290] sm:$0xfe]  ;;  %v9085_v61 = vld [vmem:[#allocation33_spill] sm:$0xff] }
 0x1ab   : > { %v1369_v20 = vmul.f32 %v6578_v7, %v8963_v56  ;;  %v1585_v11 = vmul.f32 %v5206_v29, %v1497_v62  ;;  %v3905_v50 = vadd.f32 %v3841_v39, %v3737_v52  ;;  %v6968_v54 = vmul.f32 %v6590_v13, %v5206_v29 }
 0x1ac   : > { %v2569_v2 = vadd.f32 %v2393_v25, %v1985_v51  ;;  %v8754_v63 = vrot.slane %v6959_v21, 7  ;;  %v2170_v41 = vmul.f32 %v5210_v31, %v2066_v3  ;;  %v6973_v43 = vmul.f32 %v6784_v47, %v5210_v31  ;;  %v761_v3 = vld [vmem:[#allocation2 + $0x208] sm:$0x80] }
 0x1ad   : > { %v1810_v46 = vrot.slane %v1585_v11, 1  ;;  %v2754_v7 = vmul.f32 %v5226_v36, %v2650_v26  ;;  %v4457_v5 = vadd.f32 %v4280_v6, %v3905_v50  ;;  %v8750_v19 = vrot.slane %v6968_v54, 1 }
 0x1ae   : > { %v3153_v39 = vadd.f32 %v2977_v53, %v2569_v2  ;;  %v1091_v57 = vsel %vm1008_vm1, %v1089_v17, %v8754_v63  ;;  %v2394_v44 = vrot.slane %v2170_v41, 7  ;;  %v8749_v4 = vrot.slane %v6973_v43, 7  ;;  %v6992_v53 = vld [vmem:[#allocation2 + $0x2a0] sm:$0xff] }
 0x1af   : > { %v1265_v34 = vadd.f32 %v1091_v57, %v680_v28  ;;  %v6985_v1 = vmul.f32 %v6796_v8, %v5226_v36  ;;  %4521 = vst [vmem:[%s5607_s4 + $0xf0] sm:$0xff] %v4457_v5  ;;  %v9086_v62 = vrot.slane %v9085_v61, 1  ;;  %v2978_v25 = vrot.slane %v2754_v7, 1 }
 0x1b0   : > { %v3738_v6 = vadd.f32 %v3562_v40, %v3153_v39  ;;  %v3339_v12 = vmul.f32 %v5230_v38, %v3235_v59  ;;  %v1812_v27 = vsel %vm1729_vm2, %v1810_v46, %v8750_v19  ;;  %v7000_v51 = vmul.f32 %v5230_v38, %v6980_v15  ;;  %v534_v40 = vld [vmem:[%s5076_s21 + $0x108] sm:$0xff]  ;;  %v1498_v46 = vld [vmem:[#allocation2 + $0x218] sm:$0xfe] }
 0x1b1   : > { %v4282_v24 = vsel %vm1729_vm2, %v9086_v62, %v4281_v45  ;;  %v1433_v9 = vadd.f32 %v1369_v20, %v1265_v34  ;;  %v8748_v52 = vrot.slane %v6985_v1, 1  ;;  %v2396_v45 = vsel %vm1008_vm1, %v2394_v44, %v8749_v4  ;;  %v9087_v34 = vld [vmem:[#allocation32_spill] sm:$0xff]  ;;  %v535_v4 = vld [vmem:[%s5076_s21 + $0x110] sm:$0xff] }
 0x1b2   : > { %v3906_v26 = vadd.f32 %v3842_v48, %v3738_v6  ;;  %v3563_v28 = vrot.slane %v3339_v12, 7  ;;  %v4059_v17 = vmul.f32 %v6712_v58, %v3971_v14  ;;  %v8746_v11 = vrot.slane %v7000_v51, 7  ;;  %v2067_v14 = vld [vmem:[#allocation2 + $0x248] sm:$0x80]  ;;  %v2651_v6 = vld [vmem:[#allocation2 + $0x258] sm:$0xfe] }
 0x1b3   : > { %v1986_v20 = vadd.f32 %v1812_v27, %v1433_v9  ;;  %v3843_v50 = vmul.f32 %v8966_v33, %v6980_v15  ;;  %v7012_v2 = vmul.f32 %v6712_v58, %v6992_v53  ;;  %v2980_v41 = vsel %vm1729_vm2, %v2978_v25, %v8748_v52  ;;  %v7059_v52 = vld [vmem:[#allocation2 + $0x2a8] sm:$0xff] }
 0x1b4   : > { %v4458_v48 = vadd.f32 %v4282_v24, %v3906_v26  ;;  %v606_v7 = vmul.f32 %v8967_v16, %v534_v40  ;;  %v865_v59 = vmul.f32 %v5188_v23, %v761_v3  ;;  %v3565_v39 = vsel %vm1008_vm1, %v3563_v28, %v8746_v11  ;;  %v9088_v40 = vld [vmem:[#allocation25_spill] sm:$0xff]  ;;  %v9089_v28 = vld [vmem:[#allocation35_spill] sm:$0xff]  ;;  %9091 = vst [vmem:[#allocation14_spill] sm:$0xff] %v7059_v52 }
 0x1b5   : > { %v2570_v5 = vadd.f32 %v2396_v45, %v1986_v20  ;;  %v4283_v57 = vrot.slane %v4059_v17, 1  ;;  %v7024_v44 = vmul.f32 %v9087_v34, %v5188_v23  ;;  %v8753_v61 = vrot.slane %v7012_v2, 1 }
 0x1b6   : > { %4522 = vst [vmem:[%s5607_s4 + $0xf8] sm:$0xff] %v4458_v48  ;;  %v681_v62 = vadd.f32 %v8970_v55, %v606_v7  ;;  %v1092_v24 = vrot.slane %v865_v59, 7  ;;  %v1586_v25 = vmul.f32 %v5208_v30, %v1498_v46  ;;  %v1370_v27 = vmul.f32 %v9087_v34, %v8972_v60  ;;  %v3236_v46 = vld [vmem:[#allocation2 + $0x288] sm:$0x80] }
 0x1b7   : > { %v3154_v12 = vadd.f32 %v2980_v41, %v2570_v5  ;;  %v8747_v9 = vrot.slane %v7024_v44, 7  ;;  %v7035_v3 = vmul.f32 %v9088_v40, %v5208_v30  ;;  %v2171_v45 = vmul.f32 %v5224_v35, %v2067_v14  ;;  %v7051_v5 = vld [vmem:[#allocation2 + $0x298] sm:$0xff] }
 0x1b8   : > { %v1813_v26 = vrot.slane %v1586_v25, 1  ;;  %v7040_v17 = vmul.f32 %v9089_v28, %v5224_v35  ;;  %v2755_v20 = vmul.f32 %v5228_v37, %v2651_v6  ;;  %v7049_v59 = vmul.f32 %v6863_v18, %v5228_v37  ;;  %9090 = vst [vmem:[#allocation40_spill] sm:$0xff] %v7051_v5  ;;  %v3972_v25 = vld [vmem:[#allocation2 + $0x298] sm:$0xfe] }
 0x1b9   : > { %v3739_v48 = vadd.f32 %v3565_v39, %v3154_v12  ;;  %v1094_v41 = vsel %vm1008_vm1, %v1092_v24, %v8747_v9  ;;  %v8751_v7 = vrot.slane %v7035_v3, 1  ;;  %v4285_v34 = vsel %vm1729_vm2, %v4283_v57, %v8753_v61  ;;  %v2654_v61 = vld [vmem:[#allocation2 + $0x270] sm:$0x1] }
 0x1ba   : > { %v1266_v14 = vadd.f32 %v1094_v41, %v681_v62  ;;  %v2397_v6 = vrot.slane %v2171_v45, 7  ;;  %v8752_v39 = vrot.slane %v7040_v17, 7  ;;  %v2981_v11 = vrot.slane %v2755_v20, 1  ;;  %v764_v45 = vld [vmem:[#allocation2 + $0x220] sm:$0x7f] }
 0x1bb   : > { %v3907_v12 = vadd.f32 %v3843_v50, %v3739_v48  ;;  %v8759_v24 = vrot.slane %v7049_v59, 1  ;;  %v3340_v9 = vmul.f32 %v5244_v42, %v3236_v46  ;;  %v1815_v57 = vsel %vm1729_vm2, %v1813_v26, %v8751_v7  ;;  %v1499_v20 = vld [vmem:[#allocation2 + $0x230] sm:$0x1] }
 0x1bc   : > { %v1434_v19 = vadd.f32 %v1370_v27, %v1266_v14  ;;  %v2399_v62 = vsel %vm1008_vm1, %v2397_v6, %v8752_v39  ;;  %v7070_v50 = vmul.f32 %v5244_v42, %v7051_v5  ;;  %v3844_v27 = vmul.f32 %v8977_v10, %v7051_v5  ;;  %v2070_v39 = vld [vmem:[#allocation2 + $0x260] sm:$0x7f] }
 0x1bd   : > { %v4459_v46 = vadd.f32 %v4285_v34, %v3907_v12  ;;  %v3566_v48 = vrot.slane %v3340_v9, 7  ;;  %v4060_v41 = vmul.f32 %v6675_v32, %v3972_v25  ;;  %v7078_v7 = vmul.f32 %v6675_v32, %v7059_v52  ;;  %v3239_v25 = vld [vmem:[#allocation2 + $0x2a0] sm:$0x7f] }
 0x1be   : > { %v1987_v14 = vadd.f32 %v1815_v57, %v1434_v19  ;;  %v607_v6 = vmul.f32 %v8976_v49, %v535_v4  ;;  %v2983_v9 = vsel %vm1729_vm2, %v2981_v11, %v8759_v24  ;;  %v868_v12 = vmul.f32 %v5186_v22, %v764_v45 }
 0x1bf   : > { %9092 = vst [vmem:[#allocation37_spill] sm:$0xff] %v7078_v7  ;;  %4523 = vst [vmem:[%s5607_s4 + $0x100] sm:$0xff] %v4459_v46  ;;  %v4286_v34 = vrot.slane %v4060_v41, 1  ;;  %v1589_v19 = vmul.f32 %v5206_v29, %v1499_v20  ;;  %v8761_v63 = vrot.slane %v7078_v7, 1  ;;  %v1371_v4 = vmul.f32 %v6590_v13, %v8963_v56  ;;  %v3973_v41 = vld [vmem:[#allocation2 + $0x2b0] sm:$0x1] }
 0x1c0   : > { %v2571_v57 = vadd.f32 %v2399_v62, %v1987_v14  ;;  %v682_v26 = vadd.f32 %v8978_v0, %v607_v6  ;;  %v1095_v46 = vrot.slane %v868_v12, 7  ;;  %v2174_v18 = vmul.f32 %v5210_v31, %v2070_v39  ;;  %v536_v6 = vld [vmem:[%s5076_s21 + $0x118] sm:$0xff]  ;;  %v765_v13 = vld [vmem:[#allocation2 + $0x228] sm:$0x7f] }
 0x1c1   : > { %v1816_v5 = vrot.slane %v1589_v19, 1  ;;  %v2758_v11 = vmul.f32 %v5226_v36, %v2654_v61  ;;  %v9093_v24 = vrot.slane %v7070_v50, 7  ;;  %v4288_v62 = vsel %vm1729_vm2, %v4286_v34, %v8761_v63  ;;  %v1500_v7 = vld [vmem:[#allocation2 + $0x238] sm:$0x1] }
 0x1c2   : > { %v3155_v45 = vadd.f32 %v2983_v9, %v2571_v57  ;;  %v3343_v14 = vmul.f32 %v5230_v38, %v3239_v25  ;;  %v9094_v12 = vrot.slane %v6959_v21, 7  ;;  %v2400_v19 = vrot.slane %v2174_v18, 7 }
 0x1c3   : > { %v3568_v20 = vsel %vm1008_vm1, %v3566_v48, %v9093_v24  ;;  %v2984_v61 = vrot.slane %v2758_v11, 1  ;;  %v3845_v9 = vmul.f32 %v8966_v33, %v6992_v53  ;;  %v4063_v48 = vmul.f32 %v6712_v58, %v3973_v41  ;;  %v2071_v11 = vld [vmem:[#allocation2 + $0x268] sm:$0x7f] }
 0x1c4   : > { %v1096_v39 = vsel %vm1008_vm1, %v9094_v12, %v1095_v46  ;;  %v3740_v57 = vadd.f32 %v3568_v20, %v3155_v45  ;;  %v3569_v24 = vrot.slane %v3343_v14, 7  ;;  %v9095_v34 = vrot.slane %v6968_v54, 1  ;;  %v2655_v54 = vld [vmem:[#allocation2 + $0x278] sm:$0x1] }
 0x1c5   : > { %v1267_v28 = vadd.f32 %v1096_v39, %v682_v26  ;;  %v9096_v63 = vrot.slane %v6973_v43, 7  ;;  %v608_v18 = vmul.f32 %v8967_v16, %v536_v6  ;;  %v869_v46 = vmul.f32 %v5188_v23, %v765_v13  ;;  %v3974_v39 = vld [vmem:[#allocation2 + $0x2b8] sm:$0x1] }
 0x1c6   : > { %v1817_v25 = vsel %vm1729_vm2, %v9095_v34, %v1816_v5  ;;  %v3908_v12 = vadd.f32 %v3844_v27, %v3740_v57  ;;  %v9097_v26 = vrot.slane %v6985_v1, 1  ;;  %v4289_v20 = vrot.slane %v4063_v48, 1  ;;  %v3240_v5 = vld [vmem:[#allocation2 + $0x2a8] sm:$0x7f]  ;;  %v537_v48 = vld [vmem:[%s5076_s21 + $0x120] sm:$0xff] }
 0x1c7   : > { %v2401_v21 = vsel %vm1008_vm1, %v9096_v63, %v2400_v19  ;;  %v1435_v45 = vadd.f32 %v1371_v4, %v1267_v28  ;;  %v9098_v43 = vrot.slane %v7000_v51, 7  ;;  %v683_v14 = vadd.f32 %v8970_v55, %v608_v18  ;;  %v766_v18 = vld [vmem:[#allocation2 + $0x240] sm:$0x80] }
 0x1c8   : > { %v2985_v41 = vsel %vm1729_vm2, %v9097_v26, %v2984_v61  ;;  %v1097_v6 = vrot.slane %v869_v46, 7  ;;  %v1590_v13 = vmul.f32 %v5208_v30, %v1500_v7  ;;  %v4460_v27 = vadd.f32 %v4288_v62, %v3908_v12 }
 0x1c9   : > { %v3570_v63 = vsel %vm1008_vm1, %v9098_v43, %v3569_v24  ;;  %v1988_v28 = vadd.f32 %v1817_v25, %v1435_v45  ;;  %v1372_v1 = vmul.f32 %v9088_v40, %v8972_v60  ;;  %v2175_v4 = vmul.f32 %v5224_v35, %v2071_v11 }
 0x1ca   : > { %v9099_v19 = vrot.slane %v7024_v44, 7  ;;  %v1818_v51 = vrot.slane %v1590_v13, 1  ;;  %v2759_v57 = vmul.f32 %v5228_v37, %v2655_v54  ;;  %v3344_v24 = vmul.f32 %v5244_v42, %v3240_v5  ;;  %4524 = vst [vmem:[%s5607_s4 + $0x108] sm:$0xff] %v4460_v27  ;;  %v1501_v5 = vld [vmem:[#allocation2 + $0x250] sm:$0xfe] }
 0x1cb   : > { %v2572_v7 = vadd.f32 %v2401_v21, %v1988_v28  ;;  %v9100_v62 = vrot.slane %v7012_v2, 1  ;;  %v2402_v25 = vrot.slane %v2175_v4, 7  ;;  %v3846_v44 = vmul.f32 %v8977_v10, %v7059_v52  ;;  %v2656_v4 = vld [vmem:[#allocation2 + $0x290] sm:$0xfe] }
 0x1cc   : > { %v1098_v61 = vsel %vm1008_vm1, %v9099_v19, %v1097_v6  ;;  %v2986_v46 = vrot.slane %v2759_v57, 1  ;;  %v3571_v11 = vrot.slane %v3344_v24, 7  ;;  %v4064_v12 = vmul.f32 %v6675_v32, %v3974_v39 }
 0x1cd   : > { %v4290_v34 = vsel %vm1729_vm2, %v9100_v62, %v4289_v20  ;;  %v1268_v40 = vadd.f32 %v1098_v61, %v683_v14  ;;  %v3156_v45 = vadd.f32 %v2985_v41, %v2572_v7  ;;  %v9101_v54 = vrot.slane %v7035_v3, 1  ;;  %v3241_v62 = vld [vmem:[#allocation2 + $0x2c0] sm:$0x80] }
 0x1ce   : > { %v609_v2 = vmul.f32 %v8976_v49, %v537_v48  ;;  %v9102_v20 = vrot.slane %v7040_v17, 7  ;;  %v9103_v14 = vrot.slane %v7049_v59, 1  ;;  %v9104_v13 = vrot.slane %v7070_v50, 7  ;;  %v2072_v17 = vld [vmem:[#allocation2 + $0x280] sm:$0x80] }
 0x1cf   : > { %v1436_v26 = vadd.f32 %v1372_v1, %v1268_v40  ;;  %v1819_v21 = vsel %vm1729_vm2, %v9101_v54, %v1818_v51  ;;  %v870_v41 = vmul.f32 %v5186_v22, %v766_v18  ;;  %v3741_v3 = vadd.f32 %v3570_v63, %v3156_v45  ;;  %v3975_v54 = vld [vmem:[#allocation2 + $0x2d0] sm:$0xfe] }
 0x1d0   : > { %v2403_v43 = vsel %vm1008_vm1, %v9102_v20, %v2402_v25  ;;  %v2987_v6 = vsel %vm1729_vm2, %v9103_v14, %v2986_v46  ;;  %v3572_v32 = vsel %vm1008_vm1, %v9104_v13, %v3571_v11  ;;  %v4291_v28 = vrot.slane %v4064_v12, 1  ;;  %v7176_v46 = vld [vmem:[#allocation2 + $0x2d0] sm:$0xff]  ;;  %v7188_v14 = vld [vmem:[#allocation2 + $0x2e0] sm:$0xff] }
 0x1d1   : > { %v1989_v27 = vadd.f32 %v1819_v21, %v1436_v26  ;;  %v7155_v1 = vmul.f32 %v6784_v47, %v5186_v22  ;;  %v684_v39 = vadd.f32 %v8978_v0, %v609_v2  ;;  %v1099_v59 = vrot.slane %v870_v41, 7  ;;  %v9105_v21 = vld [vmem:[#allocation37_spill] sm:$0xff] }
 0x1d2   : > { %v1373_v19 = vmul.f32 %v6784_v47, %v8963_v56  ;;  %v1591_v50 = vmul.f32 %v5206_v29, %v1501_v5  ;;  %v3909_v61 = vadd.f32 %v3845_v9, %v3741_v3  ;;  %v7164_v57 = vmul.f32 %v6796_v8, %v5206_v29 }
 0x1d3   : > { %v2573_v51 = vadd.f32 %v2403_v43, %v1989_v27  ;;  %v8770_v63 = vrot.slane %v7155_v1, 7  ;;  %v2176_v48 = vmul.f32 %v5210_v31, %v2072_v17  ;;  %v7169_v7 = vmul.f32 %v6980_v15, %v5210_v31  ;;  %v767_v27 = vld [vmem:[#allocation2 + $0x248] sm:$0x80] }
 0x1d4   : > { %v1820_v24 = vrot.slane %v1591_v50, 1  ;;  %v2760_v47 = vmul.f32 %v5226_v36, %v2656_v4  ;;  %v4461_v40 = vadd.f32 %v4290_v34, %v3909_v61  ;;  %v8769_v18 = vrot.slane %v7164_v57, 1 }
 0x1d5   : > { %v3157_v9 = vadd.f32 %v2987_v6, %v2573_v51  ;;  %v1101_v25 = vsel %vm1008_vm1, %v1099_v59, %v8770_v63  ;;  %v2404_v12 = vrot.slane %v2176_v48, 7  ;;  %v8765_v45 = vrot.slane %v7169_v7, 7  ;;  %v1502_v51 = vld [vmem:[#allocation2 + $0x258] sm:$0xfe] }
 0x1d6   : > { %v1269_v11 = vadd.f32 %v1101_v25, %v684_v39  ;;  %v7181_v26 = vmul.f32 %v6992_v53, %v5226_v36  ;;  %4525 = vst [vmem:[%s5607_s4 + $0x110] sm:$0xff] %v4461_v40  ;;  %v9106_v2 = vrot.slane %v9105_v21, 1  ;;  %v2988_v20 = vrot.slane %v2760_v47, 1  ;;  %v9107_v25 = vld [vmem:[#allocation35_spill] sm:$0xff] }
 0x1d7   : > { %v3742_v34 = vadd.f32 %v3572_v32, %v3157_v9  ;;  %v3345_v43 = vmul.f32 %v5230_v38, %v3241_v62  ;;  %v1822_v13 = vsel %vm1729_vm2, %v1820_v24, %v8769_v18  ;;  %v7196_v3 = vmul.f32 %v5230_v38, %v7176_v46  ;;  %v538_v32 = vld [vmem:[%s5076_s21 + $0x128] sm:$0xff] }
 0x1d8   : > { %v4292_v5 = vsel %vm1729_vm2, %v9106_v2, %v4291_v28  ;;  %v1437_v6 = vadd.f32 %v1373_v19, %v1269_v11  ;;  %v8764_v41 = vrot.slane %v7181_v26, 1  ;;  %v2406_v28 = vsel %vm1008_vm1, %v2404_v12, %v8765_v45  ;;  %v2073_v11 = vld [vmem:[#allocation2 + $0x288] sm:$0x80]  ;;  %v2657_v12 = vld [vmem:[#allocation2 + $0x298] sm:$0xfe] }
 0x1d9   : > { %v3910_v17 = vadd.f32 %v3846_v44, %v3742_v34  ;;  %v3573_v4 = vrot.slane %v3345_v43, 7  ;;  %v4065_v39 = vmul.f32 %v6712_v58, %v3975_v54  ;;  %v8763_v19 = vrot.slane %v7196_v3, 7 }
 0x1da   : > { %v1990_v59 = vadd.f32 %v1822_v13, %v1437_v6  ;;  %v3847_v50 = vmul.f32 %v8966_v33, %v7176_v46  ;;  %v7208_v61 = vmul.f32 %v6712_v58, %v7188_v14  ;;  %v2990_v24 = vsel %vm1729_vm2, %v2988_v20, %v8764_v41  ;;  %v9108_v6 = vld [vmem:[#allocation34_spill] sm:$0xff] }
 0x1db   : > { %v4462_v44 = vadd.f32 %v4292_v5, %v3910_v17  ;;  %v610_v48 = vmul.f32 %v8967_v16, %v538_v32  ;;  %v871_v47 = vmul.f32 %v5188_v23, %v767_v27  ;;  %v3575_v40 = vsel %vm1008_vm1, %v3573_v4, %v8763_v19  ;;  %v9109_v17 = vld [vmem:[#allocation40_spill] sm:$0xff]  ;;  %v539_v19 = vld [vmem:[%s5076_s21 + $0x130] sm:$0xff] }
 0x1dc   : > { %v2574_v62 = vadd.f32 %v2406_v28, %v1990_v59  ;;  %v4293_v9 = vrot.slane %v4065_v39, 1  ;;  %v7220_v58 = vmul.f32 %v9107_v25, %v5188_v23  ;;  %v8768_v54 = vrot.slane %v7208_v61, 1  ;;  %v3242_v39 = vld [vmem:[#allocation2 + $0x2c8] sm:$0x80] }
 0x1dd   : > { %4526 = vst [vmem:[%s5607_s4 + $0x118] sm:$0xff] %v4462_v44  ;;  %v685_v34 = vadd.f32 %v8970_v55, %v610_v48  ;;  %v1102_v21 = vrot.slane %v871_v47, 7  ;;  %v1592_v2 = vmul.f32 %v5208_v30, %v1502_v51  ;;  %v1374_v43 = vmul.f32 %v9107_v25, %v8972_v60  ;;  %v7247_v48 = vld [vmem:[#allocation2 + $0x2d8] sm:$0xff] }
 0x1de   : > { %v3158_v5 = vadd.f32 %v2990_v24, %v2574_v62  ;;  %v8762_v20 = vrot.slane %v7220_v58, 7  ;;  %v7231_v13 = vmul.f32 %v9108_v6, %v5208_v30  ;;  %v2177_v27 = vmul.f32 %v5224_v35, %v2073_v11  ;;  %9110 = vst [vmem:[#allocation16_spill] sm:$0xff] %v7247_v48  ;;  %v3976_v11 = vld [vmem:[#allocation2 + $0x2d8] sm:$0xfe] }
 0x1df   : > { %v1823_v32 = vrot.slane %v1592_v2, 1  ;;  %v7236_v28 = vmul.f32 %v9109_v17, %v5224_v35  ;;  %v2761_v4 = vmul.f32 %v5228_v37, %v2657_v12  ;;  %v7245_v24 = vmul.f32 %v7059_v52, %v5228_v37 }
 0x1e0   : > { %v3743_v59 = vadd.f32 %v3575_v40, %v3158_v5  ;;  %v1104_v51 = vsel %vm1008_vm1, %v1102_v21, %v8762_v20  ;;  %v8767_v44 = vrot.slane %v7231_v13, 1  ;;  %v4295_v47 = vsel %vm1729_vm2, %v4293_v9, %v8768_v54  ;;  %v7255_v20 = vld [vmem:[#allocation2 + $0x2e8] sm:$0xff] }
 0x1e1   : > { %v1270_v62 = vadd.f32 %v1104_v51, %v685_v34  ;;  %v2407_v25 = vrot.slane %v2177_v27, 7  ;;  %v8766_v40 = vrot.slane %v7236_v28, 7  ;;  %v2991_v2 = vrot.slane %v2761_v4, 1  ;;  %9111 = vst [vmem:[#allocation13_spill] sm:$0xff] %v7255_v20  ;;  %v770_v34 = vld [vmem:[#allocation2 + $0x260] sm:$0x7f] }
 0x1e2   : > { %v3911_v12 = vadd.f32 %v3847_v50, %v3743_v59  ;;  %v8773_v21 = vrot.slane %v7245_v24, 1  ;;  %v3346_v5 = vmul.f32 %v5244_v42, %v3242_v39  ;;  %v1825_v45 = vsel %vm1729_vm2, %v1823_v32, %v8767_v44  ;;  %v1503_v27 = vld [vmem:[#allocation2 + $0x270] sm:$0x1]  ;;  %v7273_v32 = vld [vmem:[%s8609_s1 + $0x18] ss:$0 sm:$0xff] }
 0x1e3   : > { %v1438_v41 = vadd.f32 %v1374_v43, %v1270_v62  ;;  %v2409_v9 = vsel %vm1008_vm1, %v2407_v25, %v8766_v40  ;;  %v7266_v50 = vmul.f32 %v5244_v42, %v7247_v48  ;;  %v3848_v43 = vmul.f32 %v8977_v10, %v7247_v48 }
 0x1e4   : > { %v4463_v4 = vadd.f32 %v4295_v47, %v3911_v12  ;;  %v3576_v39 = vrot.slane %v3346_v5, 7  ;;  %v4066_v59 = vmul.f32 %v7273_v32, %v3976_v11  ;;  %v7279_v25 = vmul.f32 %v7273_v32, %v7255_v20  ;;  %v2076_v12 = vld [vmem:[#allocation2 + $0x2a0] sm:$0x7f]  ;;  %v2660_v5 = vld [vmem:[#allocation2 + $0x2b0] sm:$0x1] }
 0x1e5   : > { %v1991_v51 = vadd.f32 %v1825_v45, %v1438_v41  ;;  %v611_v47 = vmul.f32 %v8976_v49, %v539_v19  ;;  %v2993_v40 = vsel %vm1729_vm2, %v2991_v2, %v8773_v21  ;;  %v874_v54 = vmul.f32 %v5186_v22, %v770_v34  ;;  %v3245_v41 = vld [vmem:[#allocation2 + $0x2e0] sm:$0x7f] }
 0x1e6   : > { %4527 = vst [vmem:[%s5607_s4 + $0x120] sm:$0xff] %v4463_v4  ;;  %v4296_v44 = vrot.slane %v4066_v59, 1  ;;  %v1595_v45 = vmul.f32 %v5206_v29, %v1503_v27  ;;  %v8776_v18 = vrot.slane %v7279_v25, 1  ;;  %v1375_v19 = vmul.f32 %v6796_v8, %v8963_v56  ;;  %v3977_v59 = vld [vmem:[#allocation2 + $0x2f0] sm:$0x1] }
 0x1e7   : > { %v2575_v11 = vadd.f32 %v2409_v9, %v1991_v51  ;;  %v686_v63 = vadd.f32 %v8978_v0, %v611_v47  ;;  %v1105_v4 = vrot.slane %v874_v54, 7  ;;  %v2180_v48 = vmul.f32 %v5210_v31, %v2076_v12  ;;  %v540_v47 = vld [vmem:[%s5076_s21 + $0x138] sm:$0xff]  ;;  %v771_v8 = vld [vmem:[#allocation2 + $0x268] sm:$0x7f] }
 0x1e8   : > { %v1826_v62 = vrot.slane %v1595_v45, 1  ;;  %v2764_v2 = vmul.f32 %v5226_v36, %v2660_v5  ;;  %v9112_v21 = vrot.slane %v7266_v50, 7  ;;  %v4298_v9 = vsel %vm1729_vm2, %v4296_v44, %v8776_v18  ;;  %v7310_v44 = vld [vmem:[%s8609_s1 + $0x10] ss:$0 sm:$0xff] }
 0x1e9   : > { %v3159_v34 = vadd.f32 %v2993_v40, %v2575_v11  ;;  %v3349_v51 = vmul.f32 %v5230_v38, %v3245_v41  ;;  %v9113_v54 = vrot.slane %v7155_v1, 7  ;;  %v2410_v45 = vrot.slane %v2180_v48, 7  ;;  %v1504_v41 = vld [vmem:[#allocation2 + $0x278] sm:$0x1] }
 0x1ea   : > { %v3578_v27 = vsel %vm1008_vm1, %v3576_v39, %v9112_v21  ;;  %v2994_v5 = vrot.slane %v2764_v2, 1  ;;  %v3849_v40 = vmul.f32 %v8966_v33, %v7188_v14  ;;  %v4069_v39 = vmul.f32 %v7310_v44, %v3977_v59 }
 0x1eb   : > { %v1106_v12 = vsel %vm1008_vm1, %v9113_v54, %v1105_v4  ;;  %v3744_v11 = vadd.f32 %v3578_v27, %v3159_v34  ;;  %v3579_v21 = vrot.slane %v3349_v51, 7  ;;  %v9114_v1 = vrot.slane %v7164_v57, 1  ;;  %v2077_v27 = vld [vmem:[#allocation2 + $0x2a8] sm:$0x7f]  ;;  %v2661_v57 = vld [vmem:[#allocation2 + $0x2b8] sm:$0x1] }
 0x1ec   : > { %v1271_v52 = vadd.f32 %v1106_v12, %v686_v63  ;;  %v9115_v48 = vrot.slane %v7169_v7, 7  ;;  %v612_v34 = vmul.f32 %v8967_v16, %v540_v47  ;;  %v875_v63 = vmul.f32 %v5188_v23, %v771_v8 }
 0x1ed   : > { %v1827_v4 = vsel %vm1729_vm2, %v9114_v1, %v1826_v62  ;;  %v3912_v51 = vadd.f32 %v3848_v43, %v3744_v11  ;;  %v9116_v12 = vrot.slane %v7181_v26, 1  ;;  %v4299_v18 = vrot.slane %v4069_v39, 1  ;;  %v3246_v62 = vld [vmem:[#allocation2 + $0x2e8] sm:$0x7f] }
 0x1ee   : > { %v2411_v2 = vsel %vm1008_vm1, %v9115_v48, %v2410_v45  ;;  %v1439_v54 = vadd.f32 %v1375_v19, %v1271_v52  ;;  %v9117_v7 = vrot.slane %v7196_v3, 7  ;;  %v687_v47 = vadd.f32 %v8970_v55, %v612_v34  ;;  %v541_v34 = vld [vmem:[%s5076_s21 + $0x140] sm:$0xff] }
 0x1ef   : > { %v2995_v59 = vsel %vm1729_vm2, %v9116_v12, %v2994_v5  ;;  %v1107_v1 = vrot.slane %v875_v63, 7  ;;  %v1596_v8 = vmul.f32 %v5208_v30, %v1504_v41  ;;  %v4464_v43 = vadd.f32 %v4298_v9, %v3912_v51  ;;  %v3978_v5 = vld [vmem:[#allocation2 + $0x2f8] sm:$0x1] }
 0x1f0   : > { %v3580_v45 = vsel %vm1008_vm1, %v9117_v7, %v3579_v21  ;;  %v1992_v52 = vadd.f32 %v1827_v4, %v1439_v54  ;;  %v1376_v26 = vmul.f32 %v9108_v6, %v8972_v60  ;;  %v2181_v19 = vmul.f32 %v5224_v35, %v2077_v27  ;;  %v772_v27 = vld [vmem:[#allocation2 + $0x280] sm:$0x80] }
 0x1f1   : > { %v9118_v11 = vrot.slane %v7220_v58, 7  ;;  %v1828_v3 = vrot.slane %v1596_v8, 1  ;;  %v2765_v21 = vmul.f32 %v5228_v37, %v2661_v57  ;;  %v3350_v48 = vmul.f32 %v5244_v42, %v3246_v62  ;;  %4528 = vst [vmem:[%s5607_s4 + $0x128] sm:$0xff] %v4464_v43 }
 0x1f2   : > { %v2576_v41 = vadd.f32 %v2411_v2, %v1992_v52  ;;  %v9119_v9 = vrot.slane %v7208_v61, 1  ;;  %v2412_v63 = vrot.slane %v2181_v19, 7  ;;  %v3850_v58 = vmul.f32 %v8977_v10, %v7255_v20 }
 0x1f3   : > { %v1108_v39 = vsel %vm1008_vm1, %v9118_v11, %v1107_v1  ;;  %v2996_v51 = vrot.slane %v2765_v21, 1  ;;  %v3581_v54 = vrot.slane %v3350_v48, 7  ;;  %v4070_v12 = vmul.f32 %v7273_v32, %v3978_v5  ;;  %v1505_v1 = vld [vmem:[#allocation2 + $0x290] sm:$0xfe] }
 0x1f4   : > { %v4300_v4 = vsel %vm1729_vm2, %v9119_v9, %v4299_v18  ;;  %v1272_v6 = vadd.f32 %v1108_v39, %v687_v47  ;;  %v3160_v57 = vadd.f32 %v2995_v59, %v2576_v41  ;;  %v9120_v62 = vrot.slane %v7231_v13, 1  ;;  %v2662_v39 = vld [vmem:[#allocation2 + $0x2d0] sm:$0xfe] }
 0x1f5   : > { %v613_v61 = vmul.f32 %v8976_v49, %v541_v34  ;;  %v9121_v18 = vrot.slane %v7236_v28, 7  ;;  %v9122_v8 = vrot.slane %v7245_v24, 1  ;;  %v9123_v52 = vrot.slane %v7266_v50, 7  ;;  %v2078_v28 = vld [vmem:[#allocation2 + $0x2c0] sm:$0x80] }
 0x1f6   : > { %v1440_v7 = vadd.f32 %v1376_v26, %v1272_v6  ;;  %v1829_v2 = vsel %vm1729_vm2, %v9120_v62, %v1828_v3  ;;  %v876_v26 = vmul.f32 %v5186_v22, %v772_v27  ;;  %v3745_v13 = vadd.f32 %v3580_v45, %v3160_v57  ;;  %v3247_v27 = vld [vmem:[#allocation2 + $0x300] sm:$0x80]  ;;  %v7382_v57 = vld [vmem:[#allocation2 + $0x310] sm:$0xff] }
 0x1f7   : > { %v2413_v47 = vsel %vm1008_vm1, %v9121_v18, %v2412_v63  ;;  %v2997_v43 = vsel %vm1729_vm2, %v9122_v8, %v2996_v51  ;;  %v3582_v59 = vsel %vm1008_vm1, %v9123_v52, %v3581_v54  ;;  %v4301_v5 = vrot.slane %v4070_v12, 1  ;;  %v7394_v52 = vld [vmem:[#allocation2 + $0x320] sm:$0xff] }
 0x1f8   : > { %v1993_v19 = vadd.f32 %v1829_v2, %v1440_v7  ;;  %v7361_v11 = vmul.f32 %v6980_v15, %v5186_v22  ;;  %v688_v3 = vadd.f32 %v8978_v0, %v613_v61  ;;  %v1109_v24 = vrot.slane %v876_v26, 7 }
 0x1f9   : > { %v1377_v21 = vmul.f32 %v6980_v15, %v8963_v56  ;;  %v1597_v50 = vmul.f32 %v5206_v29, %v1505_v1  ;;  %v3913_v48 = vadd.f32 %v3849_v40, %v3745_v13  ;;  %v7370_v41 = vmul.f32 %v6992_v53, %v5206_v29  ;;  %v3979_v1 = vld [vmem:[#allocation2 + $0x310] sm:$0xfe] }
 0x1fa   : > { %v2577_v34 = vadd.f32 %v2413_v47, %v1993_v19  ;;  %v8785_v45 = vrot.slane %v7361_v11, 7  ;;  %v2182_v6 = vmul.f32 %v5210_v31, %v2078_v28  ;;  %v7375_v63 = vmul.f32 %v7176_v46, %v5210_v31 }
 0x1fb   : > { %v1830_v9 = vrot.slane %v1597_v50, 1  ;;  %v2766_v15 = vmul.f32 %v5226_v36, %v2662_v39  ;;  %v4465_v51 = vadd.f32 %v4300_v4, %v3913_v48  ;;  %v8781_v12 = vrot.slane %v7370_v41, 1 }
 0x1fc   : > { %v3161_v40 = vadd.f32 %v2997_v43, %v2577_v34  ;;  %v1111_v54 = vsel %vm1008_vm1, %v1109_v24, %v8785_v45  ;;  %v2414_v62 = vrot.slane %v2182_v6, 7  ;;  %v8780_v2 = vrot.slane %v7375_v63, 7 }
 0x1fd   : > { %v1273_v7 = vadd.f32 %v1111_v54, %v688_v3  ;;  %v7387_v61 = vmul.f32 %v7188_v14, %v5226_v36  ;;  %4529 = vst [vmem:[%s5607_s4 + $0x130] sm:$0xff] %v4465_v51  ;;  %v9124_v18 = vrot.slane %v7279_v25, 1  ;;  %v2998_v8 = vrot.slane %v2766_v15, 1  ;;  %v773_v25 = vld [vmem:[#allocation2 + $0x288] sm:$0x80] }
 0x1fe   : > { %v3746_v4 = vadd.f32 %v3582_v59, %v3161_v40  ;;  %v3351_v43 = vmul.f32 %v5230_v38, %v3247_v27  ;;  %v1832_v13 = vsel %vm1729_vm2, %v1830_v9, %v8781_v12  ;;  %v7402_v28 = vmul.f32 %v5230_v38, %v7382_v57  ;;  %v542_v59 = vld [vmem:[%s5076_s21 + $0x148] sm:$0xff]  ;;  %v1506_v9 = vld [vmem:[#allocation2 + $0x298] sm:$0xfe] }
 0x1ff   : > { %v4302_v47 = vsel %vm1729_vm2, %v9124_v18, %v4301_v5  ;;  %v1441_v26 = vadd.f32 %v1377_v21, %v1273_v7  ;;  %v8779_v19 = vrot.slane %v7387_v61, 1  ;;  %v2416_v5 = vsel %vm1008_vm1, %v2414_v62, %v8780_v2  ;;  %v2079_v62 = vld [vmem:[#allocation2 + $0x2c8] sm:$0x80]  ;;  %v543_v2 = vld [vmem:[%s5076_s21 + $0x150] sm:$0xff] }
 0x200   : > { %v3914_v39 = vadd.f32 %v3850_v58, %v3746_v4  ;;  %v3583_v3 = vrot.slane %v3351_v43, 7  ;;  %v4071_v24 = vmul.f32 %v7310_v44, %v3979_v1  ;;  %v8777_v50 = vrot.slane %v7402_v28, 7  ;;  %v2663_v1 = vld [vmem:[#allocation2 + $0x2d8] sm:$0xfe] }
 0x201   : > { %v1994_v21 = vadd.f32 %v1832_v13, %v1441_v26  ;;  %v3851_v48 = vmul.f32 %v8966_v33, %v7382_v57  ;;  %v7414_v34 = vmul.f32 %v7310_v44, %v7394_v52  ;;  %v3000_v6 = vsel %vm1729_vm2, %v2998_v8, %v8779_v19  ;;  %v7461_v19 = vld [vmem:[#allocation2 + $0x328] sm:$0xff] }
 0x202   : > { %v4466_v58 = vadd.f32 %v4302_v47, %v3914_v39  ;;  %v614_v15 = vmul.f32 %v8967_v16, %v542_v59  ;;  %v877_v27 = vmul.f32 %v5188_v23, %v773_v25  ;;  %v3585_v40 = vsel %vm1008_vm1, %v3583_v3, %v8777_v50  ;;  %v9125_v59 = vld [vmem:[#allocation14_spill] sm:$0xff]  ;;  %v9126_v3 = vld [vmem:[#allocation16_spill] sm:$0xff]  ;;  %9128 = vst [vmem:[#allocation41_spill] sm:$0xff] %v7461_v19 }
 0x203   : > { %v2578_v51 = vadd.f32 %v2416_v5, %v1994_v21  ;;  %v4303_v54 = vrot.slane %v4071_v24, 1  ;;  %v7426_v7 = vmul.f32 %v9109_v17, %v5188_v23  ;;  %v8784_v4 = vrot.slane %v7414_v34, 1 }
 0x204   : > { %4530 = vst [vmem:[%s5607_s4 + $0x138] sm:$0xff] %v4466_v58  ;;  %v689_v18 = vadd.f32 %v8970_v55, %v614_v15  ;;  %v1112_v47 = vrot.slane %v877_v27, 7  ;;  %v1598_v8 = vmul.f32 %v5208_v30, %v1506_v9  ;;  %v1378_v13 = vmul.f32 %v9109_v17, %v8972_v60  ;;  %v3248_v9 = vld [vmem:[#allocation2 + $0x308] sm:$0x80]  ;;  %v7453_v27 = vld [vmem:[#allocation2 + $0x318] sm:$0xff] }
 0x205   : > { %v3162_v43 = vadd.f32 %v3000_v6, %v2578_v51  ;;  %v8778_v26 = vrot.slane %v7426_v7, 7  ;;  %v7437_v25 = vmul.f32 %v9125_v59, %v5208_v30  ;;  %v2183_v5 = vmul.f32 %v5224_v35, %v2079_v62  ;;  %9127 = vst [vmem:[#allocation36_spill] sm:$0xff] %v7453_v27 }
 0x206   : > { %v1833_v39 = vrot.slane %v1598_v8, 1  ;;  %v7442_v24 = vmul.f32 %v9126_v3, %v5224_v35  ;;  %v2767_v21 = vmul.f32 %v5228_v37, %v2663_v1  ;;  %v7451_v15 = vmul.f32 %v7255_v20, %v5228_v37  ;;  %v3980_v8 = vld [vmem:[#allocation2 + $0x318] sm:$0xfe] }
 0x207   : > { %v3747_v58 = vadd.f32 %v3585_v40, %v3162_v43  ;;  %v1114_v17 = vsel %vm1008_vm1, %v1112_v47, %v8778_v26  ;;  %v8782_v6 = vrot.slane %v7437_v25, 1  ;;  %v4305_v51 = vsel %vm1729_vm2, %v4303_v54, %v8784_v4  ;;  %v2666_v4 = vld [vmem:[#allocation2 + $0x2f0] sm:$0x1] }
 0x208   : > { %v1274_v62 = vadd.f32 %v1114_v17, %v689_v18  ;;  %v2417_v1 = vrot.slane %v2183_v5, 7  ;;  %v8783_v40 = vrot.slane %v7442_v24, 7  ;;  %v3001_v50 = vrot.slane %v2767_v21, 1  ;;  %v776_v5 = vld [vmem:[#allocation2 + $0x2a0] sm:$0x7f] }
 0x209   : > { %v3915_v43 = vadd.f32 %v3851_v48, %v3747_v58  ;;  %v8790_v47 = vrot.slane %v7451_v15, 1  ;;  %v3352_v26 = vmul.f32 %v5244_v42, %v3248_v9  ;;  %v1835_v54 = vsel %vm1729_vm2, %v1833_v39, %v8782_v6  ;;  %v1507_v21 = vld [vmem:[#allocation2 + $0x2b0] sm:$0x1] }
 0x20a   : > { %v1442_v12 = vadd.f32 %v1378_v13, %v1274_v62  ;;  %v2419_v18 = vsel %vm1008_vm1, %v2417_v1, %v8783_v40  ;;  %v7472_v48 = vmul.f32 %v5244_v42, %v7453_v27  ;;  %v3852_v13 = vmul.f32 %v8977_v10, %v7453_v27  ;;  %v2082_v40 = vld [vmem:[#allocation2 + $0x2e0] sm:$0x7f] }
 0x20b   : > { %v4467_v9 = vadd.f32 %v4305_v51, %v3915_v43  ;;  %v3586_v58 = vrot.slane %v3352_v26, 7  ;;  %v4072_v17 = vmul.f32 %v7273_v32, %v3980_v8  ;;  %v7480_v6 = vmul.f32 %v7273_v32, %v7461_v19  ;;  %v3251_v8 = vld [vmem:[#allocation2 + $0x320] sm:$0x7f] }
 0x20c   : > { %v1995_v62 = vadd.f32 %v1835_v54, %v1442_v12  ;;  %v615_v1 = vmul.f32 %v8976_v49, %v543_v2  ;;  %v3003_v26 = vsel %vm1729_vm2, %v3001_v50, %v8790_v47  ;;  %v880_v43 = vmul.f32 %v5186_v22, %v776_v5 }
 0x20d   : > { %9129 = vst [vmem:[#allocation18_spill] sm:$0xff] %v7480_v6  ;;  %4531 = vst [vmem:[%s5607_s4 + $0x140] sm:$0xff] %v4467_v9  ;;  %v4306_v51 = vrot.slane %v4072_v17, 1  ;;  %v1601_v12 = vmul.f32 %v5206_v29, %v1507_v21  ;;  %v8792_v45 = vrot.slane %v7480_v6, 1  ;;  %v1379_v2 = vmul.f32 %v6992_v53, %v8963_v56  ;;  %v3981_v17 = vld [vmem:[#allocation2 + $0x330] sm:$0x1] }
 0x20e   : > { %v2579_v54 = vadd.f32 %v2419_v18, %v1995_v62  ;;  %v690_v39 = vadd.f32 %v8978_v0, %v615_v1  ;;  %v1115_v9 = vrot.slane %v880_v43, 7  ;;  %v2186_v20 = vmul.f32 %v5210_v31, %v2082_v40  ;;  %v544_v1 = vld [vmem:[%s5076_s21 + $0x158] sm:$0xff]  ;;  %v777_v53 = vld [vmem:[#allocation2 + $0x2a8] sm:$0x7f] }
 0x20f   : > { %v1836_v27 = vrot.slane %v1601_v12, 1  ;;  %v2770_v50 = vmul.f32 %v5226_v36, %v2666_v4  ;;  %v9130_v47 = vrot.slane %v7472_v48, 7  ;;  %v4308_v18 = vsel %vm1729_vm2, %v4306_v51, %v8792_v45  ;;  %v1508_v6 = vld [vmem:[#allocation2 + $0x2b8] sm:$0x1] }
 0x210   : > { %v3163_v5 = vadd.f32 %v3003_v26, %v2579_v54  ;;  %v3355_v62 = vmul.f32 %v5230_v38, %v3251_v8  ;;  %v9131_v43 = vrot.slane %v7361_v11, 7  ;;  %v2420_v12 = vrot.slane %v2186_v20, 7 }
 0x211   : > { %v3588_v21 = vsel %vm1008_vm1, %v3586_v58, %v9130_v47  ;;  %v3004_v4 = vrot.slane %v2770_v50, 1  ;;  %v3853_v26 = vmul.f32 %v8966_v33, %v7394_v52  ;;  %v4075_v58 = vmul.f32 %v7310_v44, %v3981_v17  ;;  %v2083_v50 = vld [vmem:[#allocation2 + $0x2e8] sm:$0x7f] }
 0x212   : > { %v1116_v40 = vsel %vm1008_vm1, %v9131_v43, %v1115_v9  ;;  %v3748_v54 = vadd.f32 %v3588_v21, %v3163_v5  ;;  %v3589_v47 = vrot.slane %v3355_v62, 7  ;;  %v9132_v51 = vrot.slane %v7370_v41, 1  ;;  %v2667_v41 = vld [vmem:[#allocation2 + $0x2f8] sm:$0x1] }
 0x213   : > { %v1275_v3 = vadd.f32 %v1116_v40, %v690_v39  ;;  %v9133_v45 = vrot.slane %v7375_v63, 7  ;;  %v616_v20 = vmul.f32 %v8967_v16, %v544_v1  ;;  %v881_v9 = vmul.f32 %v5188_v23, %v777_v53  ;;  %v3982_v40 = vld [vmem:[#allocation2 + $0x338] sm:$0x1] }
 0x214   : > { %v1837_v8 = vsel %vm1729_vm2, %v9132_v51, %v1836_v27  ;;  %v3916_v43 = vadd.f32 %v3852_v13, %v3748_v54  ;;  %v9134_v39 = vrot.slane %v7387_v61, 1  ;;  %v4309_v21 = vrot.slane %v4075_v58, 1  ;;  %v3252_v27 = vld [vmem:[#allocation2 + $0x328] sm:$0x7f]  ;;  %v545_v58 = vld [vmem:[%s5076_s21 + $0x160] sm:$0xff] }
 0x215   : > { %v2421_v11 = vsel %vm1008_vm1, %v9133_v45, %v2420_v12  ;;  %v1443_v5 = vadd.f32 %v1379_v2, %v1275_v3  ;;  %v9135_v63 = vrot.slane %v7402_v28, 7  ;;  %v691_v62 = vadd.f32 %v8970_v55, %v616_v20  ;;  %v778_v20 = vld [vmem:[#allocation2 + $0x2c0] sm:$0x80] }
 0x216   : > { %v3005_v17 = vsel %vm1729_vm2, %v9134_v39, %v3004_v4  ;;  %v1117_v1 = vrot.slane %v881_v9, 7  ;;  %v1602_v53 = vmul.f32 %v5208_v30, %v1508_v6  ;;  %v4468_v13 = vadd.f32 %v4308_v18, %v3916_v43 }
 0x217   : > { %v3590_v45 = vsel %vm1008_vm1, %v9135_v63, %v3589_v47  ;;  %v1996_v3 = vadd.f32 %v1837_v8, %v1443_v5  ;;  %v1380_v61 = vmul.f32 %v9125_v59, %v8972_v60  ;;  %v2187_v2 = vmul.f32 %v5224_v35, %v2083_v50 }
 0x218   : > { %v9136_v12 = vrot.slane %v7426_v7, 7  ;;  %v1838_v28 = vrot.slane %v1602_v53, 1  ;;  %v2771_v54 = vmul.f32 %v5228_v37, %v2667_v41  ;;  %v3356_v47 = vmul.f32 %v5244_v42, %v3252_v27  ;;  %4532 = vst [vmem:[%s5607_s4 + $0x148] sm:$0xff] %v4468_v13  ;;  %v1509_v27 = vld [vmem:[#allocation2 + $0x2d0] sm:$0xfe] }
 0x219   : > { %v2580_v6 = vadd.f32 %v2421_v11, %v1996_v3  ;;  %v9137_v18 = vrot.slane %v7414_v34, 1  ;;  %v2422_v8 = vrot.slane %v2187_v2, 7  ;;  %v3854_v7 = vmul.f32 %v8977_v10, %v7461_v19 }
 0x21a   : > { %v1118_v4 = vsel %vm1008_vm1, %v9136_v12, %v1117_v1  ;;  %v3006_v9 = vrot.slane %v2771_v54, 1  ;;  %v3591_v50 = vrot.slane %v3356_v47, 7  ;;  %v4076_v43 = vmul.f32 %v7273_v32, %v3982_v40  ;;  %v2668_v40 = vld [vmem:[#allocation2 + $0x310] sm:$0xfe] }
 0x21b   : > { %v4310_v51 = vsel %vm1729_vm2, %v9137_v18, %v4309_v21  ;;  %v1276_v59 = vadd.f32 %v1118_v4, %v691_v62  ;;  %v3164_v5 = vadd.f32 %v3005_v17, %v2580_v6  ;;  %v9138_v41 = vrot.slane %v7437_v25, 1 }
 0x21c   : > { %v617_v34 = vmul.f32 %v8976_v49, %v545_v58  ;;  %v9139_v21 = vrot.slane %v7442_v24, 7  ;;  %v9140_v62 = vrot.slane %v7451_v15, 1  ;;  %v9141_v53 = vrot.slane %v7472_v48, 7  ;;  %v2084_v24 = vld [vmem:[#allocation2 + $0x300] sm:$0x80] }
 0x21d   : > { %v1444_v39 = vadd.f32 %v1380_v61, %v1276_v59  ;;  %v1839_v11 = vsel %vm1729_vm2, %v9138_v41, %v1838_v28  ;;  %v882_v13 = vmul.f32 %v5186_v22, %v778_v20  ;;  %v3749_v25 = vadd.f32 %v3590_v45, %v3164_v5  ;;  %v3253_v59 = vld [vmem:[#allocation2 + $0x340] sm:$0x80] }
 0x21e   : > { %v2423_v63 = vsel %vm1008_vm1, %v9139_v21, %v2422_v8  ;;  %v3007_v1 = vsel %vm1729_vm2, %v9140_v62, %v3006_v9  ;;  %v3592_v17 = vsel %vm1008_vm1, %v9141_v53, %v3591_v50  ;;  %v4311_v61 = vrot.slane %v4076_v43, 1  ;;  %v7578_v50 = vld [vmem:[#allocation2 + $0x350] sm:$0xff] }
 0x21f   : > { %v1997_v3 = vadd.f32 %v1839_v11, %v1444_v39  ;;  %v7557_v2 = vmul.f32 %v7176_v46, %v5186_v22  ;;  %v692_v12 = vadd.f32 %v8978_v0, %v617_v34  ;;  %v1119_v15 = vrot.slane %v882_v13, 7  ;;  %v3983_v11 = vld [vmem:[#allocation2 + $0x350] sm:$0xfe]  ;;  %v9142_v34 = vld [vmem:[#allocation18_spill] sm:$0xff] }
 0x220   : > { %v1381_v4 = vmul.f32 %v7176_v46, %v8963_v56  ;;  %v1603_v48 = vmul.f32 %v5206_v29, %v1509_v27  ;;  %v3917_v28 = vadd.f32 %v3853_v26, %v3749_v25  ;;  %v7566_v47 = vmul.f32 %v7188_v14, %v5206_v29 }
 0x221   : > { %v2581_v54 = vadd.f32 %v2423_v63, %v1997_v3  ;;  %v8801_v45 = vrot.slane %v7557_v2, 7  ;;  %v2188_v6 = vmul.f32 %v5210_v31, %v2084_v24  ;;  %v7571_v18 = vmul.f32 %v7382_v57, %v5210_v31  ;;  %v779_v24 = vld [vmem:[#allocation2 + $0x2c8] sm:$0x80] }
 0x222   : > { %v1840_v58 = vrot.slane %v1603_v48, 1  ;;  %v2772_v46 = vmul.f32 %v5226_v36, %v2668_v40  ;;  %v4469_v8 = vadd.f32 %v4310_v51, %v3917_v28  ;;  %v8797_v9 = vrot.slane %v7566_v47, 1 }
 0x223   : > { %v3165_v26 = vadd.f32 %v3007_v1, %v2581_v54  ;;  %v1121_v20 = vsel %vm1008_vm1, %v1119_v15, %v8801_v45  ;;  %v2424_v5 = vrot.slane %v2188_v6, 7  ;;  %v8796_v39 = vrot.slane %v7571_v18, 7  ;;  %v7590_v1 = vld [vmem:[#allocation2 + $0x360] sm:$0xff] }
 0x224   : > { %v1277_v43 = vadd.f32 %v1121_v20, %v692_v12  ;;  %v7583_v41 = vmul.f32 %v7394_v52, %v5226_v36  ;;  %4533 = vst [vmem:[%s5607_s4 + $0x150] sm:$0xff] %v4469_v8  ;;  %v9143_v27 = vrot.slane %v9142_v34, 1  ;;  %v3008_v63 = vrot.slane %v2772_v46, 1 }
 0x225   : > { %v3750_v51 = vadd.f32 %v3592_v17, %v3165_v26  ;;  %v3357_v62 = vmul.f32 %v5230_v38, %v3253_v59  ;;  %v1842_v13 = vsel %vm1729_vm2, %v1840_v58, %v8797_v9  ;;  %v7598_v3 = vmul.f32 %v5230_v38, %v7578_v50  ;;  %v546_v17 = vld [vmem:[%s5076_s21 + $0x168] sm:$0xff]  ;;  %v1510_v58 = vld [vmem:[#allocation2 + $0x2d8] sm:$0xfe] }
 0x226   : > { %v4312_v21 = vsel %vm1729_vm2, %v9143_v27, %v4311_v61  ;;  %v1445_v53 = vadd.f32 %v1381_v4, %v1277_v43  ;;  %v8795_v25 = vrot.slane %v7583_v41, 1  ;;  %v2426_v61 = vsel %vm1008_vm1, %v2424_v5, %v8796_v39  ;;  %v9144_v43 = vld [vmem:[#allocation16_spill] sm:$0xff]  ;;  %v547_v39 = vld [vmem:[%s5076_s21 + $0x170] sm:$0xff] }
 0x227   : > { %v3918_v40 = vadd.f32 %v3854_v7, %v3750_v51  ;;  %v3593_v12 = vrot.slane %v3357_v62, 7  ;;  %v4077_v15 = vmul.f32 %v7310_v44, %v3983_v11  ;;  %v8793_v48 = vrot.slane %v7598_v3, 7  ;;  %v2085_v11 = vld [vmem:[#allocation2 + $0x308] sm:$0x80]  ;;  %v2669_v51 = vld [vmem:[#allocation2 + $0x318] sm:$0xfe] }
 0x228   : > { %v1998_v4 = vadd.f32 %v1842_v13, %v1445_v53  ;;  %v3855_v28 = vmul.f32 %v8966_v33, %v7578_v50  ;;  %v7610_v54 = vmul.f32 %v7310_v44, %v7590_v1  ;;  %v3010_v6 = vsel %vm1729_vm2, %v3008_v63, %v8795_v25  ;;  %v7657_v25 = vld [vmem:[#allocation2 + $0x368] sm:$0xff] }
 0x229   : > { %v4470_v7 = vadd.f32 %v4312_v21, %v3918_v40  ;;  %v618_v46 = vmul.f32 %v8967_v16, %v546_v17  ;;  %v883_v59 = vmul.f32 %v5188_v23, %v779_v24  ;;  %v3595_v26 = vsel %vm1008_vm1, %v3593_v12, %v8793_v48  ;;  %v9145_v17 = vld [vmem:[#allocation13_spill] sm:$0xff]  ;;  %v9146_v12 = vld [vmem:[#allocation36_spill] sm:$0xff]  ;;  %9148 = vst [vmem:[#allocation38_spill] sm:$0xff] %v7657_v25 }
 0x22a   : > { %v2582_v8 = vadd.f32 %v2426_v61, %v1998_v4  ;;  %v4313_v20 = vrot.slane %v4077_v15, 1  ;;  %v7622_v5 = vmul.f32 %v9144_v43, %v5188_v23  ;;  %v8800_v34 = vrot.slane %v7610_v54, 1 }
 0x22b   : > { %4534 = vst [vmem:[%s5607_s4 + $0x158] sm:$0xff] %v4470_v7  ;;  %v693_v27 = vadd.f32 %v8970_v55, %v618_v46  ;;  %v1122_v21 = vrot.slane %v883_v59, 7  ;;  %v1604_v63 = vmul.f32 %v5208_v30, %v1510_v58  ;;  %v1382_v13 = vmul.f32 %v9144_v43, %v8972_v60  ;;  %v3254_v58 = vld [vmem:[#allocation2 + $0x348] sm:$0x80] }
 0x22c   : > { %v3166_v62 = vadd.f32 %v3010_v6, %v2582_v8  ;;  %v8794_v53 = vrot.slane %v7622_v5, 7  ;;  %v7633_v24 = vmul.f32 %v9145_v17, %v5208_v30  ;;  %v2189_v61 = vmul.f32 %v5224_v35, %v2085_v11  ;;  %v7649_v8 = vld [vmem:[#allocation2 + $0x358] sm:$0xff] }
 0x22d   : > { %v1843_v40 = vrot.slane %v1604_v63, 1  ;;  %v7638_v15 = vmul.f32 %v9146_v12, %v5224_v35  ;;  %v2773_v4 = vmul.f32 %v5228_v37, %v2669_v51  ;;  %v7647_v59 = vmul.f32 %v7461_v19, %v5228_v37  ;;  %9147 = vst [vmem:[#allocation10_spill] sm:$0xff] %v7649_v8  ;;  %v3984_v63 = vld [vmem:[#allocation2 + $0x358] sm:$0xfe] }
 0x22e   : > { %v3751_v7 = vadd.f32 %v3595_v26, %v3166_v62  ;;  %v1124_v6 = vsel %vm1008_vm1, %v1122_v21, %v8794_v53  ;;  %v8798_v46 = vrot.slane %v7633_v24, 1  ;;  %v4315_v43 = vsel %vm1729_vm2, %v4313_v20, %v8800_v34  ;;  %v2672_v34 = vld [vmem:[#allocation2 + $0x330] sm:$0x1] }
 0x22f   : > { %v1278_v11 = vadd.f32 %v1124_v6, %v693_v27  ;;  %v2427_v51 = vrot.slane %v2189_v61, 7  ;;  %v8799_v26 = vrot.slane %v7638_v15, 7  ;;  %v3011_v48 = vrot.slane %v2773_v4, 1  ;;  %v782_v61 = vld [vmem:[#allocation2 + $0x2e0] sm:$0x7f] }
 0x230   : > { %v3919_v62 = vadd.f32 %v3855_v28, %v3751_v7  ;;  %v8806_v21 = vrot.slane %v7647_v59, 1  ;;  %v3358_v53 = vmul.f32 %v5244_v42, %v3254_v58  ;;  %v1845_v20 = vsel %vm1729_vm2, %v1843_v40, %v8798_v46  ;;  %v1511_v4 = vld [vmem:[#allocation2 + $0x2f0] sm:$0x1] }
 0x231   : > { %v1446_v9 = vadd.f32 %v1382_v13, %v1278_v11  ;;  %v2429_v27 = vsel %vm1008_vm1, %v2427_v51, %v8799_v26  ;;  %v7668_v28 = vmul.f32 %v5244_v42, %v7649_v8  ;;  %v3856_v13 = vmul.f32 %v8977_v10, %v7649_v8  ;;  %v2088_v26 = vld [vmem:[#allocation2 + $0x320] sm:$0x7f] }
 0x232   : > { %v4471_v58 = vadd.f32 %v4315_v43, %v3919_v62  ;;  %v3596_v7 = vrot.slane %v3358_v53, 7  ;;  %v4078_v6 = vmul.f32 %v7273_v32, %v3984_v63  ;;  %v7676_v46 = vmul.f32 %v7273_v32, %v7657_v25  ;;  %v3257_v63 = vld [vmem:[#allocation2 + $0x360] sm:$0x7f] }
 0x233   : > { %v1999_v11 = vadd.f32 %v1845_v20, %v1446_v9  ;;  %v619_v51 = vmul.f32 %v8976_v49, %v547_v39  ;;  %v3013_v53 = vsel %vm1729_vm2, %v3011_v48, %v8806_v21  ;;  %v886_v62 = vmul.f32 %v5186_v22, %v782_v61 }
 0x234   : > { %9149 = vst [vmem:[#allocation12_spill] sm:$0xff] %v7676_v46  ;;  %4535 = vst [vmem:[%s5607_s4 + $0x160] sm:$0xff] %v4471_v58  ;;  %v4316_v43 = vrot.slane %v4078_v6, 1  ;;  %v1607_v9 = vmul.f32 %v5206_v29, %v1511_v4  ;;  %v8808_v45 = vrot.slane %v7676_v46, 1  ;;  %v1383_v39 = vmul.f32 %v7188_v14, %v8963_v56  ;;  %v3985_v6 = vld [vmem:[#allocation2 + $0x370] sm:$0x1] }
 0x235   : > { %v2583_v20 = vadd.f32 %v2429_v27, %v1999_v11  ;;  %v694_v40 = vadd.f32 %v8978_v0, %v619_v51  ;;  %v1125_v58 = vrot.slane %v886_v62, 7  ;;  %v2192_v19 = vmul.f32 %v5210_v31, %v2088_v26  ;;  %v548_v51 = vld [vmem:[%s5076_s21 + $0x178] sm:$0xff]  ;;  %v783_v14 = vld [vmem:[#allocation2 + $0x2e8] sm:$0x7f] }
 0x236   : > { %v1846_v8 = vrot.slane %v1607_v9, 1  ;;  %v2776_v48 = vmul.f32 %v5226_v36, %v2672_v34  ;;  %v9150_v21 = vrot.slane %v7668_v28, 7  ;;  %v4318_v27 = vsel %vm1729_vm2, %v4316_v43, %v8808_v45  ;;  %v1512_v46 = vld [vmem:[#allocation2 + $0x2f8] sm:$0x1] }
 0x237   : > { %v3167_v61 = vadd.f32 %v3013_v53, %v2583_v20  ;;  %v3361_v11 = vmul.f32 %v5230_v38, %v3257_v63  ;;  %v9151_v62 = vrot.slane %v7557_v2, 7  ;;  %v2430_v9 = vrot.slane %v2192_v19, 7 }
 0x238   : > { %v3598_v4 = vsel %vm1008_vm1, %v3596_v7, %v9150_v21  ;;  %v3014_v34 = vrot.slane %v2776_v48, 1  ;;  %v3857_v53 = vmul.f32 %v8966_v33, %v7590_v1  ;;  %v4081_v7 = vmul.f32 %v7310_v44, %v3985_v6  ;;  %v2089_v48 = vld [vmem:[#allocation2 + $0x328] sm:$0x7f] }
 0x239   : > { %v1126_v26 = vsel %vm1008_vm1, %v9151_v62, %v1125_v58  ;;  %v3752_v20 = vadd.f32 %v3598_v4, %v3167_v61  ;;  %v3599_v21 = vrot.slane %v3361_v11, 7  ;;  %v9152_v43 = vrot.slane %v7566_v47, 1  ;;  %v2673_v47 = vld [vmem:[#allocation2 + $0x338] sm:$0x1] }
 0x23a   : > { %v1279_v12 = vadd.f32 %v1126_v26, %v694_v40  ;;  %v9153_v45 = vrot.slane %v7571_v18, 7  ;;  %v620_v19 = vmul.f32 %v8967_v16, %v548_v51  ;;  %v887_v58 = vmul.f32 %v5188_v23, %v783_v14  ;;  %v3986_v26 = vld [vmem:[#allocation2 + $0x378] sm:$0x1] }
 0x23b   : > { %v1847_v63 = vsel %vm1729_vm2, %v9152_v43, %v1846_v8  ;;  %v3920_v62 = vadd.f32 %v3856_v13, %v3752_v20  ;;  %v9154_v40 = vrot.slane %v7583_v41, 1  ;;  %v4319_v4 = vrot.slane %v4081_v7, 1  ;;  %v3258_v8 = vld [vmem:[#allocation2 + $0x368] sm:$0x7f]  ;;  %v549_v7 = vld [vmem:[%s5076_s21 + $0x180] sm:$0xff] }
 0x23c   : > { %v2431_v2 = vsel %vm1008_vm1, %v9153_v45, %v2430_v9  ;;  %v1447_v61 = vadd.f32 %v1383_v39, %v1279_v12  ;;  %v9155_v18 = vrot.slane %v7598_v3, 7  ;;  %v695_v11 = vadd.f32 %v8970_v55, %v620_v19  ;;  %v784_v19 = vld [vmem:[#allocation2 + $0x300] sm:$0x80] }
 0x23d   : > { %v3015_v6 = vsel %vm1729_vm2, %v9154_v40, %v3014_v34  ;;  %v1127_v51 = vrot.slane %v887_v58, 7  ;;  %v1608_v14 = vmul.f32 %v5208_v30, %v1512_v46  ;;  %v4472_v13 = vadd.f32 %v4318_v27, %v3920_v62 }
 0x23e   : > { %v3600_v45 = vsel %vm1008_vm1, %v9155_v18, %v3599_v21  ;;  %v2000_v12 = vadd.f32 %v1847_v63, %v1447_v61  ;;  %v1384_v41 = vmul.f32 %v9145_v17, %v8972_v60  ;;  %v2193_v39 = vmul.f32 %v5224_v35, %v2089_v48 }
 0x23f   : > { %v9156_v9 = vrot.slane %v7622_v5, 7  ;;  %v1848_v3 = vrot.slane %v1608_v14, 1  ;;  %v2777_v20 = vmul.f32 %v5228_v37, %v2673_v47  ;;  %v3362_v21 = vmul.f32 %v5244_v42, %v3258_v8  ;;  %4536 = vst [vmem:[%s5607_s4 + $0x168] sm:$0xff] %v4472_v13  ;;  %v1513_v8 = vld [vmem:[#allocation2 + $0x310] sm:$0xfe] }
 0x240   : > { %v2584_v46 = vadd.f32 %v2431_v2, %v2000_v12  ;;  %v9157_v27 = vrot.slane %v7610_v54, 1  ;;  %v2432_v63 = vrot.slane %v2193_v39, 7  ;;  %v3858_v5 = vmul.f32 %v8977_v10, %v7657_v25  ;;  %v2674_v39 = vld [vmem:[#allocation2 + $0x350] sm:$0xfe] }
 0x241   : > { %v1128_v34 = vsel %vm1008_vm1, %v9156_v9, %v1127_v51  ;;  %v3016_v58 = vrot.slane %v2777_v20, 1  ;;  %v3601_v48 = vrot.slane %v3362_v21, 7  ;;  %v4082_v62 = vmul.f32 %v7273_v32, %v3986_v26 }
 0x242   : > { %v4320_v43 = vsel %vm1729_vm2, %v9157_v27, %v4319_v4  ;;  %v1280_v17 = vadd.f32 %v1128_v34, %v695_v11  ;;  %v3168_v61 = vadd.f32 %v3015_v6, %v2584_v46  ;;  %v9158_v47 = vrot.slane %v7633_v24, 1  ;;  %v3259_v27 = vld [vmem:[#allocation2 + $0x380] sm:$0x80] }
 0x243   : > { %v621_v54 = vmul.f32 %v8976_v49, %v549_v7  ;;  %v9159_v4 = vrot.slane %v7638_v15, 7  ;;  %v9160_v11 = vrot.slane %v7647_v59, 1  ;;  %v9161_v14 = vrot.slane %v7668_v28, 7  ;;  %v2090_v15 = vld [vmem:[#allocation2 + $0x340] sm:$0x80] }
 0x244   : > { %v1448_v40 = vadd.f32 %v1384_v41, %v1280_v17  ;;  %v1849_v2 = vsel %vm1729_vm2, %v9158_v47, %v1848_v3  ;;  %v888_v6 = vmul.f32 %v5186_v22, %v784_v19  ;;  %v3753_v24 = vadd.f32 %v3600_v45, %v3168_v61  ;;  %v3987_v47 = vld [vmem:[#allocation2 + $0x390] sm:$0xfe] }
 0x245   : > { %v2433_v18 = vsel %vm1008_vm1, %v9159_v4, %v2432_v63  ;;  %v3017_v51 = vsel %vm1729_vm2, %v9160_v11, %v3016_v58  ;;  %v3602_v32 = vsel %vm1008_vm1, %v9161_v14, %v3601_v48  ;;  %v4321_v12 = vrot.slane %v4082_v62, 1  ;;  %v7774_v58 = vld [vmem:[#allocation2 + $0x390] sm:$0xff]  ;;  %v7786_v11 = vld [vmem:[#allocation2 + $0x3a0] sm:$0xff] }
 0x246   : > { %v2001_v13 = vadd.f32 %v1849_v2, %v1448_v40  ;;  %v7753_v41 = vmul.f32 %v7382_v57, %v5186_v22  ;;  %v696_v26 = vadd.f32 %v8978_v0, %v621_v54  ;;  %v1129_v59 = vrot.slane %v888_v6, 7  ;;  %v9162_v2 = vld [vmem:[#allocation12_spill] sm:$0xff] }
 0x247   : > { %v1385_v9 = vmul.f32 %v7382_v57, %v8963_v56  ;;  %v1609_v28 = vmul.f32 %v5206_v29, %v1513_v8  ;;  %v3921_v34 = vadd.f32 %v3857_v53, %v3753_v24  ;;  %v7762_v20 = vmul.f32 %v7394_v52, %v5206_v29 }
 0x248   : > { %v2585_v3 = vadd.f32 %v2433_v18, %v2001_v13  ;;  %v8817_v45 = vrot.slane %v7753_v41, 7  ;;  %v2194_v7 = vmul.f32 %v5210_v31, %v2090_v15  ;;  %v7767_v46 = vmul.f32 %v7578_v50, %v5210_v31  ;;  %v785_v13 = vld [vmem:[#allocation2 + $0x308] sm:$0x80] }
 0x249   : > { %v1850_v21 = vrot.slane %v1609_v28, 1  ;;  %v2778_v57 = vmul.f32 %v5226_v36, %v2674_v39  ;;  %v4473_v17 = vadd.f32 %v4320_v43, %v3921_v34  ;;  %v8816_v19 = vrot.slane %v7762_v20, 1 }
 0x24a   : > { %v3169_v53 = vadd.f32 %v3017_v51, %v2585_v3  ;;  %v1131_v63 = vsel %vm1008_vm1, %v1129_v59, %v8817_v45  ;;  %v2434_v62 = vrot.slane %v2194_v7, 7  ;;  %v8812_v61 = vrot.slane %v7767_v46, 7  ;;  %v1514_v3 = vld [vmem:[#allocation2 + $0x318] sm:$0xfe] }
 0x24b   : > { %v1281_v48 = vadd.f32 %v1131_v63, %v696_v26  ;;  %v7779_v40 = vmul.f32 %v7590_v1, %v5226_v36  ;;  %4537 = vst [vmem:[%s5607_s4 + $0x170] sm:$0xff] %v4473_v17  ;;  %v9163_v54 = vrot.slane %v9162_v2, 1  ;;  %v3018_v4 = vrot.slane %v2778_v57, 1  ;;  %v9164_v63 = vld [vmem:[#allocation36_spill] sm:$0xff] }
 0x24c   : > { %v3754_v43 = vadd.f32 %v3602_v32, %v3169_v53  ;;  %v3363_v18 = vmul.f32 %v5230_v38, %v3259_v27  ;;  %v1852_v14 = vsel %vm1729_vm2, %v1850_v21, %v8816_v19  ;;  %v7794_v24 = vmul.f32 %v5230_v38, %v7774_v58  ;;  %v550_v32 = vld [vmem:[%s5076_s21 + $0x188] sm:$0xff] }
 0x24d   : > { %v4322_v8 = vsel %vm1729_vm2, %v9163_v54, %v4321_v12  ;;  %v1449_v51 = vadd.f32 %v1385_v9, %v1281_v48  ;;  %v8811_v6 = vrot.slane %v7779_v40, 1  ;;  %v2436_v12 = vsel %vm1008_vm1, %v2434_v62, %v8812_v61  ;;  %v2091_v48 = vld [vmem:[#allocation2 + $0x348] sm:$0x80]  ;;  %v2675_v62 = vld [vmem:[#allocation2 + $0x358] sm:$0xfe] }
 0x24e   : > { %v3922_v15 = vadd.f32 %v3858_v5, %v3754_v43  ;;  %v3603_v39 = vrot.slane %v3363_v18, 7  ;;  %v4083_v26 = vmul.f32 %v7310_v44, %v3987_v47  ;;  %v8810_v9 = vrot.slane %v7794_v24, 7 }
 0x24f   : > { %v2002_v59 = vadd.f32 %v1852_v14, %v1449_v51  ;;  %v3859_v28 = vmul.f32 %v8966_v33, %v7774_v58  ;;  %v7806_v34 = vmul.f32 %v7310_v44, %v7786_v11  ;;  %v3020_v21 = vsel %vm1729_vm2, %v3018_v4, %v8811_v6  ;;  %v9165_v51 = vld [vmem:[#allocation41_spill] sm:$0xff] }
 0x250   : > { %v4474_v5 = vadd.f32 %v4322_v8, %v3922_v15  ;;  %v622_v7 = vmul.f32 %v8967_v16, %v550_v32  ;;  %v889_v57 = vmul.f32 %v5188_v23, %v785_v13  ;;  %v3605_v17 = vsel %vm1008_vm1, %v3603_v39, %v8810_v9  ;;  %v9166_v15 = vld [vmem:[#allocation10_spill] sm:$0xff]  ;;  %v551_v9 = vld [vmem:[%s5076_s21 + $0x190] sm:$0xff] }
 0x251   : > { %v2586_v27 = vadd.f32 %v2436_v12, %v2002_v59  ;;  %v4323_v53 = vrot.slane %v4083_v26, 1  ;;  %v7818_v44 = vmul.f32 %v9164_v63, %v5188_v23  ;;  %v8815_v47 = vrot.slane %v7806_v34, 1  ;;  %v3260_v26 = vld [vmem:[#allocation2 + $0x388] sm:$0x80] }
 0x252   : > { %4538 = vst [vmem:[%s5607_s4 + $0x178] sm:$0xff] %v4474_v5  ;;  %v697_v43 = vadd.f32 %v8970_v55, %v622_v7  ;;  %v1132_v2 = vrot.slane %v889_v57, 7  ;;  %v1610_v54 = vmul.f32 %v5208_v30, %v1514_v3  ;;  %v1386_v18 = vmul.f32 %v9164_v63, %v8972_v60  ;;  %v7845_v7 = vld [vmem:[#allocation2 + $0x398] sm:$0xff] }
 0x253   : > { %v3170_v8 = vadd.f32 %v3020_v21, %v2586_v27  ;;  %v8809_v4 = vrot.slane %v7818_v44, 7  ;;  %v7829_v14 = vmul.f32 %v9165_v51, %v5208_v30  ;;  %v2195_v13 = vmul.f32 %v5224_v35, %v2091_v48  ;;  %9167 = vst [vmem:[#allocation15_spill] sm:$0xff] %v7845_v7  ;;  %v3988_v48 = vld [vmem:[#allocation2 + $0x398] sm:$0xfe] }
 0x254   : > { %v1853_v32 = vrot.slane %v1610_v54, 1  ;;  %v7834_v12 = vmul.f32 %v9166_v15, %v5224_v35  ;;  %v2779_v39 = vmul.f32 %v5228_v37, %v2675_v62  ;;  %v7843_v21 = vmul.f32 %v7657_v25, %v5228_v37 }
 0x255   : > { %v3755_v59 = vadd.f32 %v3605_v17, %v3170_v8  ;;  %v1134_v3 = vsel %vm1008_vm1, %v1132_v2, %v8809_v4  ;;  %v8814_v5 = vrot.slane %v7829_v14, 1  ;;  %v4325_v57 = vsel %vm1729_vm2, %v4323_v53, %v8815_v47  ;;  %v7853_v4 = vld [vmem:[#allocation2 + $0x3a8] sm:$0xff] }
 0x256   : > { %v1282_v27 = vadd.f32 %v1134_v3, %v697_v43  ;;  %v2437_v63 = vrot.slane %v2195_v13, 7  ;;  %v8813_v17 = vrot.slane %v7834_v12, 7  ;;  %v3021_v54 = vrot.slane %v2779_v39, 1  ;;  %9168 = vst [vmem:[#allocation9_spill] sm:$0xff] %v7853_v4  ;;  %v788_v43 = vld [vmem:[#allocation2 + $0x320] sm:$0x7f] }
 0x257   : > { %v3923_v62 = vadd.f32 %v3859_v28, %v3755_v59  ;;  %v8820_v2 = vrot.slane %v7843_v21, 1  ;;  %v3364_v8 = vmul.f32 %v5244_v42, %v3260_v26  ;;  %v1855_v61 = vsel %vm1729_vm2, %v1853_v32, %v8814_v5  ;;  %v1515_v13 = vld [vmem:[#allocation2 + $0x330] sm:$0x1]  ;;  %v7871_v32 = vld [vmem:[%s8609_s1 + $0x18] ss:$0 sm:$0xff] }
 0x258   : > { %v1450_v6 = vadd.f32 %v1386_v18, %v1282_v27  ;;  %v2439_v53 = vsel %vm1008_vm1, %v2437_v63, %v8813_v17  ;;  %v7864_v28 = vmul.f32 %v5244_v42, %v7845_v7  ;;  %v3860_v18 = vmul.f32 %v8977_v10, %v7845_v7 }
 0x259   : > { %v4475_v39 = vadd.f32 %v4325_v57, %v3923_v62  ;;  %v3606_v26 = vrot.slane %v3364_v8, 7  ;;  %v4084_v59 = vmul.f32 %v7871_v32, %v3988_v48  ;;  %v7877_v63 = vmul.f32 %v7871_v32, %v7853_v4  ;;  %v2094_v62 = vld [vmem:[#allocation2 + $0x360] sm:$0x7f]  ;;  %v2678_v8 = vld [vmem:[#allocation2 + $0x370] sm:$0x1] }
 0x25a   : > { %v2003_v3 = vadd.f32 %v1855_v61, %v1450_v6  ;;  %v623_v57 = vmul.f32 %v8976_v49, %v551_v9  ;;  %v3023_v17 = vsel %vm1729_vm2, %v3021_v54, %v8820_v2  ;;  %v892_v47 = vmul.f32 %v5186_v22, %v788_v43  ;;  %v3263_v6 = vld [vmem:[#allocation2 + $0x3a0] sm:$0x7f] }
 0x25b   : > { %4539 = vst [vmem:[%s5607_s4 + $0x180] sm:$0xff] %v4475_v39  ;;  %v4326_v5 = vrot.slane %v4084_v59, 1  ;;  %v1613_v61 = vmul.f32 %v5206_v29, %v1515_v13  ;;  %v8823_v19 = vrot.slane %v7877_v63, 1  ;;  %v1387_v9 = vmul.f32 %v7394_v52, %v8963_v56  ;;  %v3989_v59 = vld [vmem:[#allocation2 + $0x3b0] sm:$0x1] }
 0x25c   : > { %v2587_v48 = vadd.f32 %v2439_v53, %v2003_v3  ;;  %v698_v45 = vadd.f32 %v8978_v0, %v623_v57  ;;  %v1135_v39 = vrot.slane %v892_v47, 7  ;;  %v2198_v7 = vmul.f32 %v5210_v31, %v2094_v62  ;;  %v552_v57 = vld [vmem:[%s5076_s21 + $0x198] sm:$0xff]  ;;  %v789_v52 = vld [vmem:[#allocation2 + $0x328] sm:$0x7f] }
 0x25d   : > { %v1856_v27 = vrot.slane %v1613_v61, 1  ;;  %v2782_v54 = vmul.f32 %v5226_v36, %v2678_v8  ;;  %v9169_v2 = vrot.slane %v7864_v28, 7  ;;  %v4328_v53 = vsel %vm1729_vm2, %v4326_v5, %v8823_v19  ;;  %v7908_v5 = vld [vmem:[%s8609_s1 + $0x10] ss:$0 sm:$0xff] }
 0x25e   : > { %v3171_v43 = vadd.f32 %v3023_v17, %v2587_v48  ;;  %v3367_v3 = vmul.f32 %v5230_v38, %v3263_v6  ;;  %v9170_v47 = vrot.slane %v7753_v41, 7  ;;  %v2440_v61 = vrot.slane %v2198_v7, 7  ;;  %v1516_v6 = vld [vmem:[#allocation2 + $0x338] sm:$0x1] }
 0x25f   : > { %v3608_v13 = vsel %vm1008_vm1, %v3606_v26, %v9169_v2  ;;  %v3024_v8 = vrot.slane %v2782_v54, 1  ;;  %v3861_v17 = vmul.f32 %v8966_v33, %v7786_v11  ;;  %v4087_v26 = vmul.f32 %v7908_v5, %v3989_v59 }
 0x260   : > { %v1136_v62 = vsel %vm1008_vm1, %v9170_v47, %v1135_v39  ;;  %v3756_v48 = vadd.f32 %v3608_v13, %v3171_v43  ;;  %v3609_v2 = vrot.slane %v3367_v3, 7  ;;  %v9171_v41 = vrot.slane %v7762_v20, 1  ;;  %v2095_v13 = vld [vmem:[#allocation2 + $0x368] sm:$0x7f]  ;;  %v2679_v20 = vld [vmem:[#allocation2 + $0x378] sm:$0x1] }
 0x261   : > { %v1283_v25 = vadd.f32 %v1136_v62, %v698_v45  ;;  %v9172_v7 = vrot.slane %v7767_v46, 7  ;;  %v624_v43 = vmul.f32 %v8967_v16, %v552_v57  ;;  %v893_v45 = vmul.f32 %v5188_v23, %v789_v52 }
 0x262   : > { %v1857_v39 = vsel %vm1729_vm2, %v9171_v41, %v1856_v27  ;;  %v3924_v3 = vadd.f32 %v3860_v18, %v3756_v48  ;;  %v9173_v62 = vrot.slane %v7779_v40, 1  ;;  %v4329_v19 = vrot.slane %v4087_v26, 1  ;;  %v3264_v27 = vld [vmem:[#allocation2 + $0x3a8] sm:$0x7f] }
 0x263   : > { %v2441_v54 = vsel %vm1008_vm1, %v9172_v7, %v2440_v61  ;;  %v1451_v47 = vadd.f32 %v1387_v9, %v1283_v25  ;;  %v9174_v46 = vrot.slane %v7794_v24, 7  ;;  %v699_v57 = vadd.f32 %v8970_v55, %v624_v43  ;;  %v553_v43 = vld [vmem:[%s5076_s21 + $0x1a0] sm:$0xff] }
 0x264   : > { %v3025_v59 = vsel %vm1729_vm2, %v9173_v62, %v3024_v8  ;;  %v1137_v41 = vrot.slane %v893_v45, 7  ;;  %v1614_v52 = vmul.f32 %v5208_v30, %v1516_v6  ;;  %v4476_v18 = vadd.f32 %v4328_v53, %v3924_v3  ;;  %v3990_v8 = vld [vmem:[#allocation2 + $0x3b8] sm:$0x1] }
 0x265   : > { %v3610_v61 = vsel %vm1008_vm1, %v9174_v46, %v3609_v2  ;;  %v2004_v25 = vadd.f32 %v1857_v39, %v1451_v47  ;;  %v1388_v40 = vmul.f32 %v9165_v51, %v8972_v60  ;;  %v2199_v9 = vmul.f32 %v5224_v35, %v2095_v13  ;;  %v790_v13 = vld [vmem:[#allocation2 + $0x340] sm:$0x80] }
 0x266   : > { %v9175_v48 = vrot.slane %v7818_v44, 7  ;;  %v1858_v24 = vrot.slane %v1614_v52, 1  ;;  %v2783_v2 = vmul.f32 %v5228_v37, %v2679_v20  ;;  %v3368_v7 = vmul.f32 %v5244_v42, %v3264_v27  ;;  %4540 = vst [vmem:[%s5607_s4 + $0x188] sm:$0xff] %v4476_v18 }
 0x267   : > { %v2588_v6 = vadd.f32 %v2441_v54, %v2004_v25  ;;  %v9176_v53 = vrot.slane %v7806_v34, 1  ;;  %v2442_v45 = vrot.slane %v2199_v9, 7  ;;  %v3862_v44 = vmul.f32 %v8977_v10, %v7853_v4 }
 0x268   : > { %v1138_v26 = vsel %vm1008_vm1, %v9175_v48, %v1137_v41  ;;  %v3026_v3 = vrot.slane %v2783_v2, 1  ;;  %v3611_v47 = vrot.slane %v3368_v7, 7  ;;  %v4088_v62 = vmul.f32 %v7871_v32, %v3990_v8  ;;  %v1517_v41 = vld [vmem:[#allocation2 + $0x350] sm:$0xfe] }
 0x269   : > { %v4330_v39 = vsel %vm1729_vm2, %v9176_v53, %v4329_v19  ;;  %v1284_v51 = vadd.f32 %v1138_v26, %v699_v57  ;;  %v3172_v20 = vadd.f32 %v3025_v59, %v2588_v6  ;;  %v9177_v27 = vrot.slane %v7829_v14, 1  ;;  %v2680_v26 = vld [vmem:[#allocation2 + $0x390] sm:$0xfe] }
 0x26a   : > { %v625_v34 = vmul.f32 %v8976_v49, %v553_v43  ;;  %v9178_v19 = vrot.slane %v7834_v12, 7  ;;  %v9179_v52 = vrot.slane %v7843_v21, 1  ;;  %v9180_v25 = vrot.slane %v7864_v28, 7  ;;  %v2096_v12 = vld [vmem:[#allocation2 + $0x380] sm:$0x80] }
 0x26b   : > { %v1452_v46 = vadd.f32 %v1388_v40, %v1284_v51  ;;  %v1859_v54 = vsel %vm1729_vm2, %v9177_v27, %v1858_v24  ;;  %v894_v40 = vmul.f32 %v5186_v22, %v790_v13  ;;  %v3757_v14 = vadd.f32 %v3610_v61, %v3172_v20  ;;  %v3265_v13 = vld [vmem:[#allocation2 + $0x3c0] sm:$0x80]  ;;  %v7980_v20 = vld [vmem:[#allocation2 + $0x3d0] sm:$0xff] }
 0x26c   : > { %v2443_v57 = vsel %vm1008_vm1, %v9178_v19, %v2442_v45  ;;  %v3027_v18 = vsel %vm1729_vm2, %v9179_v52, %v3026_v3  ;;  %v3612_v59 = vsel %vm1008_vm1, %v9180_v25, %v3611_v47  ;;  %v4331_v8 = vrot.slane %v4088_v62, 1  ;;  %v7992_v25 = vld [vmem:[#allocation2 + $0x3e0] sm:$0xff] }
 0x26d   : > { %v2005_v9 = vadd.f32 %v1859_v54, %v1452_v46  ;;  %v7959_v48 = vmul.f32 %v7578_v50, %v5186_v22  ;;  %v700_v24 = vadd.f32 %v8978_v0, %v625_v34  ;;  %v1139_v21 = vrot.slane %v894_v40, 7 }
 0x26e   : > { %v1389_v2 = vmul.f32 %v7578_v50, %v8963_v56  ;;  %v1615_v28 = vmul.f32 %v5206_v29, %v1517_v41  ;;  %v3925_v7 = vadd.f32 %v3861_v17, %v3757_v14  ;;  %v7968_v6 = vmul.f32 %v7590_v1, %v5206_v29  ;;  %v3991_v41 = vld [vmem:[#allocation2 + $0x3d0] sm:$0xfe] }
 0x26f   : > { %v2589_v43 = vadd.f32 %v2443_v57, %v2005_v9  ;;  %v8832_v61 = vrot.slane %v7959_v48, 7  ;;  %v2200_v51 = vmul.f32 %v5210_v31, %v2096_v12  ;;  %v7973_v45 = vmul.f32 %v7774_v58, %v5210_v31 }
 0x270   : > { %v1860_v53 = vrot.slane %v1615_v28, 1  ;;  %v2784_v50 = vmul.f32 %v5226_v36, %v2680_v26  ;;  %v4477_v3 = vadd.f32 %v4330_v39, %v3925_v7  ;;  %v8828_v62 = vrot.slane %v7968_v6, 1 }
 0x271   : > { %v3173_v17 = vadd.f32 %v3027_v18, %v2589_v43  ;;  %v1141_v47 = vsel %vm1008_vm1, %v1139_v21, %v8832_v61  ;;  %v2444_v27 = vrot.slane %v2200_v51, 7  ;;  %v8827_v54 = vrot.slane %v7973_v45, 7 }
 0x272   : > { %v1285_v46 = vadd.f32 %v1141_v47, %v700_v24  ;;  %v7985_v34 = vmul.f32 %v7786_v11, %v5226_v36  ;;  %4541 = vst [vmem:[%s5607_s4 + $0x190] sm:$0xff] %v4477_v3  ;;  %v9181_v19 = vrot.slane %v7877_v63, 1  ;;  %v3028_v52 = vrot.slane %v2784_v50, 1  ;;  %v791_v63 = vld [vmem:[#allocation2 + $0x348] sm:$0x80] }
 0x273   : > { %v3758_v39 = vadd.f32 %v3612_v59, %v3173_v17  ;;  %v3369_v18 = vmul.f32 %v5230_v38, %v3265_v13  ;;  %v1862_v14 = vsel %vm1729_vm2, %v1860_v53, %v8828_v62  ;;  %v8000_v12 = vmul.f32 %v5230_v38, %v7980_v20  ;;  %v554_v59 = vld [vmem:[%s5076_s21 + $0x1a8] sm:$0xff]  ;;  %v1518_v53 = vld [vmem:[#allocation2 + $0x358] sm:$0xfe] }
 0x274   : > { %v4332_v57 = vsel %vm1729_vm2, %v9181_v19, %v4331_v8  ;;  %v1453_v40 = vadd.f32 %v1389_v2, %v1285_v46  ;;  %v8826_v9 = vrot.slane %v7985_v34, 1  ;;  %v2446_v8 = vsel %vm1008_vm1, %v2444_v27, %v8827_v54  ;;  %v2097_v27 = vld [vmem:[#allocation2 + $0x388] sm:$0x80]  ;;  %v555_v54 = vld [vmem:[%s5076_s21 + $0x1b0] sm:$0xff] }
 0x275   : > { %v3926_v26 = vadd.f32 %v3862_v44, %v3758_v39  ;;  %v3613_v24 = vrot.slane %v3369_v18, 7  ;;  %v4089_v21 = vmul.f32 %v7908_v5, %v3991_v41  ;;  %v8824_v28 = vrot.slane %v8000_v12, 7  ;;  %v2681_v41 = vld [vmem:[#allocation2 + $0x398] sm:$0xfe] }
 0x276   : > { %v2006_v2 = vadd.f32 %v1862_v14, %v1453_v40  ;;  %v3863_v7 = vmul.f32 %v8966_v33, %v7980_v20  ;;  %v8012_v43 = vmul.f32 %v7908_v5, %v7992_v25  ;;  %v3030_v51 = vsel %vm1729_vm2, %v3028_v52, %v8826_v9  ;;  %v8059_v9 = vld [vmem:[#allocation2 + $0x3e8] sm:$0xff] }
 0x277   : > { %v4478_v44 = vadd.f32 %v4332_v57, %v3926_v26  ;;  %v626_v50 = vmul.f32 %v8967_v16, %v554_v59  ;;  %v895_v13 = vmul.f32 %v5188_v23, %v791_v63  ;;  %v3615_v17 = vsel %vm1008_vm1, %v3613_v24, %v8824_v28  ;;  %v9182_v59 = vld [vmem:[#allocation38_spill] sm:$0xff]  ;;  %v9183_v24 = vld [vmem:[#allocation15_spill] sm:$0xff]  ;;  %9185 = vst [vmem:[#allocation11_spill] sm:$0xff] %v8059_v9 }
 0x278   : > { %v2590_v3 = vadd.f32 %v2446_v8, %v2006_v2  ;;  %v4333_v47 = vrot.slane %v4089_v21, 1  ;;  %v8024_v46 = vmul.f32 %v9166_v15, %v5188_v23  ;;  %v8831_v39 = vrot.slane %v8012_v43, 1 }
 0x279   : > { %4542 = vst [vmem:[%s5607_s4 + $0x198] sm:$0xff] %v4478_v44  ;;  %v701_v19 = vadd.f32 %v8970_v55, %v626_v50  ;;  %v1142_v57 = vrot.slane %v895_v13, 7  ;;  %v1616_v52 = vmul.f32 %v5208_v30, %v1518_v53  ;;  %v1390_v14 = vmul.f32 %v9166_v15, %v8972_v60  ;;  %v3266_v53 = vld [vmem:[#allocation2 + $0x3c8] sm:$0x80]  ;;  %v8051_v13 = vld [vmem:[#allocation2 + $0x3d8] sm:$0xff] }
 0x27a   : > { %v3174_v18 = vadd.f32 %v3030_v51, %v2590_v3  ;;  %v8825_v40 = vrot.slane %v8024_v46, 7  ;;  %v8035_v63 = vmul.f32 %v9182_v59, %v5208_v30  ;;  %v2201_v8 = vmul.f32 %v5224_v35, %v2097_v27  ;;  %9184 = vst [vmem:[#allocation19_spill] sm:$0xff] %v8051_v13 }
 0x27b   : > { %v1863_v26 = vrot.slane %v1616_v52, 1  ;;  %v8040_v21 = vmul.f32 %v9183_v24, %v5224_v35  ;;  %v2785_v2 = vmul.f32 %v5228_v37, %v2681_v41  ;;  %v8049_v50 = vmul.f32 %v7853_v4, %v5228_v37  ;;  %v3992_v52 = vld [vmem:[#allocation2 + $0x3d8] sm:$0xfe] }
 0x27c   : > { %v3759_v44 = vadd.f32 %v3615_v17, %v3174_v18  ;;  %v1144_v15 = vsel %vm1008_vm1, %v1142_v57, %v8825_v40  ;;  %v8829_v51 = vrot.slane %v8035_v63, 1  ;;  %v4335_v3 = vsel %vm1729_vm2, %v4333_v47, %v8831_v39  ;;  %v2684_v39 = vld [vmem:[#allocation2 + $0x3b0] sm:$0x1] }
 0x27d   : > { %v1286_v27 = vadd.f32 %v1144_v15, %v701_v19  ;;  %v2447_v41 = vrot.slane %v2201_v8, 7  ;;  %v8830_v17 = vrot.slane %v8040_v21, 7  ;;  %v3031_v28 = vrot.slane %v2785_v2, 1  ;;  %v794_v8 = vld [vmem:[#allocation2 + $0x360] sm:$0x7f] }
 0x27e   : > { %v3927_v18 = vadd.f32 %v3863_v7, %v3759_v44  ;;  %v8837_v57 = vrot.slane %v8049_v50, 1  ;;  %v3370_v40 = vmul.f32 %v5244_v42, %v3266_v53  ;;  %v1865_v47 = vsel %vm1729_vm2, %v1863_v26, %v8829_v51  ;;  %v1519_v2 = vld [vmem:[#allocation2 + $0x370] sm:$0x1] }
 0x27f   : > { %v1454_v62 = vadd.f32 %v1390_v14, %v1286_v27  ;;  %v2449_v19 = vsel %vm1008_vm1, %v2447_v41, %v8830_v17  ;;  %v8070_v7 = vmul.f32 %v5244_v42, %v8051_v13  ;;  %v3864_v14 = vmul.f32 %v8977_v10, %v8051_v13  ;;  %v2100_v17 = vld [vmem:[#allocation2 + $0x3a0] sm:$0x7f] }
 0x280   : > { %v4479_v53 = vadd.f32 %v4335_v3, %v3927_v18  ;;  %v3616_v44 = vrot.slane %v3370_v40, 7  ;;  %v4090_v15 = vmul.f32 %v7871_v32, %v3992_v52  ;;  %v8078_v51 = vmul.f32 %v7871_v32, %v8059_v9  ;;  %v3269_v52 = vld [vmem:[#allocation2 + $0x3e0] sm:$0x7f] }
 0x281   : > { %v2007_v27 = vadd.f32 %v1865_v47, %v1454_v62  ;;  %v627_v41 = vmul.f32 %v8976_v49, %v555_v54  ;;  %v3033_v40 = vsel %vm1729_vm2, %v3031_v28, %v8837_v57  ;;  %v898_v18 = vmul.f32 %v5186_v22, %v794_v8 }
 0x282   : > { %9186 = vst [vmem:[#allocation24_spill] sm:$0xff] %v8078_v51  ;;  %4543 = vst [vmem:[%s5607_s4 + $0x1a0] sm:$0xff] %v4479_v53  ;;  %v4336_v3 = vrot.slane %v4090_v15, 1  ;;  %v1619_v62 = vmul.f32 %v5206_v29, %v1519_v2  ;;  %v8839_v61 = vrot.slane %v8078_v51, 1  ;;  %v1391_v54 = vmul.f32 %v7590_v1, %v8963_v56  ;;  %v3993_v15 = vld [vmem:[#allocation2 + $0x3f0] sm:$0x1] }
 0x283   : > { %v2591_v47 = vadd.f32 %v2449_v19, %v2007_v27  ;;  %v702_v26 = vadd.f32 %v8978_v0, %v627_v41  ;;  %v1145_v53 = vrot.slane %v898_v18, 7  ;;  %v2204_v4 = vmul.f32 %v5210_v31, %v2100_v17  ;;  %v556_v41 = vld [vmem:[%s5076_s21 + $0x1b8] sm:$0xff]  ;;  %v795_v1 = vld [vmem:[#allocation2 + $0x368] sm:$0x7f] }
 0x284   : > { %v1866_v13 = vrot.slane %v1619_v62, 1  ;;  %v2788_v28 = vmul.f32 %v5226_v36, %v2684_v39  ;;  %v9187_v57 = vrot.slane %v8070_v7, 7  ;;  %v4338_v19 = vsel %vm1729_vm2, %v4336_v3, %v8839_v61  ;;  %v1520_v51 = vld [vmem:[#allocation2 + $0x378] sm:$0x1] }
 0x285   : > { %v3175_v8 = vadd.f32 %v3033_v40, %v2591_v47  ;;  %v3373_v27 = vmul.f32 %v5230_v38, %v3269_v52  ;;  %v9188_v18 = vrot.slane %v7959_v48, 7  ;;  %v2450_v62 = vrot.slane %v2204_v4, 7 }
 0x286   : > { %v3618_v2 = vsel %vm1008_vm1, %v3616_v44, %v9187_v57  ;;  %v3034_v39 = vrot.slane %v2788_v28, 1  ;;  %v3865_v40 = vmul.f32 %v8966_v33, %v7992_v25  ;;  %v4093_v44 = vmul.f32 %v7908_v5, %v3993_v15  ;;  %v2101_v28 = vld [vmem:[#allocation2 + $0x3a8] sm:$0x7f] }
 0x287   : > { %v1146_v17 = vsel %vm1008_vm1, %v9188_v18, %v1145_v53  ;;  %v3760_v47 = vadd.f32 %v3618_v2, %v3175_v8  ;;  %v3619_v57 = vrot.slane %v3373_v27, 7  ;;  %v9189_v3 = vrot.slane %v7968_v6, 1  ;;  %v2685_v6 = vld [vmem:[#allocation2 + $0x3b8] sm:$0x1] }
 0x288   : > { %v1287_v24 = vadd.f32 %v1146_v17, %v702_v26  ;;  %v9190_v61 = vrot.slane %v7973_v45, 7  ;;  %v628_v4 = vmul.f32 %v8967_v16, %v556_v41  ;;  %v899_v53 = vmul.f32 %v5188_v23, %v795_v1  ;;  %v3994_v17 = vld [vmem:[#allocation2 + $0x3f8] sm:$0x1] }
 0x289   : > { %v1867_v52 = vsel %vm1729_vm2, %v9189_v3, %v1866_v13  ;;  %v3928_v18 = vadd.f32 %v3864_v14, %v3760_v47  ;;  %v9191_v26 = vrot.slane %v7985_v34, 1  ;;  %v4339_v2 = vrot.slane %v4093_v44, 1  ;;  %v3270_v13 = vld [vmem:[#allocation2 + $0x3e8] sm:$0x7f]  ;;  %v557_v44 = vld [vmem:[%s5076_s21 + $0x1c0] sm:$0xff] }
 0x28a   : > { %v2451_v48 = vsel %vm1008_vm1, %v9190_v61, %v2450_v62  ;;  %v1455_v8 = vadd.f32 %v1391_v54, %v1287_v24  ;;  %v9192_v45 = vrot.slane %v8000_v12, 7  ;;  %v703_v27 = vadd.f32 %v8970_v55, %v628_v4  ;;  %v796_v4 = vld [vmem:[#allocation2 + $0x380] sm:$0x80] }
 0x28b   : > { %v3035_v15 = vsel %vm1729_vm2, %v9191_v26, %v3034_v39  ;;  %v1147_v41 = vrot.slane %v899_v53, 7  ;;  %v1620_v1 = vmul.f32 %v5208_v30, %v1520_v51  ;;  %v4480_v14 = vadd.f32 %v4338_v19, %v3928_v18 }
 0x28c   : > { %v3620_v61 = vsel %vm1008_vm1, %v9192_v45, %v3619_v57  ;;  %v2008_v24 = vadd.f32 %v1867_v52, %v1455_v8  ;;  %v1392_v34 = vmul.f32 %v9182_v59, %v8972_v60  ;;  %v2205_v54 = vmul.f32 %v5224_v35, %v2101_v28 }
 0x28d   : > { %v9193_v62 = vrot.slane %v8024_v46, 7  ;;  %v1868_v12 = vrot.slane %v1620_v1, 1  ;;  %v2789_v47 = vmul.f32 %v5228_v37, %v2685_v6  ;;  %v3374_v57 = vmul.f32 %v5244_v42, %v3270_v13  ;;  %4544 = vst [vmem:[%s5607_s4 + $0x1a8] sm:$0xff] %v4480_v14  ;;  %v1521_v13 = vld [vmem:[#allocation2 + $0x390] sm:$0xfe] }
 0x28e   : > { %v2592_v51 = vadd.f32 %v2451_v48, %v2008_v24  ;;  %v9194_v19 = vrot.slane %v8012_v43, 1  ;;  %v2452_v52 = vrot.slane %v2205_v54, 7  ;;  %v3866_v46 = vmul.f32 %v8977_v10, %v8059_v9 }
 0x28f   : > { %v1148_v39 = vsel %vm1008_vm1, %v9193_v62, %v1147_v41  ;;  %v3036_v53 = vrot.slane %v2789_v47, 1  ;;  %v3621_v28 = vrot.slane %v3374_v57, 7  ;;  %v4094_v18 = vmul.f32 %v7871_v32, %v3994_v17  ;;  %v2686_v17 = vld [vmem:[#allocation2 + $0x3d0] sm:$0xfe] }
 0x290   : > { %v4340_v3 = vsel %vm1729_vm2, %v9194_v19, %v4339_v2  ;;  %v1288_v59 = vadd.f32 %v1148_v39, %v703_v27  ;;  %v3176_v8 = vadd.f32 %v3035_v15, %v2592_v51  ;;  %v9195_v6 = vrot.slane %v8035_v63, 1 }
 0x291   : > { %v629_v43 = vmul.f32 %v8976_v49, %v557_v44  ;;  %v9196_v2 = vrot.slane %v8040_v21, 7  ;;  %v9197_v27 = vrot.slane %v8049_v50, 1  ;;  %v9198_v1 = vrot.slane %v8070_v7, 7  ;;  %v2102_v21 = vld [vmem:[#allocation2 + $0x3c0] sm:$0x80] }
 0x292   : > { %v1456_v26 = vadd.f32 %v1392_v34, %v1288_v59  ;;  %v1869_v48 = vsel %vm1729_vm2, %v9195_v6, %v1868_v12  ;;  %v900_v14 = vmul.f32 %v5186_v22, %v796_v4  ;;  %v3761_v63 = vadd.f32 %v3620_v61, %v3176_v8  ;;  %v3271_v59 = vld [vmem:[#allocation2 + $0x400] sm:$0x80] }
 0x293   : > { %v2453_v45 = vsel %vm1008_vm1, %v9196_v2, %v2452_v52  ;;  %v3037_v41 = vsel %vm1729_vm2, %v9197_v27, %v3036_v53  ;;  %v3622_v15 = vsel %vm1008_vm1, %v9198_v1, %v3621_v28  ;;  %v4341_v34 = vrot.slane %v4094_v18, 1  ;;  %v8176_v28 = vld [vmem:[#allocation2 + $0x410] sm:$0xff] }
 0x294   : > { %v2009_v24 = vadd.f32 %v1869_v48, %v1456_v26  ;;  %v8155_v54 = vmul.f32 %v7774_v58, %v5186_v22  ;;  %v704_v62 = vadd.f32 %v8978_v0, %v629_v43  ;;  %v1149_v50 = vrot.slane %v900_v14, 7  ;;  %v3995_v48 = vld [vmem:[#allocation2 + $0x410] sm:$0xfe]  ;;  %v9199_v43 = vld [vmem:[#allocation24_spill] sm:$0xff] }
 0x295   : > { %v1393_v39 = vmul.f32 %v7774_v58, %v8963_v56  ;;  %v1621_v7 = vmul.f32 %v5206_v29, %v1521_v13  ;;  %v3929_v12 = vadd.f32 %v3865_v40, %v3761_v63  ;;  %v8164_v57 = vmul.f32 %v7786_v11, %v5206_v29 }
 0x296   : > { %v2593_v47 = vadd.f32 %v2453_v45, %v2009_v24  ;;  %v8848_v61 = vrot.slane %v8155_v54, 7  ;;  %v2206_v51 = vmul.f32 %v5210_v31, %v2102_v21  ;;  %v8169_v19 = vmul.f32 %v7980_v20, %v5210_v31  ;;  %v797_v21 = vld [vmem:[#allocation2 + $0x388] sm:$0x80] }
 0x297   : > { %v1870_v44 = vrot.slane %v1621_v7, 1  ;;  %v2790_v58 = vmul.f32 %v5226_v36, %v2686_v17  ;;  %v4481_v52 = vadd.f32 %v4340_v3, %v3929_v12  ;;  %v8844_v53 = vrot.slane %v8164_v57, 1 }
 0x298   : > { %v3177_v40 = vadd.f32 %v3037_v41, %v2593_v47  ;;  %v1151_v4 = vsel %vm1008_vm1, %v1149_v50, %v8848_v61  ;;  %v2454_v8 = vrot.slane %v2206_v51, 7  ;;  %v8843_v26 = vrot.slane %v8169_v19, 7  ;;  %v8188_v41 = vld [vmem:[#allocation2 + $0x420] sm:$0xff] }
 0x299   : > { %v1289_v18 = vadd.f32 %v1151_v4, %v704_v62  ;;  %v8181_v6 = vmul.f32 %v7992_v25, %v5226_v36  ;;  %4545 = vst [vmem:[%s5607_s4 + $0x1b0] sm:$0xff] %v4481_v52  ;;  %v9200_v13 = vrot.slane %v9199_v43, 1  ;;  %v3038_v45 = vrot.slane %v2790_v58, 1 }
 0x29a   : > { %v3762_v3 = vadd.f32 %v3622_v15, %v3177_v40  ;;  %v3375_v27 = vmul.f32 %v5230_v38, %v3271_v59  ;;  %v1872_v14 = vsel %vm1729_vm2, %v1870_v44, %v8844_v53  ;;  %v8196_v24 = vmul.f32 %v5230_v38, %v8176_v28  ;;  %v558_v15 = vld [vmem:[%s5076_s21 + $0x1c8] sm:$0xff]  ;;  %v1522_v44 = vld [vmem:[#allocation2 + $0x398] sm:$0xfe] }
 0x29b   : > { %v4342_v2 = vsel %vm1729_vm2, %v9200_v13, %v4341_v34  ;;  %v1457_v1 = vadd.f32 %v1393_v39, %v1289_v18  ;;  %v8842_v63 = vrot.slane %v8181_v6, 1  ;;  %v2456_v34 = vsel %vm1008_vm1, %v2454_v8, %v8843_v26  ;;  %v9201_v18 = vld [vmem:[#allocation15_spill] sm:$0xff] }
 0x29c   : > { %v3930_v17 = vadd.f32 %v3866_v46, %v3762_v3  ;;  %v3623_v62 = vrot.slane %v3375_v27, 7  ;;  %v4095_v50 = vmul.f32 %v7908_v5, %v3995_v48  ;;  %v8840_v7 = vrot.slane %v8196_v24, 7  ;;  %v2103_v48 = vld [vmem:[#allocation2 + $0x3c8] sm:$0x80]  ;;  %v2687_v3 = vld [vmem:[#allocation2 + $0x3d8] sm:$0xfe] }
 0x29d   : > { %v2010_v39 = vadd.f32 %v1872_v14, %v1457_v1  ;;  %v3867_v12 = vmul.f32 %v8966_v33, %v8176_v28  ;;  %v8208_v47 = vmul.f32 %v7908_v5, %v8188_v41  ;;  %v3040_v51 = vsel %vm1729_vm2, %v3038_v45, %v8842_v63  ;;  %v8255_v63 = vld [vmem:[#allocation2 + $0x428] sm:$0xff]  ;;  %v559_v26 = vld [vmem:[%s5076_s21 + $0x1d0] sm:$0xff] }
 0x29e   : > { %v4482_v46 = vadd.f32 %v4342_v2, %v3930_v17  ;;  %v630_v58 = vmul.f32 %v8967_v16, %v558_v15  ;;  %v901_v59 = vmul.f32 %v5188_v23, %v797_v21  ;;  %v3625_v40 = vsel %vm1008_vm1, %v3623_v62, %v8840_v7  ;;  %v9202_v15 = vld [vmem:[#allocation9_spill] sm:$0xff]  ;;  %v9203_v62 = vld [vmem:[#allocation19_spill] sm:$0xff] }
 0x29f   : > { %v2594_v52 = vadd.f32 %v2456_v34, %v2010_v39  ;;  %v4343_v4 = vrot.slane %v4095_v50, 1  ;;  %v8220_v8 = vmul.f32 %v9201_v18, %v5188_v23  ;;  %v8847_v43 = vrot.slane %v8208_v47, 1 }
 0x2a0   : > { %4546 = vst [vmem:[%s5607_s4 + $0x1b8] sm:$0xff] %v4482_v46  ;;  %v705_v13 = vadd.f32 %v8970_v55, %v630_v58  ;;  %v1152_v2 = vrot.slane %v901_v59, 7  ;;  %v1622_v45 = vmul.f32 %v5208_v30, %v1522_v44  ;;  %v1394_v14 = vmul.f32 %v9201_v18, %v8972_v60  ;;  %v3272_v44 = vld [vmem:[#allocation2 + $0x408] sm:$0x80] }
 0x2a1   : > { %v3178_v27 = vadd.f32 %v3040_v51, %v2594_v52  ;;  %v8841_v1 = vrot.slane %v8220_v8, 7  ;;  %v8231_v21 = vmul.f32 %v9202_v15, %v5208_v30  ;;  %v2207_v34 = vmul.f32 %v5224_v35, %v2103_v48  ;;  %v8247_v52 = vld [vmem:[#allocation2 + $0x418] sm:$0xff] }
 0x2a2   : > { %v1873_v17 = vrot.slane %v1622_v45, 1  ;;  %v8236_v50 = vmul.f32 %v9203_v62, %v5224_v35  ;;  %v2791_v39 = vmul.f32 %v5228_v37, %v2687_v3  ;;  %v8245_v59 = vmul.f32 %v8059_v9, %v5228_v37  ;;  %9204 = vst [vmem:[#allocation21_spill] sm:$0xff] %v8247_v52  ;;  %v3996_v45 = vld [vmem:[#allocation2 + $0x418] sm:$0xfe] }
 0x2a3   : > { %v3763_v46 = vadd.f32 %v3625_v40, %v3178_v27  ;;  %v1154_v51 = vsel %vm1008_vm1, %v1152_v2, %v8841_v1  ;;  %v8845_v58 = vrot.slane %v8231_v21, 1  ;;  %v4345_v18 = vsel %vm1729_vm2, %v4343_v4, %v8847_v43  ;;  %v2690_v43 = vld [vmem:[#allocation2 + $0x3f0] sm:$0x1] }
 0x2a4   : > { %v1290_v48 = vadd.f32 %v1154_v51, %v705_v13  ;;  %v2457_v3 = vrot.slane %v2207_v34, 7  ;;  %v8846_v40 = vrot.slane %v8236_v50, 7  ;;  %v3041_v7 = vrot.slane %v2791_v39, 1  ;;  %v800_v34 = vld [vmem:[#allocation2 + $0x3a0] sm:$0x7f] }
 0x2a5   : > { %v3931_v27 = vadd.f32 %v3867_v12, %v3763_v46  ;;  %v8852_v2 = vrot.slane %v8245_v59, 1  ;;  %v3376_v1 = vmul.f32 %v5244_v42, %v3272_v44  ;;  %v1875_v4 = vsel %vm1729_vm2, %v1873_v17, %v8845_v58  ;;  %v1523_v39 = vld [vmem:[#allocation2 + $0x3b0] sm:$0x1] }
 0x2a6   : > { %v1458_v53 = vadd.f32 %v1394_v14, %v1290_v48  ;;  %v2459_v13 = vsel %vm1008_vm1, %v2457_v3, %v8846_v40  ;;  %v8266_v12 = vmul.f32 %v5244_v42, %v8247_v52  ;;  %v3868_v14 = vmul.f32 %v8977_v10, %v8247_v52  ;;  %v2106_v40 = vld [vmem:[#allocation2 + $0x3e0] sm:$0x7f] }
 0x2a7   : > { %v4483_v44 = vadd.f32 %v4345_v18, %v3931_v27  ;;  %v3626_v46 = vrot.slane %v3376_v1, 7  ;;  %v4096_v51 = vmul.f32 %v7871_v32, %v3996_v45  ;;  %v8274_v58 = vmul.f32 %v7871_v32, %v8255_v63  ;;  %v3275_v45 = vld [vmem:[#allocation2 + $0x420] sm:$0x7f] }
 0x2a8   : > { %v2011_v48 = vadd.f32 %v1875_v4, %v1458_v53  ;;  %v631_v3 = vmul.f32 %v8976_v49, %v559_v26  ;;  %v3043_v1 = vsel %vm1729_vm2, %v3041_v7, %v8852_v2  ;;  %v904_v27 = vmul.f32 %v5186_v22, %v800_v34 }
 0x2a9   : > { %9205 = vst [vmem:[#allocation23_spill] sm:$0xff] %v8274_v58  ;;  %4547 = vst [vmem:[%s5607_s4 + $0x1c0] sm:$0xff] %v4483_v44  ;;  %v4346_v18 = vrot.slane %v4096_v51, 1  ;;  %v1625_v53 = vmul.f32 %v5206_v29, %v1523_v39  ;;  %v8854_v61 = vrot.slane %v8274_v58, 1  ;;  %v1395_v26 = vmul.f32 %v7786_v11, %v8963_v56  ;;  %v3997_v51 = vld [vmem:[#allocation2 + $0x430] sm:$0x1] }
 0x2aa   : > { %v2595_v4 = vadd.f32 %v2459_v13, %v2011_v48  ;;  %v706_v17 = vadd.f32 %v8978_v0, %v631_v3  ;;  %v1155_v44 = vrot.slane %v904_v27, 7  ;;  %v2210_v9 = vmul.f32 %v5210_v31, %v2106_v40  ;;  %v560_v3 = vld [vmem:[%s5076_s21 + $0x1d8] sm:$0xff]  ;;  %v801_v11 = vld [vmem:[#allocation2 + $0x3a8] sm:$0x7f] }
 0x2ab   : > { %v1876_v52 = vrot.slane %v1625_v53, 1  ;;  %v2794_v7 = vmul.f32 %v5226_v36, %v2690_v43  ;;  %v9206_v2 = vrot.slane %v8266_v12, 7  ;;  %v4348_v13 = vsel %vm1729_vm2, %v4346_v18, %v8854_v61  ;;  %v1524_v58 = vld [vmem:[#allocation2 + $0x3b8] sm:$0x1] }
 0x2ac   : > { %v3179_v34 = vadd.f32 %v3043_v1, %v2595_v4  ;;  %v3379_v48 = vmul.f32 %v5230_v38, %v3275_v45  ;;  %v9207_v27 = vrot.slane %v8155_v54, 7  ;;  %v2460_v53 = vrot.slane %v2210_v9, 7 }
 0x2ad   : > { %v3628_v39 = vsel %vm1008_vm1, %v3626_v46, %v9206_v2  ;;  %v3044_v43 = vrot.slane %v2794_v7, 1  ;;  %v3869_v1 = vmul.f32 %v8966_v33, %v8188_v41  ;;  %v4099_v46 = vmul.f32 %v7908_v5, %v3997_v51  ;;  %v2107_v7 = vld [vmem:[#allocation2 + $0x3e8] sm:$0x7f] }
 0x2ae   : > { %v1156_v40 = vsel %vm1008_vm1, %v9207_v27, %v1155_v44  ;;  %v3764_v4 = vadd.f32 %v3628_v39, %v3179_v34  ;;  %v3629_v2 = vrot.slane %v3379_v48, 7  ;;  %v9208_v18 = vrot.slane %v8164_v57, 1  ;;  %v2691_v57 = vld [vmem:[#allocation2 + $0x3f8] sm:$0x1] }
 0x2af   : > { %v1291_v62 = vadd.f32 %v1156_v40, %v706_v17  ;;  %v9209_v61 = vrot.slane %v8169_v19, 7  ;;  %v632_v9 = vmul.f32 %v8967_v16, %v560_v3  ;;  %v905_v44 = vmul.f32 %v5188_v23, %v801_v11  ;;  %v3998_v40 = vld [vmem:[#allocation2 + $0x438] sm:$0x1] }
 0x2b0   : > { %v1877_v45 = vsel %vm1729_vm2, %v9208_v18, %v1876_v52  ;;  %v3932_v27 = vadd.f32 %v3868_v14, %v3764_v4  ;;  %v9210_v17 = vrot.slane %v8181_v6, 1  ;;  %v4349_v39 = vrot.slane %v4099_v46, 1  ;;  %v3276_v52 = vld [vmem:[#allocation2 + $0x428] sm:$0x7f]  ;;  %v561_v46 = vld [vmem:[%s5076_s21 + $0x1e0] sm:$0xff] }
 0x2b1   : > { %v2461_v54 = vsel %vm1008_vm1, %v9209_v61, %v2460_v53  ;;  %v1459_v34 = vadd.f32 %v1395_v26, %v1291_v62  ;;  %v9211_v19 = vrot.slane %v8196_v24, 7  ;;  %v707_v48 = vadd.f32 %v8970_v55, %v632_v9  ;;  %v802_v9 = vld [vmem:[#allocation2 + $0x3c0] sm:$0x80] }
 0x2b2   : > { %v3045_v51 = vsel %vm1729_vm2, %v9210_v17, %v3044_v43  ;;  %v1157_v3 = vrot.slane %v905_v44, 7  ;;  %v1626_v11 = vmul.f32 %v5208_v30, %v1524_v58  ;;  %v4484_v14 = vadd.f32 %v4348_v13, %v3932_v27 }
 0x2b3   : > { %v3630_v61 = vsel %vm1008_vm1, %v9211_v19, %v3629_v2  ;;  %v2012_v62 = vadd.f32 %v1877_v45, %v1459_v34  ;;  %v1396_v6 = vmul.f32 %v9202_v15, %v8972_v60  ;;  %v2211_v26 = vmul.f32 %v5224_v35, %v2107_v7 }
 0x2b4   : > { %v9212_v53 = vrot.slane %v8220_v8, 7  ;;  %v1878_v24 = vrot.slane %v1626_v11, 1  ;;  %v2795_v4 = vmul.f32 %v5228_v37, %v2691_v57  ;;  %v3380_v2 = vmul.f32 %v5244_v42, %v3276_v52  ;;  %4548 = vst [vmem:[%s5607_s4 + $0x1c8] sm:$0xff] %v4484_v14  ;;  %v1525_v52 = vld [vmem:[#allocation2 + $0x3d0] sm:$0xfe] }
 0x2b5   : > { %v2596_v58 = vadd.f32 %v2461_v54, %v2012_v62  ;;  %v9213_v13 = vrot.slane %v8208_v47, 1  ;;  %v2462_v45 = vrot.slane %v2211_v26, 7  ;;  %v3870_v8 = vmul.f32 %v8977_v10, %v8255_v63  ;;  %v2692_v26 = vld [vmem:[#allocation2 + $0x410] sm:$0xfe] }
 0x2b6   : > { %v1158_v43 = vsel %vm1008_vm1, %v9212_v53, %v1157_v3  ;;  %v3046_v44 = vrot.slane %v2795_v4, 1  ;;  %v3631_v7 = vrot.slane %v3380_v2, 7  ;;  %v4100_v27 = vmul.f32 %v7871_v32, %v3998_v40 }
 0x2b7   : > { %v4350_v18 = vsel %vm1729_vm2, %v9213_v13, %v4349_v39  ;;  %v1292_v15 = vadd.f32 %v1158_v43, %v707_v48  ;;  %v3180_v34 = vadd.f32 %v3045_v51, %v2596_v58  ;;  %v9214_v57 = vrot.slane %v8231_v21, 1  ;;  %v3277_v13 = vld [vmem:[#allocation2 + $0x440] sm:$0x80] }
 0x2b8   : > { %v633_v47 = vmul.f32 %v8976_v49, %v561_v46  ;;  %v9215_v39 = vrot.slane %v8236_v50, 7  ;;  %v9216_v48 = vrot.slane %v8245_v59, 1  ;;  %v9217_v11 = vrot.slane %v8266_v12, 7  ;;  %v2108_v50 = vld [vmem:[#allocation2 + $0x400] sm:$0x80] }
 0x2b9   : > { %v1460_v17 = vadd.f32 %v1396_v6, %v1292_v15  ;;  %v1879_v54 = vsel %vm1729_vm2, %v9214_v57, %v1878_v24  ;;  %v906_v51 = vmul.f32 %v5186_v22, %v802_v9  ;;  %v3765_v21 = vadd.f32 %v3630_v61, %v3180_v34  ;;  %v3999_v34 = vld [vmem:[#allocation2 + $0x450] sm:$0xfe] }
 0x2ba   : > { %v2463_v19 = vsel %vm1008_vm1, %v9215_v39, %v2462_v45  ;;  %v3047_v3 = vsel %vm1729_vm2, %v9216_v48, %v3046_v44  ;;  %v3632_v32 = vsel %vm1008_vm1, %v9217_v11, %v3631_v7  ;;  %v4351_v62 = vrot.slane %v4100_v27, 1  ;;  %v562_v11 = vld [vmem:[%s5076_s21 + $0x1e8] sm:$0xff] }
 0x2bb   : > { %v2013_v14 = vadd.f32 %v1879_v54, %v1460_v17  ;;  %v8351_v6 = vmul.f32 %v7980_v20, %v5186_v22  ;;  %v708_v40 = vadd.f32 %v8978_v0, %v633_v47  ;;  %v1159_v59 = vrot.slane %v906_v51, 7 }
 0x2bc   : > { %v1397_v53 = vmul.f32 %v7980_v20, %v8963_v56  ;;  %v1627_v12 = vmul.f32 %v5206_v29, %v1525_v52  ;;  %v3933_v43 = vadd.f32 %v3869_v1, %v3765_v21  ;;  %v8360_v4 = vmul.f32 %v7992_v25, %v5206_v29 }
 0x2bd   : > { %v2597_v24 = vadd.f32 %v2463_v19, %v2013_v14  ;;  %v1160_v61 = vrot.slane %v8351_v6, 7  ;;  %v2212_v46 = vmul.f32 %v5210_v31, %v2108_v50  ;;  %v8365_v58 = vmul.f32 %v8176_v28, %v5210_v31  ;;  %v4816_v6 = vld [vmem:[%s8609_s1 + $0x10] ss:$0 sm:$0xff] }
 0x2be   : > { %v1880_v2 = vrot.slane %v1627_v12, 1  ;;  %v2796_v20 = vmul.f32 %v5226_v36, %v2692_v26  ;;  %v4485_v15 = vadd.f32 %v4350_v18, %v3933_v43  ;;  %v1881_v9 = vrot.slane %v8360_v4, 1  ;;  %v9218_v18 = vld [vmem:[#allocation23_spill] sm:$0xff]  ;;  %v3282_v4 = vld [vmem:[#allocation2 + $0x468] sm:$0x7f] }
 0x2bf   : > { %v3181_v1 = vadd.f32 %v3047_v3, %v2597_v24  ;;  %v1161_v45 = vsel %vm1008_vm1, %v1159_v59, %v1160_v61  ;;  %v2464_v7 = vrot.slane %v2212_v46, 7  ;;  %v2465_v27 = vrot.slane %v8365_v58, 7  ;;  %v8386_v3 = vld [vmem:[#allocation2] sm:$0xff] }
 0x2c0   : > { %v1293_v44 = vadd.f32 %v1161_v45, %v708_v40  ;;  %v8375_v28 = vmul.f32 %v8188_v41, %v5226_v36  ;;  %4549 = vst [vmem:[%s5607_s4 + $0x1d0] sm:$0xff] %v4485_v15  ;;  %v9219_v57 = vrot.slane %v9218_v18, 1  ;;  %v3048_v47 = vrot.slane %v2796_v20, 1  ;;  %v9220_v20 = vld [vmem:[#allocation19_spill] sm:$0xff]  ;;  %v2693_v15 = vld [vmem:[#allocation2 + $0x418] sm:$0xfe] }
 0x2c1   : > { %v3766_v17 = vadd.f32 %v3632_v32, %v3181_v1  ;;  %v3381_v52 = vmul.f32 %v5230_v38, %v3277_v13  ;;  %v1882_v19 = vsel %vm1729_vm2, %v1880_v2, %v1881_v9  ;;  %v8390_v41 = vmul.f32 %v8386_v3, %v5230_v38  ;;  %v803_v32 = vld [vmem:[#allocation2 + $0x3c8] sm:$0x80] }
 0x2c2   : > { %v4352_v54 = vsel %vm1729_vm2, %v9219_v57, %v4351_v62  ;;  %v1461_v39 = vadd.f32 %v1397_v53, %v1293_v44  ;;  %v3049_v48 = vrot.slane %v8375_v28, 1  ;;  %v2466_v21 = vsel %vm1008_vm1, %v2464_v7, %v2465_v27  ;;  %v2109_v13 = vld [vmem:[#allocation2 + $0x408] sm:$0x80]  ;;  %v9221_v57 = vld [vmem:[#allocation11_spill] sm:$0xff] }
 0x2c3   : > { %v3934_v51 = vadd.f32 %v3870_v8, %v3766_v17  ;;  %v3633_v14 = vrot.slane %v3381_v52, 7  ;;  %v4101_v62 = vmul.f32 %v7908_v5, %v3999_v34  ;;  %v3634_v26 = vrot.slane %v8390_v41, 7  ;;  %v1526_v8 = vld [vmem:[#allocation2 + $0x3d8] sm:$0xfe] }
 0x2c4   : > { %v2014_v50 = vadd.f32 %v1882_v19, %v1461_v39  ;;  %v8400_v40 = vmul.f32 %v8386_v3, %v8966_v33  ;;  %v8404_v59 = vmul.f32 %v8386_v3, %v7908_v5  ;;  %v3050_v12 = vsel %vm1729_vm2, %v3048_v47, %v3049_v48  ;;  %v9222_v39 = vld [vmem:[#allocation21_spill] sm:$0xff] }
 0x2c5   : > { %v4486_v53 = vadd.f32 %v4352_v54, %v3934_v51  ;;  %v634_v43 = vmul.f32 %v8967_v16, %v562_v11  ;;  %v907_v24 = vmul.f32 %v5188_v23, %v803_v32  ;;  %v3635_v33 = vsel %vm1008_vm1, %v3633_v14, %v3634_v26  ;;  %v3278_v32 = vld [vmem:[#allocation2 + $0x448] sm:$0x80] }
 0x2c6   : > { %v2598_v2 = vadd.f32 %v2466_v21, %v2014_v50  ;;  %v4353_v46 = vrot.slane %v4101_v62, 1  ;;  %v8416_v5 = vmul.f32 %v9220_v20, %v5188_v23  ;;  %v8855_v1 = vrot.slane %v8404_v59, 1 }
 0x2c7   : > { %4550 = vst [vmem:[%s5607_s4 + $0x1d8] sm:$0xff] %v4486_v53  ;;  %v709_v45 = vadd.f32 %v8970_v55, %v634_v43  ;;  %v1162_v44 = vrot.slane %v907_v24, 7  ;;  %v1628_v7 = vmul.f32 %v5208_v30, %v1526_v8  ;;  %v1398_v18 = vmul.f32 %v9220_v20, %v8972_v60  ;;  %v4000_v43 = vld [vmem:[#allocation2 + $0x458] sm:$0xfe] }
 0x2c8   : > { %v3182_v34 = vadd.f32 %v3050_v12, %v2598_v2  ;;  %v1163_v17 = vrot.slane %v8416_v5, 7  ;;  %v8427_v54 = vmul.f32 %v9221_v57, %v5208_v30  ;;  %v2213_v52 = vmul.f32 %v5224_v35, %v2109_v13  ;;  %v563_v13 = vld [vmem:[%s5076_s21 + $0x1f0] sm:$0xff] }
 0x2c9   : > { %v1883_v47 = vrot.slane %v1628_v7, 1  ;;  %v8432_v19 = vmul.f32 %v9222_v39, %v5224_v35  ;;  %v2797_v11 = vmul.f32 %v5228_v37, %v2693_v15  ;;  %v8441_v62 = vmul.f32 %v8255_v63, %v5228_v37 }
 0x2ca   : > { %v3767_v51 = vadd.f32 %v3635_v33, %v3182_v34  ;;  %v1164_v21 = vsel %vm1008_vm1, %v1162_v44, %v1163_v17  ;;  %v1884_v14 = vrot.slane %v8427_v54, 1  ;;  %v4355_v50 = vsel %vm1729_vm2, %v4353_v46, %v8855_v1  ;;  %v1527_v44 = vld [vmem:[#allocation2 + $0x3f0] sm:$0x1] }
 0x2cb   : > { %v1294_v8 = vadd.f32 %v1164_v21, %v709_v45  ;;  %v2467_v53 = vrot.slane %v2213_v52, 7  ;;  %v2468_v12 = vrot.slane %v8432_v19, 7  ;;  %v3051_v2 = vrot.slane %v2797_v11, 1  ;;  %v806_v45 = vld [vmem:[#allocation2 + $0x3e0] sm:$0x7f] }
 0x2cc   : > { %v3935_v24 = vadd.f32 %v8400_v40, %v3767_v51  ;;  %v3052_v33 = vrot.slane %v8441_v62, 1  ;;  %v3382_v20 = vmul.f32 %v5244_v42, %v3278_v32  ;;  %v1885_v15 = vsel %vm1729_vm2, %v1883_v47, %v1884_v14  ;;  %v2112_v21 = vld [vmem:[#allocation2 + $0x420] sm:$0x7f] }
 0x2cd   : > { %v1462_v63 = vadd.f32 %v1398_v18, %v1294_v8  ;;  %v8456_v46 = vmul.f32 %v8386_v3, %v5244_v42  ;;  %v2469_v34 = vsel %vm1008_vm1, %v2467_v53, %v2468_v12  ;;  %v8464_v18 = vld [vmem:[%s8609_s1 + $0x18] ss:$0 sm:$0xff]  ;;  %v635_v51 = vmul.f32 %v8976_v49, %v563_v13 }
 0x2ce   : > { %v4487_v7 = vadd.f32 %v4355_v50, %v3935_v24  ;;  %v3636_v52 = vrot.slane %v3382_v20, 7  ;;  %v4102_v39 = vmul.f32 %v8464_v18, %v4000_v43  ;;  %v8470_v32 = vmul.f32 %v8464_v18, %v8386_v3  ;;  %v2696_v43 = vld [vmem:[#allocation2 + $0x430] sm:$0x1]  ;;  %v3281_v24 = vld [vmem:[#allocation2 + $0x460] sm:$0x7f] }
 0x2cf   : > { %v2015_v47 = vadd.f32 %v1885_v15, %v1462_v63  ;;  %v3637_v11 = vrot.slane %v8456_v46, 7  ;;  %v3053_v50 = vsel %vm1729_vm2, %v3051_v2, %v3052_v33  ;;  %v910_v8 = vmul.f32 %v5186_v22, %v806_v45 }
 0x2d0   : > { %4551 = vst [vmem:[%s5607_s4 + $0x1e0] sm:$0xff] %v4487_v7  ;;  %v1631_v53 = vmul.f32 %v5206_v29, %v1527_v44  ;;  %v4356_v63 = vrot.slane %v4102_v39, 1  ;;  %v4357_v15 = vrot.slane %v8470_v32, 1  ;;  %v710_v1 = vadd.f32 %v8978_v0, %v635_v51  ;;  %v564_v39 = vld [vmem:[%s5076_s21 + $0x1f8] sm:$0xff]  ;;  %v807_v0 = vld [vmem:[#allocation2 + $0x3e8] sm:$0x7f] }
 0x2d1   : > { %v2599_v20 = vadd.f32 %v2469_v34, %v2015_v47  ;;  %v3638_v49 = vsel %vm1008_vm1, %v3636_v52, %v3637_v11  ;;  %v1165_v13 = vrot.slane %v910_v8, 7  ;;  %v2216_v2 = vmul.f32 %v5210_v31, %v2112_v21  ;;  %v4001_v34 = vld [vmem:[#allocation2 + $0x470] sm:$0x1]  ;;  %v2113_v8 = vld [vmem:[#allocation2 + $0x428] sm:$0x7f] }
 0x2d2   : > { %v1886_v7 = vrot.slane %v1631_v53, 1  ;;  %v8487_v29 = vmul.f32 %v8386_v3, %v8977_v10  ;;  %v2800_v45 = vmul.f32 %v5226_v36, %v2696_v43  ;;  %v3385_v44 = vmul.f32 %v5230_v38, %v3281_v24  ;;  %v1528_v36 = vld [vmem:[#allocation2 + $0x3f8] sm:$0x1] }
 0x2d3   : > { %v3183_v22 = vadd.f32 %v3053_v50, %v2599_v20  ;;  %v1166_v52 = vsel %vm1008_vm1, %v1160_v61, %v1165_v13  ;;  %v2470_v47 = vrot.slane %v2216_v2, 7  ;;  %v4358_v31 = vsel %vm1729_vm2, %v4356_v63, %v4357_v15 }
 0x2d4   : > { %v1295_v21 = vadd.f32 %v1166_v52, %v710_v1  ;;  %v1399_v10 = vmul.f32 %v7992_v25, %v8963_v56  ;;  %v1887_v38 = vsel %vm1729_vm2, %v1881_v9, %v1886_v7  ;;  %v4105_v61 = vmul.f32 %v4816_v6, %v4001_v34  ;;  %v2697_v25 = vld [vmem:[#allocation2 + $0x438] sm:$0x1] }
 0x2d5   : > { %v3768_v51 = vadd.f32 %v3638_v49, %v3183_v22  ;;  %v636_v3 = vmul.f32 %v8967_v16, %v564_v39  ;;  %v911_v50 = vmul.f32 %v5188_v23, %v807_v0  ;;  %v3054_v43 = vrot.slane %v2800_v45, 1  ;;  %v4002_v22 = vld [vmem:[#allocation2 + $0x478] sm:$0x1] }
 0x2d6   : > { %v1463_v53 = vadd.f32 %v1399_v10, %v1295_v21  ;;  %v3639_v56 = vrot.slane %v3385_v44, 7  ;;  %v2471_v9 = vsel %vm1008_vm1, %v2465_v27, %v2470_v47  ;;  %v1632_v16 = vmul.f32 %v5208_v30, %v1528_v36 }
 0x2d7   : > { %v3936_v1 = vadd.f32 %v8487_v29, %v3768_v51  ;;  %v711_v24 = vadd.f32 %v8970_v55, %v636_v3  ;;  %v1167_v20 = vrot.slane %v911_v50, 7  ;;  %v2217_v49 = vmul.f32 %v5224_v35, %v2113_v8 }
 0x2d8   : > { %v2016_v23 = vadd.f32 %v1887_v38, %v1463_v53  ;;  %v1888_v7 = vrot.slane %v1632_v16, 1  ;;  %v2801_v2 = vmul.f32 %v5228_v37, %v2697_v25  ;;  %v3386_v58 = vmul.f32 %v5244_v42, %v3282_v4 }
 0x2d9   : > { %v4488_v63 = vadd.f32 %v4358_v31, %v3936_v1  ;;  %v1168_v13 = vsel %vm1008_vm1, %v1163_v17, %v1167_v20  ;;  %v1400_v30 = vmul.f32 %v9221_v57, %v8972_v60  ;;  %v2472_v45 = vrot.slane %v2217_v49, 7 }
 0x2da   : > { %v2600_v27 = vadd.f32 %v2471_v9, %v2016_v23  ;;  %v1296_v55 = vadd.f32 %v1168_v13, %v711_v24  ;;  %v3055_v35 = vsel %vm1729_vm2, %v3049_v48, %v3054_v43  ;;  %v3640_v5 = vsel %vm1008_vm1, %v3634_v26, %v3639_v56 }
 0x2db   : > { %4552 = vst [vmem:[%s5607_s4 + $0x1e8] sm:$0xff] %v4488_v63  ;;  %v4359_v17 = vrot.slane %v4105_v61, 1  ;;  %v4106_v42 = vmul.f32 %v8464_v18, %v4002_v22  ;;  %v1889_v34 = vsel %vm1729_vm2, %v1884_v14, %v1888_v7  ;;  %v2473_v60 = vsel %vm1008_vm1, %v2468_v12, %v2472_v45 }
 0x2dc   : > { %v3184_v37 = vadd.f32 %v3055_v35, %v2600_v27  ;;  %v1464_v44 = vadd.f32 %v1400_v30, %v1296_v55  ;;  %v3056_v28 = vrot.slane %v2801_v2, 1  ;;  %v3641_v48 = vrot.slane %v3386_v58, 7 }
 0x2dd   : > { %v9223_v57 = vrot.slane %v8404_v59, 1  ;;  %v4361_v12 = vrot.slane %v4106_v42, 1 }
 0x2de   : > { %v3769_v41 = vadd.f32 %v3640_v5, %v3184_v37  ;;  %v2017_v26 = vadd.f32 %v1889_v34, %v1464_v44  ;;  %v3057_v19 = vsel %vm1729_vm2, %v3052_v33, %v3056_v28  ;;  %v3642_v14 = vsel %vm1008_vm1, %v3637_v11, %v3641_v48 }
 0x2df   : > { %v4360_v39 = vsel %vm1729_vm2, %v9223_v57, %v4359_v17 }
 0x2e0   : > { %v3937_v18 = vadd.f32 %v8400_v40, %v3769_v41  ;;  %v2601_v54 = vadd.f32 %v2473_v60, %v2017_v26  ;;  %v4362_v40 = vsel %vm1729_vm2, %v4357_v15, %v4361_v12 }
 0x2e2   : > { %v4489_v0 = vadd.f32 %v4360_v39, %v3937_v18  ;;  %v3185_v52 = vadd.f32 %v3057_v19, %v2601_v54 }
 0x2e4   : > { %4553 = vst [vmem:[%s5607_s4 + $0x1f0] sm:$0xff] %v4489_v0  ;;  %v3770_v59 = vadd.f32 %v3642_v14, %v3185_v52 }
 0x2e6   : > { %v3938_v62 = vadd.f32 %v8487_v29, %v3770_v59 }
 0x2e8   : > { %v4490_v33 = vadd.f32 %v4362_v40, %v3938_v62 }
 0x2ea   : > { %4554 = vst [vmem:[%s5607_s4 + $0x1f8] sm:$0xff] %v4490_v33 }
 0x2eb   : > { %4860 = shalt.err (!%p4857_p5)
}
 0x2ec   : > { %s4861_s4 = scalar_lea.hbm %s8556_s22, 8192  ;;  %s4865_s18 = scalar_lea.hbm %s8611_s3, 16384 }
 0x2ed   : > { %p4862_p4 = scmp.ne.s32.totalorder %s8556_s22, %s4861_s4  ;;  %p4866_p12 = scmp.lt.u32.totalorder %s8556_s22, %s8611_s3 }
 0x2ee   : > { %p4867_p1 = scmp.lt.u32.totalorder %s4865_s18, %s4861_s4  ;;  %p4869_p8 = scmp.lt.u32.totalorder %s4861_s4, %s8556_s22 }
 0x2ef   : > { %p4863_p7 = pnand %p4862_p4, %p9224_p9 }
 0x2f0   : > { %p4868_p3 = por %p4867_p1, %p4866_p12 }
 0x2f1   : > { %p4864_p10 = pneg %p4863_p7 }
 0x2f2   : > { %p4870_p11 = por %p4869_p8, %p4868_p3 }
 0x2f4   : > { %p4871_p0 = pnand %p4870_p11, %p4864_p10 }
 0x2f6   : > { %4874 = shalt.err (!%p4871_p0)
}
 0x2f7   : > { %s4936_s24 = smov 256   ;;  %s4937_s6 = smov 16  }
 0x2f8   : > { %4740 = dma.vmem_to_hbm [thread:$0]  (%p9224_p9), %s8558_s8, 8192, %s8556_s22, %s4556_s15, %s4936_s24, %s4936_s24, %s4937_s6  }
 0x2f9 PF: > { %s4586_s9 = sand.u32 1, %s4909_s12   ;;  %p9225_p6 = scmp.ne.s32.totalorder %s8859_s27, 0 }
 0x2fa   : > { %p9226_p13 = scmp.ge.s32.totalorder %s4929_s17, 2  ;;  %s4587_s10 = scalar_lea.sflag [#allocation5], %s4586_s9 }
 0x2fc   : > { %p4747_p2 = pnand %p9226_p13, %p9225_p6 }
 0x2fe   : > { %4904 = dma.done.wait (!%p4747_p2), %s4587_s10, 8192  }
 0x2ff   : > { %4906 = vsyncadd (!%p4747_p2), %s4587_s10, 4294959104  ;;  %s19_s17 = sadd.s32 1, %s4929_s17   ;;  %s9227_s12 = smov %s4913_s13 }
 0x300   : > { %p16_p5 = scmp.ge.s32.totalorder %s19_s17, 4   ;;  %s9228_s13 = smov %s4917_s14 }
 0x301   : > { %s9229_s14 = smov %s5014_s26  ;;  %s9230_s15 = smov %s4925_s16 }
 0x302   : > { %s9231_s16 = smov %s9233_s20  ;;  %18 = sbr.rel (!%p16_p5) target bundleno = 6 (0x6), region = 118 }
 0x309   :  { %4592 = vsyncpa [#allocation4], 1 }
 0x30a   :  { %4594 = vsyncpa [#allocation4 + $0x1], 1 }
 0x30b   :  { %4595 = vsyncpa [#allocation5], 1 }
 0x30c   :  { %4597 = vsyncpa [#allocation5 + $0x1], 1 }

</bundles_post_ra>
